<compile_context>
chip_gen: v7x
topology: tpu7x:2x2x1
jax: 0.10.0
libtpu: 0.0.40
codegen_flags: <defaults>
</compile_context>

<pallas_src>
import re
import numpy as np
import jax
import jax.numpy as jnp
from jax.experimental import pallas as pl
from jax.experimental.pallas import tpu as pltpu

# Module hyper-params (defaults of BBoxEmbedder.__init__)
NUM_FREQS = 4
INPUT_DIMS = 3
N_CORNERS = 8
FOURIER_OUT = INPUT_DIMS * (1 + 2 * NUM_FREQS)    # 27 (include_input=True)
EMB_DIM = FOURIER_OUT * N_CORNERS                 # 216 == fourier.out_dim * 8
EMB_PAD = 256                                     # zero-padded K of first Linear
COORD_DIM = N_CORNERS * INPUT_DIMS                # 24 raw coords per bbox
COORD_PAD = 32                                    # 24 coords + const-1 lane + pad
PROJ_DIMS = [768, 512, 512, 768]


def _round_up(x, m):
    return (x + m - 1) // m * m


def _cdiv(a, b):
    return -(-a // b)


def _tpu_config():
    """Per-generation tiling / precision knobs."""
    gen = 6
    try:
        kind = jax.devices()[0].device_kind
        m = re.search(r"(\d+)", kind)
        if m:
            gen = int(m.group(1))
    except Exception:
        pass
    if gen >= 7:
        # v7x: 2 TCs/chip (force grid >= 2), only 64 MiB VMEM/TC.
        return dict(block_b=512, vmem_limit=48 << 20, min_blocks=2, bf16_eltwise=True)
    if gen >= 6:
        # v6e: bf16 VPU/EUP available, 128 MiB VMEM.
        return dict(block_b=1024, vmem_limit=64 << 20, min_blocks=1, bf16_eltwise=True)
    # v5e and older: no bf16 VPU/EUP -> keep elementwise math in f32.
    return dict(block_b=1024, vmem_limit=64 << 20, min_blocks=1, bf16_eltwise=False)


# --------------------------------------------------------------------------- #
# Kernel
# --------------------------------------------------------------------------- #
def _make_kernel(bf16_eltwise):
    def kernel(coords_ref, gmat_ref, idm_ref,
               w0_ref, b0_ref, w1_ref, b1_ref,
               w2_ref, b2_ref, w3_ref, b3_ref, out_ref):
        # Fourier features: gather + frequency scale + cos->sin phase shift fused
        # into one constant f32 matmul.  Kept f32 x f32 (full-precision MXU
        # passes) so freq*x is not mantissa-truncated before sin().
        scaled = jnp.dot(coords_ref[...], gmat_ref[...],
                         preferred_element_type=jnp.float32)        # (TB, 256) f32
        is_id = idm_ref[...] > 0.5                                   # (1, 256)
        # cos(fx) == sin(fx + pi/2); identity columns pass straight through.
        emb = jnp.where(is_id, scaled, jnp.sin(scaled))              # (TB, 256) f32

        def linear(h, w_ref, b_ref):
            # bf16 MXU operands, f32 accumulation, f32 bias add.
            lhs = h if h.dtype == jnp.bfloat16 else h.astype(jnp.bfloat16)
            return jnp.dot(lhs, w_ref[...],
                           preferred_element_type=jnp.float32) + b_ref[...]

        def silu(h):
            # SiLU via tanh: sigmoid(x) = 0.5*(1 + tanh(x/2)) -> single EUP push
            # (vs exp + reciprocal).  bf16 elementwise on v6e/v7x only; the bf16
            # result feeds the next matmul directly (no extra cast).
            if bf16_eltwise:
                h = h.astype(jnp.bfloat16)
            return (0.5 * h) * (1.0 + jnp.tanh(0.5 * h))

        h = linear(emb, w0_ref, b0_ref)        # 256 -> 768 (bbox_proj; pad rows of w0 are 0)
        h = linear(h, w1_ref, b1_ref)          # 768 -> 512
        h = silu(h)
        h = linear(h, w2_ref, b2_ref)          # 512 -> 512
        h = silu(h)
        h = linear(h, w3_ref, b3_ref)          # 512 -> 768
        out_ref[...] = h.astype(out_ref.dtype)

    return kernel


# --------------------------------------------------------------------------- #
# Constant tables (torch Embedder column order, per corner:
#   [x, y, z, sin(1*xyz), cos(1*xyz), sin(2*xyz), cos(2*xyz), ..., cos(8*xyz)])
# --------------------------------------------------------------------------- #
def _fourier_tables():
    col = np.arange(EMB_DIM)
    corner = col // FOURIER_OUT
    k = col % FOURIER_OUT
    is_id = k < INPUT_DIMS
    kk = np.where(is_id, 0, k - INPUT_DIMS)
    freq_idx = kk // (2 * INPUT_DIMS)
    pair = (kk % (2 * INPUT_DIMS)) // INPUT_DIMS          # 0 -> sin, 1 -> cos
    dim = np.where(is_id, k, kk % INPUT_DIMS)
    src = corner * INPUT_DIMS + dim                       # raw-coord index (0..23)
    freqs = 2.0 ** np.arange(NUM_FREQS)                   # log_sampling: [1, 2, 4, 8]
    freq = np.where(is_id, 1.0, freqs[freq_idx])

    gmat = np.zeros((COORD_PAD, EMB_PAD), np.float32)     # one-hot select * freq
    gmat[src, col] = freq
    # Row COORD_DIM multiplies the constant-1 lane of the padded coords and
    # injects the +pi/2 phase on cos columns (fold of the old VPU add).
    gmat[COORD_DIM, col] = np.where((~is_id) & (pair == 1), np.pi / 2.0, 0.0)

    id_mask = np.zeros((1, EMB_PAD), np.float32)
    id_mask[0, :EMB_DIM] = is_id.astype(np.float32)
    return jnp.asarray(gmat), jnp.asarray(id_mask)


# --------------------------------------------------------------------------- #
# Parameters
# --------------------------------------------------------------------------- #
def init_params(key):
    """Deterministic f32 parameters, PyTorch nn.Linear-like init.
    Weights stored transposed as (in_dim, out_dim)."""
    dims = [EMB_DIM] + PROJ_DIMS
    params = {}
    for i in range(4):
        key, kw, kb = jax.random.split(key, 3)
        bound = 1.0 / np.sqrt(dims[i])
        params[f"w{i}"] = jax.random.uniform(kw, (dims[i], dims[i + 1]),
                                             jnp.float32, -bound, bound)
        params[f"b{i}"] = jax.random.uniform(kb, (1, dims[i + 1]),
                                             jnp.float32, -bound, bound)
    return params


def pack_kernel_params(params):
    """bf16 weights for the kernel (w0 zero-padded 216 -> 256 rows), f32 biases."""
    kp = {}
    w0 = jnp.pad(params["w0"], ((0, EMB_PAD - EMB_DIM), (0, 0)))
    kp["w0"] = w0.astype(jnp.bfloat16)
    kp["b0"] = params["b0"]
    for i in range(1, 4):
        kp[f"w{i}"] = params[f"w{i}"].astype(jnp.bfloat16)
        kp[f"b{i}"] = params[f"b{i}"]
    return kp


# --------------------------------------------------------------------------- #
# Wrapper
# --------------------------------------------------------------------------- #
def bbox_embedder_forward(bbox, kparams, *, block_b=None, out_dtype=jnp.bfloat16):
    cfg = _tpu_config()
    if block_b is None:
        block_b = cfg["block_b"]

    B = bbox.shape[0]
    coords = bbox.astype(jnp.float32).reshape(B, COORD_DIM)          # (B, 24)
    # Lane 24 is a constant 1.0 (carries the +pi/2 phase row of gmat);
    # lanes 25..31 are zero pad so the first-dot K is a tidy 32.
    coords = jnp.concatenate(
        [coords,
         jnp.ones((B, 1), jnp.float32),
         jnp.zeros((B, COORD_PAD - COORD_DIM - 1), jnp.float32)], axis=1)

    # Batch tiling: minimize pad waste; on v7x split even small batches so
    # grid >= 2 and both TensorCores get work.
    n_blocks = max(_cdiv(B, block_b), cfg["min_blocks"])
    tb = _round_up(_cdiv(B, n_blocks), 8)
    b_pad = n_blocks * tb
    if b_pad != B:
        coords = jnp.pad(coords, ((0, b_pad - B), (0, 0)))

    gmat, id_mask = _fourier_tables()

    const = lambda i: (0, 0)   # weights/tables: VMEM-resident across batch blocks
    inputs = [coords, gmat, id_mask]
    in_specs = [
        pl.BlockSpec((tb, COORD_PAD), lambda i: (i, 0)),
        pl.BlockSpec(gmat.shape, const),
        pl.BlockSpec(id_mask.shape, const),
    ]
    for i in range(4):
        w, b = kparams[f"w{i}"], kparams[f"b{i}"]
        inputs += [w, b]
        in_specs += [pl.BlockSpec(w.shape, const), pl.BlockSpec(b.shape, const)]
    # TODO(synk): constant operands could take pipeline_mode=pl.Buffered(1) to
    # drop their second VMEM buffer (~2.4 MB); not needed at these tile sizes.

    out = pl.pallas_call(
        _make_kernel(cfg["bf16_eltwise"]),
        out_shape=jax.ShapeDtypeStruct((b_pad, PROJ_DIMS[-1]), out_dtype),
        grid=(n_blocks,),
        in_specs=in_specs,
        out_specs=pl.BlockSpec((tb, PROJ_DIMS[-1]), lambda i: (i, 0)),
        compiler_params=pltpu.CompilerParams(
            dimension_semantics=("parallel",),
            vmem_limit_bytes=cfg["vmem_limit"]),
    )(*inputs)
    return out[:B, None, :]                                          # (B, 1, 768)


# --------------------------------------------------------------------------- #
# Pure-JAX references
# --------------------------------------------------------------------------- #
def _fourier_ref(x):
    freqs = 2.0 ** jnp.arange(NUM_FREQS, dtype=jnp.float32)
    outs = [x]
    for f in freqs:
        outs.append(jnp.sin(x * f))
        outs.append(jnp.cos(x * f))
    return jnp.concatenate(outs, axis=-1).reshape(x.shape[0], -1)    # (B, 216)


def reference_forward_f32(bbox, params):
    """Pure-f32 replica of the PyTorch forward (semantic reference)."""
    emb = _fourier_ref(bbox.astype(jnp.float32))
    h = emb @ params["w0"] + params["b0"]
    h = h @ params["w1"] + params["b1"]
    h = h * jax.nn.sigmoid(h)
    h = h @ params["w2"] + params["b2"]
    h = h * jax.nn.sigmoid(h)
    h = h @ params["w3"] + params["b3"]
    return h[:, None, :]


def reference_forward_bf16(bbox, params):
    """Same math, mirroring the kernel's precision (bf16 matmul operands, f32 accum)."""
    emb = _fourier_ref(bbox.astype(jnp.float32))

    def lin(h, w, b):
        return jnp.dot(h.astype(jnp.bfloat16), w.astype(jnp.bfloat16),
                       preferred_element_type=jnp.float32) + b

    h = lin(emb, params["w0"], params["b0"])
    h = lin(h, params["w1"], params["b1"])
    h = h * jax.nn.sigmoid(h)
    h = lin(h, params["w2"], params["b2"])
    h = h * jax.nn.sigmoid(h)
    h = lin(h, params["w3"], params["b3"])
    return h[:, None, :]


if __name__ == "__main__":
    key = jax.random.PRNGKey(0)
    k_param, k_bbox = jax.random.split(key)
    params = init_params(k_param)
    kparams = pack_kernel_params(params)

    bbox = jax.random.normal(k_bbox, (2, N_CORNERS, INPUT_DIMS), dtype=jnp.float32)
    out = jax.block_until_ready(bbox_embedder_forward(bbox, kparams))
    assert out.shape == (2, 1, PROJ_DIMS[-1]), out.shape
    out_f32 = np.asarray(out.astype(jnp.float32))

    # Tight check vs a reference that mirrors the kernel's bf16/f32 precision.
    ref_bf16 = np.asarray(jax.block_until_ready(reference_forward_bf16(bbox, params)))
    np.testing.assert_allclose(out_f32, ref_bf16, rtol=2e-2, atol=2e-2)
    # Loose semantic check vs the pure-f32 PyTorch-equivalent forward.
    ref_f32 = np.asarray(jax.block_until_ready(reference_forward_f32(bbox, params)))
    np.testing.assert_allclose(out_f32, ref_f32, rtol=5e-2, atol=5e-2)

    # Also exercise the multi-block grid path (batch tiling + resident weights).
    bbox2 = jax.random.normal(jax.random.PRNGKey(1), (20, N_CORNERS, INPUT_DIMS),
                              dtype=jnp.float32)
    out2 = jax.block_until_ready(bbox_embedder_forward(bbox2, kparams, block_b=8))
    ref2 = np.asarray(jax.block_until_ready(reference_forward_bf16(bbox2, params)))
    np.testing.assert_allclose(np.asarray(out2.astype(jnp.float32)), ref2,
                               rtol=2e-2, atol=2e-2)

    print("KERNEL_OK")
</pallas_src>

<mosaic_0001>
module attributes {stable_mosaic.version = 11 : i64} {
  func.func @kernel(%arg0: i32, %arg1: memref<8x32xf32, #tpu.memory_space<vmem>>, %arg2: memref<32x256xf32, #tpu.memory_space<vmem>>, %arg3: memref<1x256xf32, #tpu.memory_space<vmem>>, %arg4: memref<256x768xbf16, #tpu.memory_space<vmem>>, %arg5: memref<1x768xf32, #tpu.memory_space<vmem>>, %arg6: memref<768x512xbf16, #tpu.memory_space<vmem>>, %arg7: memref<1x512xf32, #tpu.memory_space<vmem>>, %arg8: memref<512x512xbf16, #tpu.memory_space<vmem>>, %arg9: memref<1x512xf32, #tpu.memory_space<vmem>>, %arg10: memref<512x768xbf16, #tpu.memory_space<vmem>>, %arg11: memref<1x768xf32, #tpu.memory_space<vmem>>, %arg12: memref<8x768xbf16, #tpu.memory_space<vmem>>) attributes {dimension_semantics = [#tpu.dimension_semantics<parallel>], iteration_bounds = array<i64: 1>, scalar_prefetch = 0 : i64, scratch_operands = 0 : i64, tpu.core_type = #tpu.core_type<tc>, window_params = [{transform_indices = @transform_0, window_bounds = array<i64: 8, 32>}, {pipeline_mode = #tpu.pipeline_mode<synchronous>, transform_indices = @transform_1, window_bounds = array<i64: 32, 256>}, {pipeline_mode = #tpu.pipeline_mode<synchronous>, transform_indices = @transform_2, window_bounds = array<i64: 1, 256>}, {pipeline_mode = #tpu.pipeline_mode<synchronous>, transform_indices = @transform_3, window_bounds = array<i64: 256, 768>}, {pipeline_mode = #tpu.pipeline_mode<synchronous>, transform_indices = @transform_4, window_bounds = array<i64: 1, 768>}, {pipeline_mode = #tpu.pipeline_mode<synchronous>, transform_indices = @transform_5, window_bounds = array<i64: 768, 512>}, {pipeline_mode = #tpu.pipeline_mode<synchronous>, transform_indices = @transform_6, window_bounds = array<i64: 1, 512>}, {pipeline_mode = #tpu.pipeline_mode<synchronous>, transform_indices = @transform_7, window_bounds = array<i64: 512, 512>}, {pipeline_mode = #tpu.pipeline_mode<synchronous>, transform_indices = @transform_8, window_bounds = array<i64: 1, 512>}, {pipeline_mode = #tpu.pipeline_mode<synchronous>, transform_indices = @transform_9, window_bounds = array<i64: 512, 768>}, {pipeline_mode = #tpu.pipeline_mode<synchronous>, transform_indices = @transform_10, window_bounds = array<i64: 1, 768>}, {transform_indices = @transform_11, window_bounds = array<i64: 8, 768>}]} {
    %c0 = arith.constant 0 : index
    %c0_0 = arith.constant 0 : index
    %0 = vector.load %arg1[%c0, %c0_0] : memref<8x32xf32, #tpu.memory_space<vmem>>, vector<8x32xf32>
    %c0_1 = arith.constant 0 : index
    %c0_2 = arith.constant 0 : index
    %1 = vector.load %arg2[%c0_1, %c0_2] : memref<32x256xf32, #tpu.memory_space<vmem>>, vector<32x256xf32>
    %cst = arith.constant dense<0.000000e+00> : vector<8x256xf32>
    %2 = tpu.matmul %0, %1, %cst {dimension_numbers = #tpu.dot_dimension_numbers<[1], [0], [0], [1], [0, 0, 1, 1], [], []>} : vector<8x32xf32>, vector<32x256xf32>, vector<8x256xf32> -> vector<8x256xf32>
    %c0_3 = arith.constant 0 : index
    %c0_4 = arith.constant 0 : index
    %3 = vector.load %arg3[%c0_3, %c0_4] : memref<1x256xf32, #tpu.memory_space<vmem>>, vector<1x256xf32>
    %cst_5 = arith.constant 5.000000e-01 : f32
    %4 = vector.broadcast %cst_5 : f32 to vector<1x256xf32>
    %5 = arith.cmpf ogt, %3, %4 : vector<1x256xf32>
    %6 = math.sin %2 : vector<8x256xf32>
    %7 = vector.shape_cast %5 : vector<1x256xi1> to vector<1x256xi1>
    %8 = vector.broadcast %7 : vector<1x256xi1> to vector<8x256xi1>
    %9 = arith.select %8, %2, %6 : vector<8x256xi1>, vector<8x256xf32>
    %10 = arith.truncf %9 : vector<8x256xf32> to vector<8x256xbf16>
    %c0_6 = arith.constant 0 : index
    %c0_7 = arith.constant 0 : index
    %11 = vector.load %arg4[%c0_6, %c0_7] : memref<256x768xbf16, #tpu.memory_space<vmem>>, vector<256x768xbf16>
    %cst_8 = arith.constant dense<0.000000e+00> : vector<8x768xf32>
    %12 = tpu.matmul %10, %11, %cst_8 {dimension_numbers = #tpu.dot_dimension_numbers<[1], [0], [0], [1], [0, 0, 1, 1], [], []>} : vector<8x256xbf16>, vector<256x768xbf16>, vector<8x768xf32> -> vector<8x768xf32>
    %c0_9 = arith.constant 0 : index
    %c0_10 = arith.constant 0 : index
    %13 = vector.load %arg5[%c0_9, %c0_10] : memref<1x768xf32, #tpu.memory_space<vmem>>, vector<1x768xf32>
    %14 = vector.broadcast %13 : vector<1x768xf32> to vector<8x768xf32>
    %15 = arith.addf %12, %14 : vector<8x768xf32>
    %16 = arith.truncf %15 : vector<8x768xf32> to vector<8x768xbf16>
    %c0_11 = arith.constant 0 : index
    %c0_12 = arith.constant 0 : index
    %17 = vector.load %arg6[%c0_11, %c0_12] : memref<768x512xbf16, #tpu.memory_space<vmem>>, vector<768x512xbf16>
    %cst_13 = arith.constant dense<0.000000e+00> : vector<8x512xf32>
    %18 = tpu.matmul %16, %17, %cst_13 {dimension_numbers = #tpu.dot_dimension_numbers<[1], [0], [0], [1], [0, 0, 1, 1], [], []>} : vector<8x768xbf16>, vector<768x512xbf16>, vector<8x512xf32> -> vector<8x512xf32>
    %c0_14 = arith.constant 0 : index
    %c0_15 = arith.constant 0 : index
    %19 = vector.load %arg7[%c0_14, %c0_15] : memref<1x512xf32, #tpu.memory_space<vmem>>, vector<1x512xf32>
    %20 = vector.broadcast %19 : vector<1x512xf32> to vector<8x512xf32>
    %21 = arith.addf %18, %20 : vector<8x512xf32>
    %22 = arith.truncf %21 : vector<8x512xf32> to vector<8x512xbf16>
    %cst_16 = arith.constant 5.000000e-01 : bf16
    %23 = vector.broadcast %cst_16 : bf16 to vector<8x512xbf16>
    %24 = arith.mulf %23, %22 : vector<8x512xbf16>
    %cst_17 = arith.constant 5.000000e-01 : bf16
    %25 = vector.broadcast %cst_17 : bf16 to vector<8x512xbf16>
    %26 = arith.mulf %25, %22 : vector<8x512xbf16>
    %27 = math.tanh %26 : vector<8x512xbf16>
    %cst_18 = arith.constant 1.000000e+00 : bf16
    %28 = vector.broadcast %cst_18 : bf16 to vector<8x512xbf16>
    %29 = arith.addf %28, %27 : vector<8x512xbf16>
    %30 = arith.mulf %24, %29 : vector<8x512xbf16>
    %c0_19 = arith.constant 0 : index
    %c0_20 = arith.constant 0 : index
    %31 = vector.load %arg8[%c0_19, %c0_20] : memref<512x512xbf16, #tpu.memory_space<vmem>>, vector<512x512xbf16>
    %cst_21 = arith.constant dense<0.000000e+00> : vector<8x512xf32>
    %32 = tpu.matmul %30, %31, %cst_21 {dimension_numbers = #tpu.dot_dimension_numbers<[1], [0], [0], [1], [0, 0, 1, 1], [], []>} : vector<8x512xbf16>, vector<512x512xbf16>, vector<8x512xf32> -> vector<8x512xf32>
    %c0_22 = arith.constant 0 : index
    %c0_23 = arith.constant 0 : index
    %33 = vector.load %arg9[%c0_22, %c0_23] : memref<1x512xf32, #tpu.memory_space<vmem>>, vector<1x512xf32>
    %34 = vector.broadcast %33 : vector<1x512xf32> to vector<8x512xf32>
    %35 = arith.addf %32, %34 : vector<8x512xf32>
    %36 = arith.truncf %35 : vector<8x512xf32> to vector<8x512xbf16>
    %cst_24 = arith.constant 5.000000e-01 : bf16
    %37 = vector.broadcast %cst_24 : bf16 to vector<8x512xbf16>
    %38 = arith.mulf %37, %36 : vector<8x512xbf16>
    %cst_25 = arith.constant 5.000000e-01 : bf16
    %39 = vector.broadcast %cst_25 : bf16 to vector<8x512xbf16>
    %40 = arith.mulf %39, %36 : vector<8x512xbf16>
    %41 = math.tanh %40 : vector<8x512xbf16>
    %cst_26 = arith.constant 1.000000e+00 : bf16
    %42 = vector.broadcast %cst_26 : bf16 to vector<8x512xbf16>
    %43 = arith.addf %42, %41 : vector<8x512xbf16>
    %44 = arith.mulf %38, %43 : vector<8x512xbf16>
    %c0_27 = arith.constant 0 : index
    %c0_28 = arith.constant 0 : index
    %45 = vector.load %arg10[%c0_27, %c0_28] : memref<512x768xbf16, #tpu.memory_space<vmem>>, vector<512x768xbf16>
    %cst_29 = arith.constant dense<0.000000e+00> : vector<8x768xf32>
    %46 = tpu.matmul %44, %45, %cst_29 {dimension_numbers = #tpu.dot_dimension_numbers<[1], [0], [0], [1], [0, 0, 1, 1], [], []>} : vector<8x512xbf16>, vector<512x768xbf16>, vector<8x768xf32> -> vector<8x768xf32>
    %c0_30 = arith.constant 0 : index
    %c0_31 = arith.constant 0 : index
    %47 = vector.load %arg11[%c0_30, %c0_31] : memref<1x768xf32, #tpu.memory_space<vmem>>, vector<1x768xf32>
    %48 = vector.broadcast %47 : vector<1x768xf32> to vector<8x768xf32>
    %49 = arith.addf %46, %48 : vector<8x768xf32>
    %50 = arith.truncf %49 : vector<8x768xf32> to vector<8x768xbf16>
    %c0_32 = arith.constant 0 : index
    %c0_33 = arith.constant 0 : index
    %51 = vector.load %arg12[%c0_32, %c0_33] : memref<8x768xbf16, #tpu.memory_space<vmem>>, vector<8x768xbf16>
    tpu.vector_store %arg12[%c0_32, %c0_33], %50 {strides = array<i32>} : memref<8x768xbf16, #tpu.memory_space<vmem>>, vector<8x768xbf16>,
    return
  }
  func.func @transform_0(%arg0: i32) -> (i32, i32) {
    %c0_i32 = arith.constant 0 : i32
    %c0_i32_0 = arith.constant 0 : i32
    return %arg0, %c0_i32 : i32, i32
  }
  func.func @transform_1(%arg0: i32) -> (i32, i32) {
    %c0_i32 = arith.constant 0 : i32
    %c0_i32_0 = arith.constant 0 : i32
    %c0_i32_1 = arith.constant 0 : i32
    return %c0_i32, %c0_i32_0 : i32, i32
  }
  func.func @transform_2(%arg0: i32) -> (i32, i32) {
    %c0_i32 = arith.constant 0 : i32
    %c0_i32_0 = arith.constant 0 : i32
    %c0_i32_1 = arith.constant 0 : i32
    return %c0_i32, %c0_i32_0 : i32, i32
  }
  func.func @transform_3(%arg0: i32) -> (i32, i32) {
    %c0_i32 = arith.constant 0 : i32
    %c0_i32_0 = arith.constant 0 : i32
    %c0_i32_1 = arith.constant 0 : i32
    return %c0_i32, %c0_i32_0 : i32, i32
  }
  func.func @transform_4(%arg0: i32) -> (i32, i32) {
    %c0_i32 = arith.constant 0 : i32
    %c0_i32_0 = arith.constant 0 : i32
    %c0_i32_1 = arith.constant 0 : i32
    return %c0_i32, %c0_i32_0 : i32, i32
  }
  func.func @transform_5(%arg0: i32) -> (i32, i32) {
    %c0_i32 = arith.constant 0 : i32
    %c0_i32_0 = arith.constant 0 : i32
    %c0_i32_1 = arith.constant 0 : i32
    return %c0_i32, %c0_i32_0 : i32, i32
  }
  func.func @transform_6(%arg0: i32) -> (i32, i32) {
    %c0_i32 = arith.constant 0 : i32
    %c0_i32_0 = arith.constant 0 : i32
    %c0_i32_1 = arith.constant 0 : i32
    return %c0_i32, %c0_i32_0 : i32, i32
  }
  func.func @transform_7(%arg0: i32) -> (i32, i32) {
    %c0_i32 = arith.constant 0 : i32
    %c0_i32_0 = arith.constant 0 : i32
    %c0_i32_1 = arith.constant 0 : i32
    return %c0_i32, %c0_i32_0 : i32, i32
  }
  func.func @transform_8(%arg0: i32) -> (i32, i32) {
    %c0_i32 = arith.constant 0 : i32
    %c0_i32_0 = arith.constant 0 : i32
    %c0_i32_1 = arith.constant 0 : i32
    return %c0_i32, %c0_i32_0 : i32, i32
  }
  func.func @transform_9(%arg0: i32) -> (i32, i32) {
    %c0_i32 = arith.constant 0 : i32
    %c0_i32_0 = arith.constant 0 : i32
    %c0_i32_1 = arith.constant 0 : i32
    return %c0_i32, %c0_i32_0 : i32, i32
  }
  func.func @transform_10(%arg0: i32) -> (i32, i32) {
    %c0_i32 = arith.constant 0 : i32
    %c0_i32_0 = arith.constant 0 : i32
    %c0_i32_1 = arith.constant 0 : i32
    return %c0_i32, %c0_i32_0 : i32, i32
  }
  func.func @transform_11(%arg0: i32) -> (i32, i32) {
    %c0_i32 = arith.constant 0 : i32
    %c0_i32_0 = arith.constant 0 : i32
    return %arg0, %c0_i32 : i32, i32
  }
}

</mosaic_0001>

<bundles_post_ra>
// kernel: tpu_custom_call.1
= control target key start
LH: loop header
LB: loop body
LE: loop exit
PB: predicated region body
PF: predicated region fallthrough
CT: control target
= control target key end

     0   :  { %16 = vsyncpa [#allocation3], 0  ;;  %s7458_s0 = inlined_call_operand.hbm [shape: f32[8,32], index: 0, kind: input, shape index: {}]   ;;  %s7459_s1 = inlined_call_operand.hbm [shape: f32[32,256], index: 1, kind: input, shape index: {}]   ;;  %s7460_s2 = inlined_call_operand.hbm [shape: f32[1,256], index: 2, kind: input, shape index: {}]   ;;  %s7461_s3 = inlined_call_operand.hbm [shape: bf16[256,768], index: 3, kind: input, shape index: {}]   ;;  %s7462_s4 = inlined_call_operand.hbm [shape: f32[1,768], index: 4, kind: input, shape index: {}]   ;;  %s7463_s5 = inlined_call_operand.hbm [shape: bf16[768,512], index: 5, kind: input, shape index: {}]   ;;  %s7464_s6 = inlined_call_operand.hbm [shape: f32[1,512], index: 6, kind: input, shape index: {}]   ;;  %s7465_s7 = inlined_call_operand.hbm [shape: bf16[512,512], index: 7, kind: input, shape index: {}]   ;;  %s7466_s8 = inlined_call_operand.hbm [shape: f32[1,512], index: 8, kind: input, shape index: {}]   ;;  %s7467_s9 = inlined_call_operand.hbm [shape: bf16[512,768], index: 9, kind: input, shape index: {}]   ;;  %s7468_s10 = inlined_call_operand.hbm [shape: f32[1,768], index: 10, kind: input, shape index: {}]   ;;  %s7469_s11 = inlined_call_operand.hbm [shape: bf16[8,768], index: 11, kind: output, shape index: {}]  }
   0x1   :  { %17 = vsyncpa [#allocation6], 0 }
   0x2   :  { %18 = vsyncpa [#allocation9], 0 }
   0x3   :  { %19 = vsyncpa [#allocation12], 0 }
   0x4   :  { %20 = vsyncpa [#allocation15], 0 }
   0x5   :  { %21 = vsyncpa [#allocation18], 0 }
   0x6   :  { %22 = vsyncpa [#allocation4], 0  ;;  %s7042_s17 = smov [#allocation5]   ;;  %s6764_s21 = scalar_lea.hbm %s7459_s1, 1024 }
   0x7   :  { %s38_s18 = sshll.u32 %s7042_s17, 4  ;;  %p6765_p0 = scmp.ne.s32.totalorder %s7459_s1, %s6764_s21  ;;  %s39_s18 = int_to_ptr.vmem [resolvable:$true] %s38_s18 }
   0x8   :  { %p6768_p1 = scmp.lt.u32.totalorder %s6764_s21, %s7459_s1 }
   0xa   :  { %p6770_p2 = pnand %p6768_p1, %p6765_p0 }
   0xc   :  { %6773 = shalt.err (!%p6770_p2)
}
   0xd   :  { %s6774_s26 = scalar_lea.vmem %s39_s18, 1024  ;;  %p6779_p4 = scmp.lt.s32.totalorder %s39_s18, %s39_s18 }
   0xe   :  { %p6775_p3 = scmp.ne.s32.totalorder %s39_s18, %s6774_s26  ;;  %p6780_p5 = scmp.lt.s32.totalorder %s6774_s26, %s6774_s26 }
  0x10   :  { %p6781_p6 = por %p6780_p5, %p6779_p4 }
  0x12   :  { %p6782_p7 = pnand %p6781_p6, %p6775_p3 }
  0x14   :  { %6785 = shalt.err (!%p6782_p7)
}
  0x15   :  { %s7043_s27 = smov 256   ;;  %s7044_s28 = smov 16  }
  0x16   :  { %44 = dma.hbm_to_vmem [thread:$0]  %s7459_s1, 1024, %s39_s18, [#allocation6], %s7043_s27, %s7043_s27, %s7044_s28  }
  0x17   :  { %s7045_s12 = smov [#allocation8]   ;;  %s6786_s16 = scalar_lea.hbm %s7461_s3, 12288 }
  0x18   :  { %s60_s13 = sshll.u32 %s7045_s12, 4  ;;  %p6787_p8 = scmp.ne.s32.totalorder %s7461_s3, %s6786_s16  ;;  %s61_s13 = int_to_ptr.vmem [resolvable:$true] %s60_s13 }
  0x19   :  { %p6790_p9 = scmp.lt.u32.totalorder %s6786_s16, %s7461_s3 }
  0x1b   :  { %p6792_p10 = pnand %p6790_p9, %p6787_p8 }
  0x1d   :  { %6795 = shalt.err (!%p6792_p10)
}
  0x1e   :  { %s6796_s22 = scalar_lea.vmem %s61_s13, 12288  ;;  %p6801_p12 = scmp.lt.s32.totalorder %s61_s13, %s61_s13 }
  0x1f   :  { %p6797_p11 = scmp.ne.s32.totalorder %s61_s13, %s6796_s22  ;;  %p6802_p13 = scmp.lt.s32.totalorder %s6796_s22, %s6796_s22 }
  0x21   :  { %p6803_p0 = por %p6802_p13, %p6801_p12 }
  0x23   :  { %p6804_p1 = pnand %p6803_p0, %p6797_p11 }
  0x25   :  { %6807 = shalt.err (!%p6804_p1)
}
  0x26   :  { %s7046_s1 = smov 384   ;;  %s7047_s18 = smov 24  }
  0x27   :  { %66 = dma.hbm_to_vmem [thread:$0]  %s7461_s3, 12288, %s61_s13, [#allocation9], %s7046_s1, %s7046_s1, %s7047_s18  }
  0x28   :  { %s7048_s25 = smov [#allocation11]   ;;  %s7049_s29 = smov [#allocation14]  }
  0x29   :  { %s82_s26 = sshll.u32 %s7048_s25, 4  ;;  %s104_s30 = sshll.u32 %s7049_s29, 4  ;;  %s83_s26 = int_to_ptr.vmem [resolvable:$true] %s82_s26  ;;  %s7156_s30 = int_to_ptr.vmem [resolvable:$true] %s104_s30 }
  0x2a   :  { %s6808_s15 = scalar_lea.hbm %s7463_s5, 24576 }
  0x2b   :  { %p6809_p2 = scmp.ne.s32.totalorder %s7463_s5, %s6808_s15  ;;  %p6812_p3 = scmp.lt.u32.totalorder %s6808_s15, %s7463_s5 }
  0x2d   :  { %p6814_p4 = pnand %p6812_p3, %p6809_p2 }
  0x2f   :  { %6817 = shalt.err (!%p6814_p4)
}
  0x30   :  { %s6818_s3 = scalar_lea.vmem %s83_s26, 24576  ;;  %p6823_p6 = scmp.lt.s32.totalorder %s83_s26, %s83_s26 }
  0x31   :  { %p6819_p5 = scmp.ne.s32.totalorder %s83_s26, %s6818_s3  ;;  %p6824_p7 = scmp.lt.s32.totalorder %s6818_s3, %s6818_s3 }
  0x33   :  { %p6825_p8 = por %p6824_p7, %p6823_p6 }
  0x35   :  { %p6826_p9 = pnand %p6825_p8, %p6819_p5 }
  0x37   :  { %6829 = shalt.err (!%p6826_p9)
}
  0x38   :  { %88 = dma.hbm_to_vmem [thread:$0]  %s7463_s5, 24576, %s83_s26, [#allocation12], %s7043_s27, %s7043_s27, %s7044_s28  }
  0x39   :  { %s6830_s24 = scalar_lea.hbm %s7465_s7, 16384 }
  0x3a   :  { %p6831_p10 = scmp.ne.s32.totalorder %s7465_s7, %s6830_s24  ;;  %p6834_p11 = scmp.lt.u32.totalorder %s6830_s24, %s7465_s7 }
  0x3c   :  { %p6836_p12 = pnand %p6834_p11, %p6831_p10 }
  0x3e   :  { %6839 = shalt.err (!%p6836_p12)
}
  0x3f   :  { %s6840_s15 = scalar_lea.vmem %s7156_s30, 16384  ;;  %p6845_p0 = scmp.lt.s32.totalorder %s7156_s30, %s7156_s30 }
  0x40   :  { %p6841_p13 = scmp.ne.s32.totalorder %s7156_s30, %s6840_s15  ;;  %p6846_p1 = scmp.lt.s32.totalorder %s6840_s15, %s6840_s15 }
  0x42   :  { %p6847_p2 = por %p6846_p1, %p6845_p0 }
  0x44   :  { %p6848_p3 = pnand %p6847_p2, %p6841_p13 }
  0x46   :  { %6851 = shalt.err (!%p6848_p3)
}
  0x47   :  { %110 = dma.hbm_to_vmem [thread:$0]  %s7465_s7, 16384, %s7156_s30, [#allocation15], %s7043_s27, %s7043_s27, %s7044_s28  }
  0x48   :  { %s7050_s16 = smov [#allocation17]   ;;  %s7051_s19 = smov [#allocation2]  }
  0x49   :  { %s126_s17 = sshll.u32 %s7050_s16, 4  ;;  %s29_s20 = sshll.u32 %s7051_s19, 4  ;;  %s127_s17 = int_to_ptr.vmem [resolvable:$true] %s126_s17  ;;  %s30_s20 = int_to_ptr.vmem [resolvable:$true] %s29_s20 }
  0x4a   :  { %s6852_s21 = scalar_lea.hbm %s7467_s9, 24576 }
  0x4b   :  { %p6853_p4 = scmp.ne.s32.totalorder %s7467_s9, %s6852_s21  ;;  %p6856_p5 = scmp.lt.u32.totalorder %s6852_s21, %s7467_s9 }
  0x4d   :  { %p6858_p6 = pnand %p6856_p5, %p6853_p4 }
  0x4f   :  { %6861 = shalt.err (!%p6858_p6)
}
  0x50   :  { %s6862_s7 = scalar_lea.vmem %s127_s17, 24576  ;;  %p6867_p8 = scmp.lt.s32.totalorder %s127_s17, %s127_s17 }
  0x51   :  { %p6863_p7 = scmp.ne.s32.totalorder %s127_s17, %s6862_s7  ;;  %p6868_p9 = scmp.lt.s32.totalorder %s6862_s7, %s6862_s7 }
  0x53   :  { %p6869_p10 = por %p6868_p9, %p6867_p8 }
  0x55   :  { %p6870_p11 = pnand %p6869_p10, %p6863_p7 }
  0x57   :  { %6873 = shalt.err (!%p6870_p11)
}
  0x58   :  { %132 = dma.hbm_to_vmem [thread:$0]  %s7467_s9, 24576, %s127_s17, [#allocation18], %s7046_s1, %s7046_s1, %s7047_s18  }
  0x59   :  { %s6874_s12 = scalar_lea.hbm %s7458_s0, 128 }
  0x5a   :  { %p6875_p12 = scmp.ne.s32.totalorder %s7458_s0, %s6874_s12  ;;  %p6878_p13 = scmp.lt.u32.totalorder %s6874_s12, %s7458_s0 }
  0x5c   :  { %p6880_p0 = pnand %p6878_p13, %p6875_p12 }
  0x5e   :  { %6883 = shalt.err (!%p6880_p0)
}
  0x5f   :  { %s6884_s16 = scalar_lea.vmem %s30_s20, 128  ;;  %p6889_p2 = scmp.lt.s32.totalorder %s30_s20, %s30_s20 }
  0x60   :  { %p6885_p1 = scmp.ne.s32.totalorder %s30_s20, %s6884_s16  ;;  %p6890_p3 = scmp.lt.s32.totalorder %s6884_s16, %s6884_s16 }
  0x62   :  { %p6891_p4 = por %p6890_p3, %p6889_p2 }
  0x64   :  { %p6892_p5 = pnand %p6891_p4, %p6885_p1 }
  0x66   :  { %6895 = shalt.err (!%p6892_p5)
}
  0x67   :  { %32 = dma.hbm_to_vmem [thread:$0]  %s7458_s0, 128, %s30_s20, [#allocation3]  }
  0x68   :  { %s7052_s18 = smov [#allocation7]   ;;  %s7053_s19 = smov [#allocation10]  }
  0x69   :  { %s51_s17 = sshll.u32 %s7052_s18, 4  ;;  %s73_s3 = sshll.u32 %s7053_s19, 4  ;;  %s52_s17 = int_to_ptr.vmem [resolvable:$true] %s51_s17  ;;  %s74_s3 = int_to_ptr.vmem [resolvable:$true] %s73_s3 }
  0x6a   :  { %s6896_s22 = scalar_lea.hbm %s7460_s2, 32 }
  0x6b   :  { %p6897_p6 = scmp.ne.s32.totalorder %s7460_s2, %s6896_s22  ;;  %p6900_p7 = scmp.lt.u32.totalorder %s6896_s22, %s7460_s2 }
  0x6d   :  { %p6902_p8 = pnand %p6900_p7, %p6897_p6 }
  0x6f   :  { %6905 = shalt.err (!%p6902_p8)
}
  0x70   :  { %s6906_s0 = scalar_lea.vmem %s52_s17, 32  ;;  %p6911_p10 = scmp.lt.s32.totalorder %s52_s17, %s52_s17 }
  0x71   :  { %p6907_p9 = scmp.ne.s32.totalorder %s52_s17, %s6906_s0  ;;  %p6912_p11 = scmp.lt.s32.totalorder %s6906_s0, %s6906_s0 }
  0x73   :  { %p6913_p12 = por %p6912_p11, %p6911_p10 }
  0x75   :  { %p6914_p13 = pnand %p6913_p12, %p6907_p9 }
  0x77   :  { %6917 = shalt.err (!%p6914_p13)
}
  0x78   :  { %54 = dma.hbm_to_vmem [thread:$0]  %s7460_s2, 32, %s52_s17, [#allocation6]  }
  0x79   :  { %s6918_s29 = scalar_lea.hbm %s7462_s4, 96 }
  0x7a   :  { %p6919_p0 = scmp.ne.s32.totalorder %s7462_s4, %s6918_s29  ;;  %p6922_p1 = scmp.lt.u32.totalorder %s6918_s29, %s7462_s4 }
  0x7c   :  { %p6924_p2 = pnand %p6922_p1, %p6919_p0 }
  0x7e   :  { %6927 = shalt.err (!%p6924_p2)
}
  0x7f   :  { %s6928_s26 = scalar_lea.vmem %s74_s3, 96  ;;  %p6933_p4 = scmp.lt.s32.totalorder %s74_s3, %s74_s3 }
  0x80   :  { %p6929_p3 = scmp.ne.s32.totalorder %s74_s3, %s6928_s26  ;;  %p6934_p5 = scmp.lt.s32.totalorder %s6928_s26, %s6928_s26 }
  0x82   :  { %p6935_p6 = por %p6934_p5, %p6933_p4 }
  0x84   :  { %p6936_p7 = pnand %p6935_p6, %p6929_p3 }
  0x86   :  { %6939 = shalt.err (!%p6936_p7)
}
  0x87   :  { %76 = dma.hbm_to_vmem [thread:$0]  %s7462_s4, 96, %s74_s3, [#allocation9]  }
  0x88   :  { %s7054_s9 = smov [#allocation13]   ;;  %s7055_s18 = smov [#allocation16]  }
  0x89   :  { %s95_s1 = sshll.u32 %s7054_s9, 4  ;;  %s117_s17 = sshll.u32 %s7055_s18, 4  ;;  %s96_s1 = int_to_ptr.vmem [resolvable:$true] %s95_s1  ;;  %s118_s17 = int_to_ptr.vmem [resolvable:$true] %s117_s17 }
  0x8a   :  { %s6940_s21 = scalar_lea.hbm %s7464_s6, 64 }
  0x8b   :  { %p6941_p8 = scmp.ne.s32.totalorder %s7464_s6, %s6940_s21  ;;  %p6944_p9 = scmp.lt.u32.totalorder %s6940_s21, %s7464_s6 }
  0x8d   :  { %p6946_p10 = pnand %p6944_p9, %p6941_p8 }
  0x8f   :  { %6949 = shalt.err (!%p6946_p10)
}
  0x90   :  { %s6950_s4 = scalar_lea.vmem %s96_s1, 64  ;;  %p6955_p12 = scmp.lt.s32.totalorder %s96_s1, %s96_s1 }
  0x91   :  { %p6951_p11 = scmp.ne.s32.totalorder %s96_s1, %s6950_s4  ;;  %p6956_p13 = scmp.lt.s32.totalorder %s6950_s4, %s6950_s4 }
  0x93   :  { %p6957_p0 = por %p6956_p13, %p6955_p12 }
  0x95   :  { %p6958_p1 = pnand %p6957_p0, %p6951_p11 }
  0x97   :  { %6961 = shalt.err (!%p6958_p1)
}
  0x98   :  { %98 = dma.hbm_to_vmem [thread:$0]  %s7464_s6, 64, %s96_s1, [#allocation12]  }
  0x99   :  { %s6962_s27 = scalar_lea.hbm %s7466_s8, 64 }
  0x9a   :  { %p6963_p2 = scmp.ne.s32.totalorder %s7466_s8, %s6962_s27  ;;  %p6966_p3 = scmp.lt.u32.totalorder %s6962_s27, %s7466_s8 }
  0x9c   :  { %p6968_p4 = pnand %p6966_p3, %p6963_p2 }
  0x9e   :  { %6971 = shalt.err (!%p6968_p4)
}
  0x9f   :  { %s6972_s14 = scalar_lea.vmem %s118_s17, 64  ;;  %p6977_p6 = scmp.lt.s32.totalorder %s118_s17, %s118_s17 }
  0xa0   :  { %p6973_p5 = scmp.ne.s32.totalorder %s118_s17, %s6972_s14  ;;  %p6978_p7 = scmp.lt.s32.totalorder %s6972_s14, %s6972_s14 }
  0xa2   :  { %p6979_p8 = por %p6978_p7, %p6977_p6 }
  0xa4   :  { %p6980_p9 = pnand %p6979_p8, %p6973_p5 }
  0xa6   :  { %6983 = shalt.err (!%p6980_p9)
}
  0xa7   :  { %120 = dma.hbm_to_vmem [thread:$0]  %s7466_s8, 64, %s118_s17, [#allocation15]  }
  0xa8   :  { %s7056_s5 = smov [#allocation19]   ;;  %s6984_s9 = scalar_lea.hbm %s7468_s10, 96 }
  0xa9   :  { %s139_s26 = sshll.u32 %s7056_s5, 4  ;;  %p6985_p10 = scmp.ne.s32.totalorder %s7468_s10, %s6984_s9  ;;  %s140_s26 = int_to_ptr.vmem [resolvable:$true] %s139_s26 }
  0xaa   :  { %p6988_p11 = scmp.lt.u32.totalorder %s6984_s9, %s7468_s10 }
  0xac   :  { %p6990_p12 = pnand %p6988_p11, %p6985_p10 }
  0xae   :  { %6993 = shalt.err (!%p6990_p12)
}
  0xaf   :  { %s6994_s21 = scalar_lea.vmem %s140_s26, 96  ;;  %p6999_p0 = scmp.lt.s32.totalorder %s140_s26, %s140_s26 }
  0xb0   :  { %p6995_p13 = scmp.ne.s32.totalorder %s140_s26, %s6994_s21  ;;  %p7000_p1 = scmp.lt.s32.totalorder %s6994_s21, %s6994_s21 }
  0xb2   :  { %p7001_p2 = por %p7000_p1, %p6999_p0 }
  0xb4   :  { %p7002_p3 = pnand %p7001_p2, %p6995_p13 }
  0xb6   :  { %7005 = shalt.err (!%p7002_p3)
}
  0xb7   :  { %142 = dma.hbm_to_vmem [thread:$0]  %s7468_s10, 96, %s140_s26, [#allocation18]  }
  0xb8   :  { %7028 = dma.done.wait [#allocation3], 128  }
  0xb9   :  { %7029 = vsyncadd [#allocation3], 4294967168 }
  0xba   :  { %7030 = dma.done.wait [#allocation6], 1056  }
  0xbb   :  { %7031 = vsyncadd [#allocation6], 4294966240 }
  0xbc   :  { %7032 = dma.done.wait [#allocation9], 12384  }
  0xbd   :  { %7033 = vsyncadd [#allocation9], 4294954912 }
  0xbe   :  { %7034 = dma.done.wait [#allocation12], 24640  }
  0xbf   :  { %7035 = vsyncadd [#allocation12], 4294942656 }
  0xc0   :  { %7036 = dma.done.wait [#allocation15], 16448  }
  0xc1   :  { %7037 = vsyncadd [#allocation15], 4294950848 }
  0xc2   :  { %7038 = dma.done.wait [#allocation18], 24672  }
  0xc3   :  { %7039 = vsyncadd [#allocation18], 4294942624  ;;  %v7057_v0 = vmov 0.0   ;;  %v180_v1 = vld [vmem:[#allocation5 + $0x8] sm:$0xff]  ;;  %v182_v2 = vld [vmem:[#allocation5 + $0x18] sm:$0xff]  ;;  %vm187_vm0 = vcmask 261120  }
  0xc4   :  { %255 = vmatprep.mubr.f32.mxu1 %v7057_v0  ;;  %v179_v3 = vld [vmem:[#allocation5] sm:$0xff]  ;;  %v5738_v4 = vpack.c.bf16 %v182_v2, %v180_v1  ;;  %v181_v5 = vld [vmem:[#allocation5 + $0x10] sm:$0xff]  ;;  %v184_v6 = vld [vmem:[#allocation5 + $0x28] sm:$0xff]  ;;  %s7065_s10 = smov [#allocation20]  }
  0xc5   :  { %v186_v7 = vld [vmem:[#allocation5 + $0x38] sm:$0xff]  ;;  %v5740_v8 = vpack.c.bf16 %v181_v5, %v179_v3  ;;  %v183_v10 = vld [vmem:[#allocation5 + $0x20] sm:$0xff]  ;;  %v185_v11 = vld [vmem:[#allocation5 + $0x30] sm:$0xff]  ;;  %s5101_s22 = sshll.u32 %s7065_s10, 4  ;;  %s5102_s22 = int_to_ptr.vmem [resolvable:$true] %s5101_s22 }
  0xc6   :  { %v5742_v9 = vpack.c.bf16 %v186_v7, %v184_v6  ;;  %5739 = vmatprep.subr.bf16.mxu1 %v5738_v4  ;;  %v5744_v12 = vpack.c.bf16 %v185_v11, %v183_v10  ;;  %v178_v13 = vld [vmem:[#allocation2] sm:$0xff]  ;;  %v5831_v16 = vld [vmem:[#allocation8 + $0xc] ss:$24 sps:$4 sm:$0xff]   ;;  %v5833_v17 = vld [vmem:[#allocation8 + $0x8] ss:$24 sps:$4 sm:$0xff]   ;;  %s7006_s23 = scalar_lea.vmem %s5102_s22, 384  ;;  %p7011_p5 = scmp.lt.s32.totalorder %s5102_s22, %s5102_s22 }
  0xc7   :  { %5741 = vmatpush1.bf16.msra.mxu1 %v5740_v8  ;;  %v5830_v14 = vld [vmem:[#allocation8 + $0x4] ss:$24 sps:$4 sm:$0xff]   ;;  %v5828_v15 = vld [vmem:[#allocation8] ss:$24 sps:$4 sm:$0xff]   ;;  %1136 = vmatprep.subr.bf16.mxu0 %v5831_v16  ;;  %v5836_v18 = vld [vmem:[#allocation8 + $0x34] ss:$24 sps:$4 sm:$0xff]   ;;  %p7007_p4 = scmp.ne.s32.totalorder %s5102_s22, %s7006_s23  ;;  %p7012_p6 = scmp.lt.s32.totalorder %s7006_s23, %s7006_s23 }
  0xc8   :  { %5743 = vmatprep.subr.bf16.mxu1 %v5742_v9  ;;  %1137 = vmatpush1.bf16.msra.mxu0 %v5833_v17  ;;  %v5834_v19 = vld [vmem:[#allocation8 + $0x30] ss:$24 sps:$4 sm:$0xff]   ;;  %v5837_v20 = vld [vmem:[#allocation8 + $0x3c] ss:$24 sps:$4 sm:$0xff]   ;;  %v5840_v23 = vld [vmem:[#allocation8 + $0x60] ss:$24 sps:$4 sm:$0xff]  }
  0xc9   :  { %v5839_v21 = vld [vmem:[#allocation8 + $0x38] ss:$24 sps:$4 sm:$0xff]   ;;  %1138 = vmatprep.subr.bf16.mxu0 %v5837_v20  ;;  %v5842_v22 = vld [vmem:[#allocation8 + $0x64] ss:$24 sps:$4 sm:$0xff]   ;;  %v5845_v25 = vld [vmem:[#allocation8 + $0x68] ss:$24 sps:$4 sm:$0xff]   ;;  %p7013_p7 = por %p7012_p6, %p7011_p5 }
  0xca   :  { %v5843_v24 = vld [vmem:[#allocation8 + $0x6c] ss:$24 sps:$4 sm:$0xff]   ;;  %v5846_v27 = vld [vmem:[#allocation8 + $0x90] ss:$24 sps:$4 sm:$0xff]   ;;  %v5849_v28 = vld [vmem:[#allocation8 + $0x9c] ss:$24 sps:$4 sm:$0xff]  }
  0xcb   :  { %5745 = vmatpush1.bf16.msra.mxu1 %v5744_v12  ;;  %v5848_v26 = vld [vmem:[#allocation8 + $0x94] ss:$24 sps:$4 sm:$0xff]   ;;  %v5851_v29 = vld [vmem:[#allocation8 + $0x98] ss:$24 sps:$4 sm:$0xff]   ;;  %v5854_v30 = vld [vmem:[#allocation8 + $0xc4] ss:$24 sps:$4 sm:$0xff]   ;;  %p7014_p8 = pnand %p7013_p7, %p7007_p4 }
  0xcc   :  { %1095 = vmatprep.subr.bf16.mxu1 %v5830_v14  ;;  %1139 = vmatpush1.bf16.msra.mxu0 %v5839_v21  ;;  %v5852_v31 = vld [vmem:[#allocation8 + $0xc0] ss:$24 sps:$4 sm:$0xff]   ;;  %v5855_v32 = vld [vmem:[#allocation8 + $0xcc] ss:$24 sps:$4 sm:$0xff]   ;;  %v5858_v35 = vld [vmem:[#allocation8 + $0xf0] ss:$24 sps:$4 sm:$0xff]  }
  0xcd   :  { %1140 = vmatprep.subr.bf16.mxu0 %v5843_v24  ;;  %v5857_v33 = vld [vmem:[#allocation8 + $0xc8] ss:$24 sps:$4 sm:$0xff]   ;;  %v5860_v34 = vld [vmem:[#allocation8 + $0xf4] ss:$24 sps:$4 sm:$0xff]   ;;  %v5863_v37 = vld [vmem:[#allocation8 + $0xf8] ss:$24 sps:$4 sm:$0xff]  }
  0xce   :  { %5115 = vmatmul.mubr.msk.f32.vlgmr.msra.gmra.mrb[0].mxu1 %vm187_vm0, %v178_v13  ;;  %v5861_v36 = vld [vmem:[#allocation8 + $0xfc] ss:$24 sps:$4 sm:$0xff]   ;;  %v5864_v39 = vld [vmem:[#allocation8 + $0x120] ss:$24 sps:$4 sm:$0xff]   ;;  %v5867_v40 = vld [vmem:[#allocation8 + $0x12c] ss:$24 sps:$4 sm:$0xff]  }
  0xcf   :  { %1096 = vmatpush1.bf16.msra.mxu1 %v5828_v15  ;;  %v5866_v38 = vld [vmem:[#allocation8 + $0x124] ss:$24 sps:$4 sm:$0xff]   ;;  %v5869_v41 = vld [vmem:[#allocation8 + $0x128] ss:$24 sps:$4 sm:$0xff]   ;;  %v5872_v42 = vld [vmem:[#allocation8 + $0x154] ss:$24 sps:$4 sm:$0xff]  }
  0xd0   :  { %1097 = vmatprep.subr.bf16.mxu1 %v5836_v18  ;;  %1141 = vmatpush1.bf16.msra.mxu0 %v5845_v25  ;;  %v5870_v43 = vld [vmem:[#allocation8 + $0x150] ss:$24 sps:$4 sm:$0xff]   ;;  %v5873_v44 = vld [vmem:[#allocation8 + $0x15c] ss:$24 sps:$4 sm:$0xff]   ;;  %v5876_v47 = vld [vmem:[#allocation8 + $0x180] ss:$24 sps:$4 sm:$0xff]  }
  0xd1   :  { %1142 = vmatprep.subr.bf16.mxu0 %v5849_v28  ;;  %v5875_v45 = vld [vmem:[#allocation8 + $0x158] ss:$24 sps:$4 sm:$0xff]   ;;  %v5878_v46 = vld [vmem:[#allocation8 + $0x184] ss:$24 sps:$4 sm:$0xff]   ;;  %v5881_v49 = vld [vmem:[#allocation8 + $0x188] ss:$24 sps:$4 sm:$0xff]  }
  0xd2   :  { %v5879_v48 = vld [vmem:[#allocation8 + $0x18c] ss:$24 sps:$4 sm:$0xff]   ;;  %v5882_v51 = vld [vmem:[#allocation8 + $0x1b0] ss:$24 sps:$4 sm:$0xff]   ;;  %v5885_v52 = vld [vmem:[#allocation8 + $0x1bc] ss:$24 sps:$4 sm:$0xff]  }
  0xd3   :  { %1098 = vmatpush1.bf16.msra.mxu1 %v5834_v19  ;;  %v5884_v50 = vld [vmem:[#allocation8 + $0x1b4] ss:$24 sps:$4 sm:$0xff]   ;;  %v5887_v53 = vld [vmem:[#allocation8 + $0x1b8] ss:$24 sps:$4 sm:$0xff]   ;;  %v5890_v54 = vld [vmem:[#allocation8 + $0x1e4] ss:$24 sps:$4 sm:$0xff]  }
  0xd4   :  { %1099 = vmatprep.subr.bf16.mxu1 %v5842_v22  ;;  %1143 = vmatpush1.bf16.msra.mxu0 %v5851_v29  ;;  %v5888_v55 = vld [vmem:[#allocation8 + $0x1e0] ss:$24 sps:$4 sm:$0xff]   ;;  %v5891_v56 = vld [vmem:[#allocation8 + $0x1ec] ss:$24 sps:$4 sm:$0xff]   ;;  %v5894_v58 = vld [vmem:[#allocation8 + $0x210] ss:$24 sps:$4 sm:$0xff]  }
  0xd5   :  { %1144 = vmatprep.subr.bf16.mxu0 %v5855_v32  ;;  %v5893_v57 = vld [vmem:[#allocation8 + $0x1e8] ss:$24 sps:$4 sm:$0xff]   ;;  %v5896_v59 = vld [vmem:[#allocation8 + $0x214] ss:$24 sps:$4 sm:$0xff]   ;;  %v5899_v61 = vld [vmem:[#allocation8 + $0x218] ss:$24 sps:$4 sm:$0xff]  }
  0xd6   :  { %v5897_v60 = vld [vmem:[#allocation8 + $0x21c] ss:$24 sps:$4 sm:$0xff]   ;;  %v5903_v63 = vld [vmem:[#allocation8 + $0x24c] ss:$24 sps:$4 sm:$0xff]   ;;  %v5900_v0 = vld [vmem:[#allocation8 + $0x240] ss:$24 sps:$4 sm:$0xff]  }
  0xd7   :  { %1100 = vmatpush1.bf16.msra.mxu1 %v5840_v23  ;;  %v5902_v62 = vld [vmem:[#allocation8 + $0x244] ss:$24 sps:$4 sm:$0xff]   ;;  %v5905_v1 = vld [vmem:[#allocation8 + $0x248] ss:$24 sps:$4 sm:$0xff]   ;;  %v5908_v2 = vld [vmem:[#allocation8 + $0x274] ss:$24 sps:$4 sm:$0xff]  }
  0xd8   :  { %1101 = vmatprep.subr.bf16.mxu1 %v5848_v26  ;;  %1145 = vmatpush1.bf16.msra.mxu0 %v5857_v33  ;;  %v5906_v3 = vld [vmem:[#allocation8 + $0x270] ss:$24 sps:$4 sm:$0xff]   ;;  %v5909_v4 = vld [vmem:[#allocation8 + $0x27c] ss:$24 sps:$4 sm:$0xff]   ;;  %v5915_v7 = vld [vmem:[#allocation8 + $0x2ac] ss:$24 sps:$4 sm:$0xff]  }
  0xd9   :  { %1146 = vmatprep.subr.bf16.mxu0 %v5861_v36  ;;  %v5911_v5 = vld [vmem:[#allocation8 + $0x278] ss:$24 sps:$4 sm:$0xff]   ;;  %v5914_v6 = vld [vmem:[#allocation8 + $0x2a4] ss:$24 sps:$4 sm:$0xff]   ;;  %v5917_v9 = vld [vmem:[#allocation8 + $0x2a8] ss:$24 sps:$4 sm:$0xff]  }
  0xda   :  { %v5912_v8 = vld [vmem:[#allocation8 + $0x2a0] ss:$24 sps:$4 sm:$0xff]   ;;  %v5920_v10 = vld [vmem:[#allocation8 + $0x2d4] ss:$24 sps:$4 sm:$0xff]   ;;  %v5918_v12 = vld [vmem:[#allocation8 + $0x2d0] ss:$24 sps:$4 sm:$0xff]  }
  0xdb   :  { %1102 = vmatpush1.bf16.msra.mxu1 %v5846_v27  ;;  %v5921_v11 = vld [vmem:[#allocation8 + $0x2dc] ss:$24 sps:$4 sm:$0xff]   ;;  %v5923_v13 = vld [vmem:[#allocation8 + $0x2d8] ss:$24 sps:$4 sm:$0xff]  }
  0xdc   :  { %1103 = vmatprep.subr.bf16.mxu1 %v5854_v30  ;;  %1147 = vmatpush1.bf16.msra.mxu0 %v5863_v37  ;;  %v5926_v14 = vld [vmem:[#allocation8 + $0x14] ss:$24 sps:$4 sm:$0xff]   ;;  %v7058_v37 = vmov 683565275  }
  0xdd   :  { %1148 = vmatprep.subr.bf16.mxu0 %v5867_v40 }
  0xdf   :  { %1104 = vmatpush1.bf16.msra.mxu1 %v5852_v31 }
  0xe0   :  { %1105 = vmatprep.subr.bf16.mxu1 %v5860_v34  ;;  %1149 = vmatpush1.bf16.msra.mxu0 %v5869_v41  ;;  %v7059_v41 = vmov 2475754826  }
  0xe1   :  { %1150 = vmatprep.subr.bf16.mxu0 %v5873_v44 }
  0xe3   :  { %1106 = vmatpush1.bf16.msra.mxu1 %v5858_v35 }
  0xe4   :  { %1107 = vmatprep.subr.bf16.mxu1 %v5866_v38  ;;  %1151 = vmatpush1.bf16.msra.mxu0 %v5875_v45  ;;  %v7061_v45 = vmov 2102212464  }
  0xe5   :  { %1152 = vmatprep.subr.bf16.mxu0 %v5879_v48 }
  0xe7   :  { %1108 = vmatpush1.bf16.msra.mxu1 %v5864_v39 }
  0xe8   :  { %1109 = vmatprep.subr.bf16.mxu1 %v5872_v42  ;;  %1153 = vmatpush1.bf16.msra.mxu0 %v5881_v49 }
  0xe9   :  { %1154 = vmatprep.subr.bf16.mxu0 %v5885_v52 }
  0xeb   :  { %1110 = vmatpush1.bf16.msra.mxu1 %v5870_v43  ;;  %v7060_v43 = vmov 2131351028  }
  0xec   :  { %1111 = vmatprep.subr.bf16.mxu1 %v5878_v46  ;;  %1155 = vmatpush1.bf16.msra.mxu0 %v5887_v53 }
  0xed   :  { %1156 = vmatprep.subr.bf16.mxu0 %v5891_v56 }
  0xef   :  { %1112 = vmatpush1.bf16.msra.mxu1 %v5876_v47  ;;  %v7062_v47 = vmov 920167782  }
  0xf0   :  { %1113 = vmatprep.subr.bf16.mxu1 %v5884_v50  ;;  %1157 = vmatpush1.bf16.msra.mxu0 %v5893_v57 }
  0xf1   :  { %1158 = vmatprep.subr.bf16.mxu0 %v5897_v60 }
  0xf3   :  { %1114 = vmatpush1.bf16.msra.mxu1 %v5882_v51 }
  0xf4   :  { %1115 = vmatprep.subr.bf16.mxu1 %v5890_v54  ;;  %1159 = vmatpush1.bf16.msra.mxu0 %v5899_v61  ;;  %v7063_v54 = vmov 1326507024  }
  0xf5   :  { %1160 = vmatprep.subr.bf16.mxu0 %v5903_v63 }
  0xf7   :  { %1116 = vmatpush1.bf16.msra.mxu1 %v5888_v55 }
  0xf8   :  { %1117 = vmatprep.subr.bf16.mxu1 %v5896_v59  ;;  %1161 = vmatpush1.bf16.msra.mxu0 %v5905_v1 }
  0xf9   :  { %1162 = vmatprep.subr.bf16.mxu0 %v5909_v4 }
  0xfb   :  { %1118 = vmatpush1.bf16.msra.mxu1 %v5894_v58 }
  0xfc   :  { %1119 = vmatprep.subr.bf16.mxu1 %v5902_v62  ;;  %1163 = vmatpush1.bf16.msra.mxu0 %v5911_v5 }
  0xfd   :  { %1164 = vmatprep.subr.bf16.mxu0 %v5915_v7 }
  0xff   :  { %1120 = vmatpush1.bf16.msra.mxu1 %v5900_v0 }
 0x100   :  { %1121 = vmatprep.subr.bf16.mxu1 %v5908_v2  ;;  %1165 = vmatpush1.bf16.msra.mxu0 %v5917_v9 }
 0x101   :  { %1166 = vmatprep.subr.bf16.mxu0 %v5921_v11 }
 0x103   :  { %1122 = vmatpush1.bf16.msra.mxu1 %v5906_v3 }
 0x104   :  { %1123 = vmatprep.subr.bf16.mxu1 %v5914_v6  ;;  %1167 = vmatpush1.bf16.msra.mxu0 %v5923_v13 }
 0x107   :  { %1124 = vmatpush1.bf16.msra.mxu1 %v5912_v8 }
 0x108   :  { %1125 = vmatprep.subr.bf16.mxu1 %v5920_v10 }
 0x10b   :  { %1126 = vmatpush1.bf16.msra.mxu1 %v5918_v12 }
 0x10c   :  { %1177 = vmatprep.subr.bf16.mxu1 %v5926_v14 }
 0x1a1   :  { %v7280_v15 = vpop.f32.mrb[0].mxu1 }
 0x1a2   :  { %v264_v16 = vand.u32 2147483647, %v7280_v15  ;;  %v267_v17 = vand.u32 2139095040, %v7280_v15  ;;  %v7284_v18 = vpop.f32.mrb[1].mxu1  ;;  %vm266_vm15 = vcmp.lt.s32.totalorder %v7280_v15, 0 }
 0x1a3   :  { %v371_v19 = vand.u32 2139095040, %v7284_v18  ;;  %v368_v21 = vand.u32 2147483647, %v7284_v18 }
 0x1a4   :  { %v268_v20 = vshrl.u32 %v267_v17, 23  ;;  %v271_v22 = vand.u32 8388607, %v264_v16  ;;  %vm265_vm0 = vcmp.le.f32.partialorder %v264_v16, 0.7853982 }
 0x1a5   :  { %v372_v23 = vshrl.u32 %v371_v19, 23  ;;  %v7292_v27 = vand.u32 8388607, %v368_v21 }
 0x1a6   :  { %v5116_v24 = vadd.s32 4294967169, %v268_v20  ;;  %v272_v28 = vor.u32 8388608, %v271_v22 }
 0x1a7   :  { %v5120_v25 = vadd.s32 4294967169, %v372_v23  ;;  %v376_v35 = vor.u32 8388608, %v7292_v27 }
 0x1a8   :  { %v274_v26 = vadd.s32 1, %v5116_v24  ;;  %v7294_v34 = vshll.u32 %v272_v28, 8 }
 0x1a9   :  { %v378_v29 = vadd.s32 1, %v5120_v25 }
 0x1aa   :  { %vm275_vm1 = vcmp.gt.s32.totalorder %v274_v26, 0 }
 0x1ab   :  { %v276_v30 = vsel %vm275_vm1, %v274_v26, 0  ;;  %vm379_vm2 = vcmp.gt.s32.totalorder %v378_v29, 0  ;;  %vm370_vm1 = vcmp.lt.s32.totalorder %v7284_v18, 0 }
 0x1ac   :  { %v277_v31 = vshrl.u32 %v276_v30, 5  ;;  %v278_v32 = vand.u32 31, %v276_v30  ;;  %v380_v33 = vsel %vm379_vm2, %v378_v29, 0  ;;  %v416_v29 = vshll.u32 %v376_v35, 8 }
 0x1ad   :  { %v7297_v39 = vshrl.u32 %v380_v33, 5  ;;  %v382_v40 = vand.u32 31, %v380_v33  ;;  %vm369_vm2 = vcmp.le.f32.partialorder %v368_v21, 0.7853982  ;;  %v7064_v21 = vmov 0  }
 0x1ae   :  { %v279_v36 = vsub.s32 32, %v278_v32  ;;  %v281_v38 = vshll.u32 %v7058_v37, %v278_v32  ;;  %v284_v42 = vshll.u32 %v7059_v41, %v278_v32  ;;  %v287_v44 = vshll.u32 %v7060_v43, %v278_v32 }
 0x1af   :  { %v290_v46 = vshll.u32 %v7061_v45, %v278_v32  ;;  %v293_v48 = vshll.u32 %v7062_v47, %v278_v32  ;;  %vm296_vm3 = vcmp.lt.s32.totalorder %v277_v31, 1  ;;  %vm297_vm4 = vcmp.lt.s32.totalorder %v277_v31, 2 }
 0x1b0   :  { %v282_v49 = vshrl.u32 %v7059_v41, %v279_v36  ;;  %v285_v50 = vshrl.u32 %v7060_v43, %v279_v36  ;;  %v288_v51 = vshrl.u32 %v7061_v45, %v279_v36  ;;  %v280_v52 = vshrl.u32 %v7058_v37, %v279_v36 }
 0x1b1   :  { %v291_v53 = vshrl.u32 %v7062_v47, %v279_v36  ;;  %v294_v55 = vshrl.u32 %v7063_v54, %v279_v36  ;;  %v383_v59 = vsub.s32 32, %v382_v40  ;;  %vm298_vm5 = vcmp.lt.s32.totalorder %v277_v31, 3 }
 0x1b2   :  { %v283_v56 = vor.u32 %v282_v49, %v281_v38  ;;  %v286_v57 = vor.u32 %v285_v50, %v284_v42  ;;  %v289_v58 = vor.u32 %v288_v51, %v287_v44  ;;  %vm299_vm6 = vcmp.lt.s32.totalorder %v277_v31, 4 }
 0x1b3   :  { %v292_v60 = vor.u32 %v291_v53, %v290_v46  ;;  %v295_v61 = vor.u32 %v294_v55, %v293_v48  ;;  %v385_v5 = vshll.u32 %v7058_v37, %v382_v40  ;;  %v386_v8 = vshrl.u32 %v7059_v41, %v383_v59 }
 0x1b4   :  { %v300_v62 = vsel %vm296_vm3, %v280_v52, %v283_v56  ;;  %v301_v63 = vsel %vm299_vm6, %v289_v58, 2102212464  ;;  %v304_v0 = vsel %vm296_vm3, %v283_v56, %v286_v57  ;;  %v308_v1 = vsel %vm296_vm3, %v286_v57, %v289_v58 }
 0x1b5   :  { %v302_v2 = vsel %vm298_vm5, %v286_v57, %v301_v63  ;;  %v305_v3 = vsel %vm299_vm6, %v292_v60, 920167782  ;;  %v309_v4 = vsel %vm299_vm6, %v295_v61, 1326507024  ;;  %v388_v9 = vshll.u32 %v7059_v41, %v382_v40 }
 0x1b6   :  { %v306_v6 = vsel %vm298_vm5, %v289_v58, %v305_v3  ;;  %v310_v7 = vsel %vm298_vm5, %v292_v60, %v309_v4  ;;  %v303_v10 = vsel %vm297_vm4, %v300_v62, %v302_v2  ;;  %v389_v13 = vshrl.u32 %v7060_v43, %v383_v59 }
 0x1b7   :  { %v307_v11 = vsel %vm297_vm4, %v304_v0, %v306_v6  ;;  %v311_v12 = vsel %vm297_vm4, %v308_v1, %v310_v7  ;;  %v387_v22 = vor.u32 %v386_v8, %v385_v5  ;;  %v391_v24 = vshll.u32 %v7060_v43, %v382_v40 }
 0x1b8   :  { %v7306_v14 = vmul.u32.u64.low %v7294_v34, %v311_v12  ;;  %v7307_v17 = vmul.u32.u64.high %v7294_v34, %v311_v12, %v7306_v14  ;;  %v7310_v19 = vmul.u32.u64.low %v7294_v34, %v307_v11  ;;  %v7311_v20 = vmul.u32.u64.high %v7294_v34, %v307_v11, %v7310_v19 }
 0x1b9   :  { %v390_v23 = vor.u32 %v389_v13, %v388_v9  ;;  %v392_v25 = vshrl.u32 %v7061_v45, %v383_v59  ;;  %v394_v26 = vshll.u32 %v7061_v45, %v382_v40  ;;  %v395_v27 = vshrl.u32 %v7062_v47, %v383_v59 }
 0x1ba   :  { %v398_v28 = vshrl.u32 %v7063_v54, %v383_v59  ;;  %v319_v30 = vmul.u32 %v7294_v34, %v303_v10  ;;  %v384_v31 = vshrl.u32 %v7058_v37, %v383_v59  ;;  %v397_v33 = vshll.u32 %v7062_v47, %v382_v40  ;;  %v5974_v54 = vld [vmem:[#allocation11 + $0x4] ss:$16 sps:$4 sm:$0xff]  }
 0x1bb   :  { %v393_v32 = vor.u32 %v392_v25, %v391_v24  ;;  %vm321_vm7 = vc.u32 %v7307_v17, %v7310_v19  ;;  %v322_v36 = vadd.s32 1, %v7311_v20  ;;  %v396_v38 = vor.u32 %v395_v27, %v394_v26  ;;  %2398 = vmatprep.subr.bf16.mxu0 %v5974_v54 }
 0x1bc   :  { %vm400_vm8 = vcmp.lt.s32.totalorder %v7297_v39, 1  ;;  %v399_v41 = vor.u32 %v398_v28, %v397_v33  ;;  %vm402_vm9 = vcmp.lt.s32.totalorder %v7297_v39, 3  ;;  %vm403_vm10 = vcmp.lt.s32.totalorder %v7297_v39, 4 }
 0x1bd   :  { %v408_v42 = vsel %vm400_vm8, %v387_v22, %v390_v23  ;;  %v323_v35 = vsel %vm321_vm7, %v322_v36, %v7311_v20  ;;  %v405_v34 = vsel %vm403_vm10, %v393_v32, 2102212464  ;;  %v409_v37 = vsel %vm403_vm10, %v396_v38, 920167782 }
 0x1be   :  { %v412_v43 = vsel %vm400_vm8, %v390_v23, %v393_v32  ;;  %v324_v40 = vadd.s32 %v323_v35, %v319_v30  ;;  %vm401_vm11 = vcmp.lt.s32.totalorder %v7297_v39, 2  ;;  %v410_v44 = vsel %vm402_vm9, %v393_v32, %v409_v37 }
 0x1bf   :  { %v413_v45 = vsel %vm403_vm10, %v399_v41, 1326507024  ;;  %v404_v46 = vsel %vm400_vm8, %v384_v31, %v387_v22  ;;  %v406_v47 = vsel %vm402_vm9, %v390_v23, %v405_v34  ;;  %v411_v48 = vsel %vm401_vm11, %v408_v42, %v410_v44 }
 0x1c0   :  { %v414_v49 = vsel %vm402_vm9, %v396_v38, %v413_v45  ;;  %v325_v50 = vadd.s32 536870912, %v324_v40  ;;  %v7323_v52 = vmul.u32.u64.low %v416_v29, %v411_v48  ;;  %v7324_v53 = vmul.u32.u64.high %v416_v29, %v411_v48, %v7323_v52 }
 0x1c1   :  { %v415_v51 = vsel %vm401_vm11, %v412_v43, %v414_v49  ;;  %v407_v58 = vsel %vm401_vm11, %v404_v46, %v406_v47  ;;  %v320_v10 = vadd.s32 %v7310_v19, %v7307_v17  ;;  %vm356_vm8 = vweird.f32 %v7280_v15 }
 0x1c2   :  { %v7326_v55 = vmul.u32.u64.low %v416_v29, %v415_v51  ;;  %v7327_v56 = vmul.u32.u64.high %v416_v29, %v415_v51, %v7326_v55  ;;  %v326_v57 = vshrl.u32 %v325_v50, 30  ;;  %v426_v39 = vadd.s32 1, %v7324_v53 }
 0x1c3   :  { %v423_v60 = vmul.u32 %v416_v29, %v407_v58  ;;  %v473_v51 = vlaneseq  ;;  %v262_v55 = vld [vmem:[#allocation7] sm:$0x3] }
 0x1c4   :  { %v327_v59 = vshll.u32 %v326_v57, 30  ;;  %vm425_vm12 = vc.u32 %v7327_v56, %v7323_v52  ;;  %v424_v31 = vadd.s32 %v7323_v52, %v7327_v56  ;;  %v350_v42 = vsub.s32 4, %v326_v57 }
 0x1c5   :  { %v427_v62 = vsel %vm425_vm12, %v426_v39, %v7324_v53  ;;  %v7343_v58 = vshrl.u32 %v473_v51, 7  ;;  %vm263_vm3 = vcmp.gt.f32.partialorder %v262_v55, 0.5  ;;  %v6016_v51 = vld [vmem:[#allocation11 + $0xe4] ss:$16 sps:$4 sm:$0xff]  }
 0x1c6   :  { %v328_v61 = vsub.s32 %v324_v40, %v327_v59  ;;  %v428_v63 = vadd.s32 %v427_v62, %v423_v60  ;;  %v351_v44 = vsel %vm266_vm15, %v350_v42, %v326_v57  ;;  %v5990_v42 = vld [vmem:[#allocation11 + $0x60] ss:$16 sps:$4 sm:$0xff]  }
 0x1c7   :  { %v353_v49 = vsel %vm265_vm0, 0, %v351_v44  ;;  %v5939_v44 = vld [vmem:[#allocation8 + $0x100] ss:$24 sps:$4 sm:$0xff]   ;;  %v5948_v55 = vld [vmem:[#allocation8 + $0x190] ss:$24 sps:$4 sm:$0xff]  }
 0x1c8   :  { %v330_v0 = vsub.s32 0, %v328_v61  ;;  %v429_v1 = vadd.s32 536870912, %v428_v63  ;;  %v357_v52 = vadd.s32 3, %v353_v49  ;;  %v5947_v49 = vld [vmem:[#allocation8 + $0x164] ss:$24 sps:$4 sm:$0xff]  }
 0x1ca   :  { %v5117_v2 = vmin.u32 %v330_v0, %v328_v61  ;;  %v430_v3 = vshrl.u32 %v429_v1, 30  ;;  %v358_v39 = vand.u32 3, %v357_v52  ;;  %v472_v0 = vsel %vm263_vm3, 1, %v7064_v21  ;;  %v5945_v52 = vld [vmem:[#allocation8 + $0x160] ss:$24 sps:$4 sm:$0xff]  }
 0x1cb   :  { %v7349_v1 = vsub.s32 1, %v7343_v58  ;;  %v5954_v21 = vld [vmem:[#allocation8 + $0x1f0] ss:$24 sps:$4 sm:$0xff]  }
 0x1cc   :  { %v332_v4 = vclz %v5117_v2  ;;  %v431_v5 = vshll.u32 %v430_v3, 30  ;;  %v454_v48 = vsub.s32 4, %v430_v3  ;;  %vm360_vm4 = vcmp.eq.s32.totalorder %v358_v39, 0 }
 0x1cd   :  { %vm363_vm5 = vcmp.eq.s32.totalorder %v358_v39, 2  ;;  %vm359_vm6 = vcmp.lt.s32.totalorder %v358_v39, 2  ;;  %v5951_v39 = vld [vmem:[#allocation8 + $0x1c0] ss:$24 sps:$4 sm:$0xff]  }
 0x1ce   :  { %v5118_v6 = vadd.s32 4294967294, %v332_v4  ;;  %v432_v7 = vsub.s32 %v428_v63, %v431_v5  ;;  %v455_v53 = vsel %vm370_vm1, %v454_v48, %v430_v3  ;;  %v7346_v63 = vsub.s32 0, %v7343_v58  ;;  %v5942_v48 = vld [vmem:[#allocation8 + $0x130] ss:$24 sps:$4 sm:$0xff]  }
 0x1cf   :  { %v457_v57 = vsel %vm369_vm2, 0, %v455_v53  ;;  %v6014_v53 = vld [vmem:[#allocation11 + $0xe0] ss:$16 sps:$4 sm:$0xff]  }
 0x1d0   :  { %vm5119_vm13 = vcmp.lt.s32.totalorder %v5118_v6, 0  ;;  %v434_v9 = vsub.s32 0, %v432_v7  ;;  %v461_v62 = vadd.s32 3, %v457_v57  ;;  %v476_v5 = vrot.slane %v472_v0, %v7346_v63  ;;  %v6020_v57 = vld [vmem:[#allocation11 + $0x100] ss:$16 sps:$4 sm:$0xff]  }
 0x1d1   :  { %v335_v8 = vsel %vm5119_vm13, 0, %v5118_v6  ;;  %vm460_vm13 = vweird.f32 %v7284_v18 }
 0x1d2   :  { %v336_v11 = vsub.s32 32, %v335_v8  ;;  %v340_v12 = vsub.s32 4294967266, %v335_v8  ;;  %v5121_v13 = vmin.u32 %v434_v9, %v432_v7  ;;  %v337_v14 = vshll.u32 %v328_v61, %v335_v8 }
 0x1d3   :  { %v462_v4 = vand.u32 3, %v461_v62  ;;  %vm481_vm10 = vcmp.eq.s32.totalorder %v476_v5, 1  ;;  %v6034_v62 = vld [vmem:[#allocation11 + $0x144] ss:$16 sps:$4 sm:$0xff]  }
 0x1d4   :  { %v338_v20 = vshrl.u32 %v320_v10, %v336_v11  ;;  %v341_v22 = vadd.s32 127, %v340_v12  ;;  %v436_v23 = vclz %v5121_v13  ;;  %v5962_v5 = vld [vmem:[#allocation8 + $0x254] ss:$24 sps:$4 sm:$0xff]  }
 0x1d5   :  { %vm467_vm7 = vcmp.eq.s32.totalorder %v462_v4, 2  ;;  %vm464_vm9 = vcmp.eq.s32.totalorder %v462_v4, 0  ;;  %vm463_vm11 = vcmp.lt.s32.totalorder %v462_v4, 2  ;;  %v5957_v4 = vld [vmem:[#allocation8 + $0x220] ss:$24 sps:$4 sm:$0xff]  }
 0x1d6   :  { %v339_v24 = vor.u32 %v338_v20, %v337_v14  ;;  %v342_v25 = vshll.u32 %v341_v22, 23  ;;  %v5122_v26 = vadd.s32 4294967294, %v436_v23 }
 0x1d8   :  { %v343_v27 = vor.u32 4788187, %v342_v25  ;;  %vm5123_vm14 = vcmp.lt.s32.totalorder %v5122_v26, 0  ;;  %v346_v29 = vcvt.s32.f32 %v339_v24 }
 0x1d9   :  { %v439_v30 = vsel %vm5123_vm14, 0, %v5122_v26  ;;  %v5924_v26 = vld [vmem:[#allocation8 + $0x10] ss:$24 sps:$4 sm:$0xff]  }
 0x1da   :  { %v344_v28 = vand.u32 2147483647, %v343_v27  ;;  %v440_v32 = vsub.s32 32, %v439_v30  ;;  %v444_v33 = vsub.s32 4294967266, %v439_v30  ;;  %v441_v19 = vshll.u32 %v432_v7, %v439_v30  ;;  %v5980_v30 = vld [vmem:[#allocation11 + $0x24] ss:$16 sps:$4 sm:$0xff]  }
 0x1db   :  { %v480_v7 = vrot.slane %v472_v0, %v7349_v1  ;;  %v5959_v0 = vld [vmem:[#allocation8 + $0x224] ss:$24 sps:$4 sm:$0xff]  }
 0x1dc   :  { %v347_v17 = vmul.f32 %v346_v29, %v344_v28  ;;  %v442_v36 = vshrl.u32 %v424_v31, %v440_v32  ;;  %v445_v38 = vadd.s32 127, %v444_v33  ;;  %v5929_v28 = vld [vmem:[#allocation8 + $0x44] ss:$24 sps:$4 sm:$0xff]   ;;  %v5927_v31 = vld [vmem:[#allocation8 + $0x40] ss:$24 sps:$4 sm:$0xff]  }
 0x1dd   :  { %vm482_vm12 = vcmp.eq.s32.totalorder %v480_v7, 1  ;;  %v5972_v29 = vld [vmem:[#allocation11] ss:$16 sps:$4 sm:$0xff]   ;;  %v5986_v32 = vld [vmem:[#allocation11 + $0x44] ss:$16 sps:$4 sm:$0xff]  }
 0x1de   :  { %v348_v41 = vxor.u32 2147483648, %v347_v17  ;;  %v443_v35 = vor.u32 %v442_v36, %v441_v19  ;;  %v446_v34 = vshll.u32 %v445_v38, 23  ;;  %v5930_v33 = vld [vmem:[#allocation8 + $0x70] ss:$24 sps:$4 sm:$0xff]   ;;  %v5933_v38 = vld [vmem:[#allocation8 + $0xa0] ss:$24 sps:$4 sm:$0xff]  }
 0x1df   :  { %v5984_v19 = vld [vmem:[#allocation11 + $0x40] ss:$16 sps:$4 sm:$0xff]   ;;  %v5992_v36 = vld [vmem:[#allocation11 + $0x64] ss:$16 sps:$4 sm:$0xff]  }
 0x1e0   :  { %v349_v37 = vsel %vm266_vm15, %v348_v41, %v347_v17  ;;  %v447_v40 = vor.u32 4788187, %v446_v34  ;;  %v450_v46 = vcvt.s32.f32 %v443_v35  ;;  %v5935_v17 = vld [vmem:[#allocation8 + $0xa4] ss:$24 sps:$4 sm:$0xff]   ;;  %v5938_v41 = vld [vmem:[#allocation8 + $0xd4] ss:$24 sps:$4 sm:$0xff]  }
 0x1e1   :  { %v352_v43 = vsel %vm265_vm0, %v7280_v15, %v349_v37  ;;  %v5998_v35 = vld [vmem:[#allocation11 + $0x84] ss:$16 sps:$4 sm:$0xff]  }
 0x1e2   :  { %6740 = vcosq.f32 %v352_v43  ;;  %v448_v45 = vand.u32 2147483647, %v447_v40  ;;  %v5936_v34 = vld [vmem:[#allocation8 + $0xd0] ss:$24 sps:$4 sm:$0xff]   ;;  %v5941_v37 = vld [vmem:[#allocation8 + $0x104] ss:$24 sps:$4 sm:$0xff]  }
 0x1e3   :  { %6742 = vsinq.f32 %v352_v43  ;;  %v5996_v43 = vld [vmem:[#allocation11 + $0x80] ss:$16 sps:$4 sm:$0xff]   ;;  %v6004_v40 = vld [vmem:[#allocation11 + $0xa4] ss:$16 sps:$4 sm:$0xff]  }
 0x1e4   :  { %v451_v47 = vmul.f32 %v450_v46, %v448_v45  ;;  %v5944_v45 = vld [vmem:[#allocation8 + $0x134] ss:$24 sps:$4 sm:$0xff]  }
 0x1e5   :  { %v6002_v46 = vld [vmem:[#allocation11 + $0xa0] ss:$16 sps:$4 sm:$0xff]   ;;  %v6046_v7 = vld [vmem:[#allocation11 + $0x184] ss:$16 sps:$4 sm:$0xff]  }
 0x1e6   :  { %v452_v50 = vxor.u32 2147483648, %v451_v47 }
 0x1e8   :  { %v453_v16 = vsel %vm370_vm1, %v452_v50, %v451_v47  ;;  %v6010_v47 = vld [vmem:[#allocation11 + $0xc4] ss:$16 sps:$4 sm:$0xff]   ;;  %v6008_v50 = vld [vmem:[#allocation11 + $0xc0] ss:$16 sps:$4 sm:$0xff]  }
 0x1e9   :  { %v456_v54 = vsel %vm369_vm2, %v7284_v18, %v453_v16  ;;  %v5950_v16 = vld [vmem:[#allocation8 + $0x194] ss:$24 sps:$4 sm:$0xff]  }
 0x1ea   :  { %6744 = vcosq.f32 %v456_v54 }
 0x1eb   :  { %6746 = vsinq.f32 %v456_v54  ;;  %v6022_v54 = vld [vmem:[#allocation11 + $0x104] ss:$16 sps:$4 sm:$0xff]  }
 0x1ec   :  { %v6741_v56 = vpop.eup %6740 }
 0x1ed   :  { %v6743_v59 = vpop.eup %6742  ;;  %v364_v61 = vxor.u32 2147483648, %v6741_v56 }
 0x1ee   :  { %v361_v60 = vxor.u32 2147483648, %v6743_v59 }
 0x1ef   :  { %v365_v3 = vsel %vm363_vm5, %v364_v61, %v6743_v59  ;;  %v6028_v59 = vld [vmem:[#allocation11 + $0x124] ss:$16 sps:$4 sm:$0xff]   ;;  %v6026_v61 = vld [vmem:[#allocation11 + $0x120] ss:$16 sps:$4 sm:$0xff]  }
 0x1f0   :  { %v362_v2 = vsel %vm360_vm4, %v6741_v56, %v361_v60  ;;  %v5953_v56 = vld [vmem:[#allocation8 + $0x1c4] ss:$24 sps:$4 sm:$0xff]   ;;  %v5956_v60 = vld [vmem:[#allocation8 + $0x1f4] ss:$24 sps:$4 sm:$0xff]  }
 0x1f1   :  { %v366_v8 = vsel %vm359_vm6, %v362_v2, %v365_v3  ;;  %v6032_v2 = vld [vmem:[#allocation11 + $0x140] ss:$16 sps:$4 sm:$0xff]   ;;  %v6040_v3 = vld [vmem:[#allocation11 + $0x164] ss:$16 sps:$4 sm:$0xff]  }
 0x1f2   :  { %v367_v13 = vsel %vm356_vm8, nan, %v366_v8  ;;  %v5960_v8 = vld [vmem:[#allocation8 + $0x250] ss:$24 sps:$4 sm:$0xff]  }
 0x1f3   :  { %v483_v23 = vsel %vm481_vm10, %v7280_v15, %v367_v13  ;;  %v5932_v15 = vld [vmem:[#allocation8 + $0x74] ss:$24 sps:$4 sm:$0xff]  }
 0x1f4   :  { %v6745_v6 = vpop.eup %6744  ;;  %v7357_v27 = vpack.c.bf16 %v483_v23, %v483_v23  ;;  %v5968_v13 = vld [vmem:[#allocation8 + $0x2b4] ss:$24 sps:$4 sm:$0xff]   ;;  %v5971_v23 = vld [vmem:[#allocation8 + $0x2e4] ss:$24 sps:$4 sm:$0xff]  }
 0x1f5   :  { %v6747_v9 = vpop.eup %6746  ;;  %v468_v10 = vxor.u32 2147483648, %v6745_v6 }
 0x1f6   :  { %v465_v11 = vxor.u32 2147483648, %v6747_v9 }
 0x1f7   :  { %v469_v12 = vsel %vm467_vm7, %v468_v10, %v6747_v9  ;;  %v5965_v9 = vld [vmem:[#allocation8 + $0x284] ss:$24 sps:$4 sm:$0xff]  }
 0x1f8   :  { %v466_v14 = vsel %vm464_vm9, %v6745_v6, %v465_v11  ;;  %v6038_v6 = vld [vmem:[#allocation11 + $0x160] ss:$16 sps:$4 sm:$0xff]   ;;  %v6052_v11 = vld [vmem:[#allocation11 + $0x1a4] ss:$16 sps:$4 sm:$0xff]  }
 0x1f9   :  { %v470_v20 = vsel %vm463_vm11, %v466_v14, %v469_v12  ;;  %v6044_v10 = vld [vmem:[#allocation11 + $0x180] ss:$16 sps:$4 sm:$0xff]  }
 0x1fa   :  { %v471_v22 = vsel %vm460_vm13, nan, %v470_v20  ;;  %v5963_v12 = vld [vmem:[#allocation8 + $0x280] ss:$24 sps:$4 sm:$0xff]  }
 0x1fb   :  { %v484_v24 = vsel %vm482_vm12, %v7284_v18, %v471_v22  ;;  %v5978_v18 = vld [vmem:[#allocation11 + $0x20] ss:$16 sps:$4 sm:$0xff]   ;;  %v6058_v20 = vld [vmem:[#allocation11 + $0x1c4] ss:$16 sps:$4 sm:$0xff]  }
 0x1fc   :  { %v486_v25 = vpack.c.bf16 %v484_v24, %v484_v24  ;;  %v6050_v14 = vld [vmem:[#allocation11 + $0x1a0] ss:$16 sps:$4 sm:$0xff]  }
 0x1fd   :  { %v5966_v22 = vld [vmem:[#allocation8 + $0x2b0] ss:$24 sps:$4 sm:$0xff]  }
 0x1fe   :  { %1127 = vmatprep.mubr.bf16.mxu1 %v486_v25  ;;  %1168 = vmatprep.mubr.bf16.mxu0 %v486_v25  ;;  %v6056_v24 = vld [vmem:[#allocation11 + $0x1c0] ss:$16 sps:$4 sm:$0xff]  }
 0x1ff   :  { %1128 = vmatmul.mubr.bf16.vlgmr.msra.gmra.mrb[4].mxu1 %v7357_v27  ;;  %1169 = vmatmul.mubr.bf16.vlgmr.msra.gmra.mrb[0].mxu0 %v7357_v27 }
 0x200   :  { %1178 = vmatpush1.bf16.msra.mxu1 %v5924_v26  ;;  %1209 = vmatprep.mubr.bf16.mxu1 %v486_v25  ;;  %v5969_v25 = vld [vmem:[#allocation8 + $0x2e0] ss:$24 sps:$4 sm:$0xff]  }
 0x201   :  { %1179 = vmatprep.subr.bf16.mxu1 %v5929_v28  ;;  %2399 = vmatpush1.bf16.msra.mxu0 %v5972_v29  ;;  %v5977_v26 = vld [vmem:[#allocation11 + $0xc] ss:$16 sps:$4 sm:$0xff]   ;;  %v5975_v28 = vld [vmem:[#allocation11 + $0x8] ss:$16 sps:$4 sm:$0xff]  }
 0x202   :  { %2400 = vmatprep.subr.bf16.mxu0 %v5980_v30  ;;  %v5983_v29 = vld [vmem:[#allocation11 + $0x2c] ss:$16 sps:$4 sm:$0xff]   ;;  %v5981_v30 = vld [vmem:[#allocation11 + $0x28] ss:$16 sps:$4 sm:$0xff]  }
 0x204   :  { %1180 = vmatpush1.bf16.msra.mxu1 %v5927_v31  ;;  %v5989_v31 = vld [vmem:[#allocation11 + $0x4c] ss:$16 sps:$4 sm:$0xff]  }
 0x205   :  { %1181 = vmatprep.subr.bf16.mxu1 %v5932_v15  ;;  %2401 = vmatpush1.bf16.msra.mxu0 %v5978_v18  ;;  %v5987_v15 = vld [vmem:[#allocation11 + $0x48] ss:$16 sps:$4 sm:$0xff]   ;;  %v5995_v18 = vld [vmem:[#allocation11 + $0x6c] ss:$16 sps:$4 sm:$0xff]  }
 0x206   :  { %2402 = vmatprep.subr.bf16.mxu0 %v5986_v32  ;;  %v5993_v32 = vld [vmem:[#allocation11 + $0x68] ss:$16 sps:$4 sm:$0xff]  }
 0x208   :  { %1182 = vmatpush1.bf16.msra.mxu1 %v5930_v33  ;;  %v6001_v33 = vld [vmem:[#allocation11 + $0x8c] ss:$16 sps:$4 sm:$0xff]  }
 0x209   :  { %1183 = vmatprep.subr.bf16.mxu1 %v5935_v17  ;;  %2403 = vmatpush1.bf16.msra.mxu0 %v5984_v19  ;;  %v5999_v17 = vld [vmem:[#allocation11 + $0x88] ss:$16 sps:$4 sm:$0xff]   ;;  %v6007_v19 = vld [vmem:[#allocation11 + $0xac] ss:$16 sps:$4 sm:$0xff]  }
 0x20a   :  { %2404 = vmatprep.subr.bf16.mxu0 %v5992_v36  ;;  %v6005_v36 = vld [vmem:[#allocation11 + $0xa8] ss:$16 sps:$4 sm:$0xff]  }
 0x20c   :  { %1184 = vmatpush1.bf16.msra.mxu1 %v5933_v38  ;;  %v6011_v38 = vld [vmem:[#allocation11 + $0xc8] ss:$16 sps:$4 sm:$0xff]  }
 0x20d   :  { %1185 = vmatprep.subr.bf16.mxu1 %v5938_v41  ;;  %2405 = vmatpush1.bf16.msra.mxu0 %v5990_v42  ;;  %v6019_v41 = vld [vmem:[#allocation11 + $0xec] ss:$16 sps:$4 sm:$0xff]   ;;  %v6062_v42 = vld [vmem:[#allocation11 + $0x1e0] ss:$16 sps:$4 sm:$0xff]  }
 0x20e   :  { %2406 = vmatprep.subr.bf16.mxu0 %v5998_v35  ;;  %v6064_v35 = vld [vmem:[#allocation11 + $0x1e4] ss:$16 sps:$4 sm:$0xff]  }
 0x210   :  { %1186 = vmatpush1.bf16.msra.mxu1 %v5936_v34  ;;  %v6017_v34 = vld [vmem:[#allocation11 + $0xe8] ss:$16 sps:$4 sm:$0xff]  }
 0x211   :  { %1187 = vmatprep.subr.bf16.mxu1 %v5941_v37  ;;  %2407 = vmatpush1.bf16.msra.mxu0 %v5996_v43  ;;  %v6070_v37 = vld [vmem:[#allocation11 + $0x204] ss:$16 sps:$4 sm:$0xff]   ;;  %v6025_v43 = vld [vmem:[#allocation11 + $0x10c] ss:$16 sps:$4 sm:$0xff]  }
 0x212   :  { %2408 = vmatprep.subr.bf16.mxu0 %v6004_v40  ;;  %v6023_v40 = vld [vmem:[#allocation11 + $0x108] ss:$16 sps:$4 sm:$0xff]  }
 0x214   :  { %1188 = vmatpush1.bf16.msra.mxu1 %v5939_v44  ;;  %v6031_v44 = vld [vmem:[#allocation11 + $0x12c] ss:$16 sps:$4 sm:$0xff]  }
 0x215   :  { %1189 = vmatprep.subr.bf16.mxu1 %v5944_v45  ;;  %2409 = vmatpush1.bf16.msra.mxu0 %v6002_v46  ;;  %v6029_v45 = vld [vmem:[#allocation11 + $0x128] ss:$16 sps:$4 sm:$0xff]   ;;  %v6037_v46 = vld [vmem:[#allocation11 + $0x14c] ss:$16 sps:$4 sm:$0xff]  }
 0x216   :  { %2410 = vmatprep.subr.bf16.mxu0 %v6010_v47  ;;  %v6035_v47 = vld [vmem:[#allocation11 + $0x148] ss:$16 sps:$4 sm:$0xff]  }
 0x218   :  { %1190 = vmatpush1.bf16.msra.mxu1 %v5942_v48  ;;  %v6043_v48 = vld [vmem:[#allocation11 + $0x16c] ss:$16 sps:$4 sm:$0xff]  }
 0x219   :  { %1191 = vmatprep.subr.bf16.mxu1 %v5947_v49  ;;  %2411 = vmatpush1.bf16.msra.mxu0 %v6008_v50  ;;  %v6041_v49 = vld [vmem:[#allocation11 + $0x168] ss:$16 sps:$4 sm:$0xff]   ;;  %v6049_v50 = vld [vmem:[#allocation11 + $0x18c] ss:$16 sps:$4 sm:$0xff]  }
 0x21a   :  { %2412 = vmatprep.subr.bf16.mxu0 %v6016_v51  ;;  %v6047_v51 = vld [vmem:[#allocation11 + $0x188] ss:$16 sps:$4 sm:$0xff]  }
 0x21c   :  { %1192 = vmatpush1.bf16.msra.mxu1 %v5945_v52  ;;  %v6055_v52 = vld [vmem:[#allocation11 + $0x1ac] ss:$16 sps:$4 sm:$0xff]  }
 0x21d   :  { %1193 = vmatprep.subr.bf16.mxu1 %v5950_v16  ;;  %2413 = vmatpush1.bf16.msra.mxu0 %v6014_v53  ;;  %v6053_v16 = vld [vmem:[#allocation11 + $0x1a8] ss:$16 sps:$4 sm:$0xff]   ;;  %v6061_v53 = vld [vmem:[#allocation11 + $0x1cc] ss:$16 sps:$4 sm:$0xff]  }
 0x21e   :  { %2414 = vmatprep.subr.bf16.mxu0 %v6022_v54  ;;  %v6059_v54 = vld [vmem:[#allocation11 + $0x1c8] ss:$16 sps:$4 sm:$0xff]  }
 0x220   :  { %1194 = vmatpush1.bf16.msra.mxu1 %v5948_v55  ;;  %v6067_v55 = vld [vmem:[#allocation11 + $0x1ec] ss:$16 sps:$4 sm:$0xff]  }
 0x221   :  { %1195 = vmatprep.subr.bf16.mxu1 %v5953_v56  ;;  %2415 = vmatpush1.bf16.msra.mxu0 %v6020_v57  ;;  %v6065_v56 = vld [vmem:[#allocation11 + $0x1e8] ss:$16 sps:$4 sm:$0xff]   ;;  %v6073_v57 = vld [vmem:[#allocation11 + $0x20c] ss:$16 sps:$4 sm:$0xff]  }
 0x222   :  { %2416 = vmatprep.subr.bf16.mxu0 %v6028_v59  ;;  %v7362_v59 = vld [vmem:[#allocation10] sm:$0x3f] }
 0x224   :  { %1196 = vmatpush1.bf16.msra.mxu1 %v5951_v39  ;;  %v7365_v39 = vsub.s32 3, %v7343_v58 }
 0x225   :  { %1197 = vmatprep.subr.bf16.mxu1 %v5956_v60  ;;  %2417 = vmatpush1.bf16.msra.mxu0 %v6026_v61  ;;  %v588_v60 = vrot.slane %v7362_v59, %v7346_v63  ;;  %v592_v61 = vrot.slane %v7362_v59, %v7349_v1 }
 0x226   :  { %2418 = vmatprep.subr.bf16.mxu0 %v6034_v62  ;;  %v600_v62 = vrot.slane %v7362_v59, %v7365_v39 }
 0x228   :  { %1198 = vmatpush1.bf16.msra.mxu1 %v5954_v21 }
 0x229   :  { %1199 = vmatprep.subr.bf16.mxu1 %v5959_v0  ;;  %2419 = vmatpush1.bf16.msra.mxu0 %v6032_v2 }
 0x22a   :  { %2420 = vmatprep.subr.bf16.mxu0 %v6040_v3 }
 0x22c   :  { %1200 = vmatpush1.bf16.msra.mxu1 %v5957_v4 }
 0x22d   :  { %1201 = vmatprep.subr.bf16.mxu1 %v5962_v5  ;;  %2421 = vmatpush1.bf16.msra.mxu0 %v6038_v6 }
 0x22e   :  { %2422 = vmatprep.subr.bf16.mxu0 %v6046_v7 }
 0x230   :  { %1202 = vmatpush1.bf16.msra.mxu1 %v5960_v8 }
 0x231   :  { %1203 = vmatprep.subr.bf16.mxu1 %v5965_v9  ;;  %2423 = vmatpush1.bf16.msra.mxu0 %v6044_v10 }
 0x232   :  { %2424 = vmatprep.subr.bf16.mxu0 %v6052_v11 }
 0x234   :  { %1204 = vmatpush1.bf16.msra.mxu1 %v5963_v12  ;;  %v6068_v12 = vld [vmem:[#allocation11 + $0x200] ss:$16 sps:$4 sm:$0xff]  }
 0x235   :  { %1205 = vmatprep.subr.bf16.mxu1 %v5968_v13  ;;  %2425 = vmatpush1.bf16.msra.mxu0 %v6050_v14  ;;  %v6071_v13 = vld [vmem:[#allocation11 + $0x208] ss:$16 sps:$4 sm:$0xff]  }
 0x236   :  { %2426 = vmatprep.subr.bf16.mxu0 %v6058_v20  ;;  %v6076_v20 = vld [vmem:[#allocation11 + $0x224] ss:$16 sps:$4 sm:$0xff]  }
 0x238   :  { %1206 = vmatpush1.bf16.msra.mxu1 %v5966_v22  ;;  %v6079_v22 = vld [vmem:[#allocation11 + $0x22c] ss:$16 sps:$4 sm:$0xff]  }
 0x239   :  { %1207 = vmatprep.subr.bf16.mxu1 %v5971_v23  ;;  %2427 = vmatpush1.bf16.msra.mxu0 %v6056_v24  ;;  %v6074_v24 = vld [vmem:[#allocation11 + $0x220] ss:$16 sps:$4 sm:$0xff]  }
 0x23a   :  { %2428 = vmatprep.subr.bf16.mxu0 %v6064_v35  ;;  %v6106_v35 = vld [vmem:[#allocation11 + $0x2c4] ss:$16 sps:$4 sm:$0xff]  }
 0x23c   :  { %1208 = vmatpush1.bf16.msra.mxu1 %v5969_v25  ;;  %v6077_v25 = vld [vmem:[#allocation11 + $0x228] ss:$16 sps:$4 sm:$0xff]  }
 0x23d   :  { %2521 = vmatprep.subr.bf16.mxu1 %v5977_v26  ;;  %2429 = vmatpush1.bf16.msra.mxu0 %v6062_v42  ;;  %v6082_v26 = vld [vmem:[#allocation11 + $0x244] ss:$16 sps:$4 sm:$0xff]   ;;  %v6101_v42 = vld [vmem:[#allocation11 + $0x2a8] ss:$16 sps:$4 sm:$0xff]  }
 0x23e   :  { %2439 = vmatprep.subr.bf16.mxu0 %v6070_v37  ;;  %v6104_v37 = vld [vmem:[#allocation11 + $0x2c0] ss:$16 sps:$4 sm:$0xff]  }
 0x23f   :  { %1210 = vmatmul.mubr.bf16.vlgmr.msra.gmra.mrb[8].mxu1 %v7357_v27  ;;  %v6013_v27 = vld [vmem:[#allocation11 + $0xcc] ss:$16 sps:$4 sm:$0xff]  }
 0x240   :  { %2522 = vmatpush1.bf16.msra.mxu1 %v5975_v28  ;;  %v6085_v28 = vld [vmem:[#allocation11 + $0x24c] ss:$16 sps:$4 sm:$0xff]  }
 0x241   :  { %2523 = vmatprep.subr.bf16.mxu1 %v5983_v29  ;;  %v6080_v29 = vld [vmem:[#allocation11 + $0x240] ss:$16 sps:$4 sm:$0xff]  }
 0x244   :  { %2524 = vmatpush1.bf16.msra.mxu1 %v5981_v30  ;;  %v6083_v30 = vld [vmem:[#allocation11 + $0x248] ss:$16 sps:$4 sm:$0xff]  }
 0x245   :  { %2525 = vmatprep.subr.bf16.mxu1 %v5989_v31  ;;  %v6088_v31 = vld [vmem:[#allocation11 + $0x264] ss:$16 sps:$4 sm:$0xff]  }
 0x248   :  { %2526 = vmatpush1.bf16.msra.mxu1 %v5987_v15  ;;  %v6091_v15 = vld [vmem:[#allocation11 + $0x26c] ss:$16 sps:$4 sm:$0xff]  }
 0x249   :  { %2527 = vmatprep.subr.bf16.mxu1 %v5995_v18  ;;  %v6086_v18 = vld [vmem:[#allocation11 + $0x260] ss:$16 sps:$4 sm:$0xff]  }
 0x24c   :  { %2528 = vmatpush1.bf16.msra.mxu1 %v5993_v32  ;;  %v6089_v32 = vld [vmem:[#allocation11 + $0x268] ss:$16 sps:$4 sm:$0xff]  }
 0x24d   :  { %2529 = vmatprep.subr.bf16.mxu1 %v6001_v33  ;;  %v6094_v33 = vld [vmem:[#allocation11 + $0x284] ss:$16 sps:$4 sm:$0xff]  }
 0x250   :  { %2530 = vmatpush1.bf16.msra.mxu1 %v5999_v17  ;;  %v6097_v17 = vld [vmem:[#allocation11 + $0x28c] ss:$16 sps:$4 sm:$0xff]  }
 0x251   :  { %2531 = vmatprep.subr.bf16.mxu1 %v6007_v19  ;;  %v6092_v19 = vld [vmem:[#allocation11 + $0x280] ss:$16 sps:$4 sm:$0xff]  }
 0x254   :  { %2532 = vmatpush1.bf16.msra.mxu1 %v6005_v36  ;;  %v6095_v36 = vld [vmem:[#allocation11 + $0x288] ss:$16 sps:$4 sm:$0xff]  }
 0x255   :  { %2533 = vmatprep.subr.bf16.mxu1 %v6013_v27  ;;  %v6100_v27 = vld [vmem:[#allocation11 + $0x2a4] ss:$16 sps:$4 sm:$0xff]  }
 0x258   :  { %2534 = vmatpush1.bf16.msra.mxu1 %v6011_v38  ;;  %v6103_v38 = vld [vmem:[#allocation11 + $0x2ac] ss:$16 sps:$4 sm:$0xff]  }
 0x259   :  { %2535 = vmatprep.subr.bf16.mxu1 %v6019_v41  ;;  %v6098_v41 = vld [vmem:[#allocation11 + $0x2a0] ss:$16 sps:$4 sm:$0xff]  }
 0x25c   :  { %2536 = vmatpush1.bf16.msra.mxu1 %v6017_v34  ;;  %v6109_v34 = vld [vmem:[#allocation11 + $0x2cc] ss:$16 sps:$4 sm:$0xff]  }
 0x25d   :  { %2537 = vmatprep.subr.bf16.mxu1 %v6025_v43  ;;  %v6107_v43 = vld [vmem:[#allocation11 + $0x2c8] ss:$16 sps:$4 sm:$0xff]  }
 0x260   :  { %2538 = vmatpush1.bf16.msra.mxu1 %v6023_v40  ;;  %v6112_v40 = vld [vmem:[#allocation11 + $0x2e4] ss:$16 sps:$4 sm:$0xff]  }
 0x261   :  { %2539 = vmatprep.subr.bf16.mxu1 %v6031_v44  ;;  %v6115_v44 = vld [vmem:[#allocation11 + $0x2ec] ss:$16 sps:$4 sm:$0xff]  }
 0x264   :  { %2540 = vmatpush1.bf16.msra.mxu1 %v6029_v45  ;;  %v6110_v45 = vld [vmem:[#allocation11 + $0x2e0] ss:$16 sps:$4 sm:$0xff]  }
 0x265   :  { %2541 = vmatprep.subr.bf16.mxu1 %v6037_v46  ;;  %v6113_v46 = vld [vmem:[#allocation11 + $0x2e8] ss:$16 sps:$4 sm:$0xff]  }
 0x268   :  { %2542 = vmatpush1.bf16.msra.mxu1 %v6035_v47  ;;  %v6118_v47 = vld [vmem:[#allocation11 + $0x304] ss:$16 sps:$4 sm:$0xff]  }
 0x269   :  { %2543 = vmatprep.subr.bf16.mxu1 %v6043_v48  ;;  %v6121_v48 = vld [vmem:[#allocation11 + $0x30c] ss:$16 sps:$4 sm:$0xff]  }
 0x26c   :  { %2544 = vmatpush1.bf16.msra.mxu1 %v6041_v49  ;;  %v6116_v49 = vld [vmem:[#allocation11 + $0x300] ss:$16 sps:$4 sm:$0xff]  }
 0x26d   :  { %2545 = vmatprep.subr.bf16.mxu1 %v6049_v50  ;;  %v6119_v50 = vld [vmem:[#allocation11 + $0x308] ss:$16 sps:$4 sm:$0xff]  }
 0x270   :  { %2546 = vmatpush1.bf16.msra.mxu1 %v6047_v51  ;;  %v6124_v51 = vld [vmem:[#allocation11 + $0x324] ss:$16 sps:$4 sm:$0xff]  }
 0x271   :  { %2547 = vmatprep.subr.bf16.mxu1 %v6055_v52  ;;  %v6127_v52 = vld [vmem:[#allocation11 + $0x32c] ss:$16 sps:$4 sm:$0xff]  }
 0x274   :  { %2548 = vmatpush1.bf16.msra.mxu1 %v6053_v16  ;;  %v6122_v16 = vld [vmem:[#allocation11 + $0x320] ss:$16 sps:$4 sm:$0xff]  }
 0x275   :  { %2549 = vmatprep.subr.bf16.mxu1 %v6061_v53  ;;  %v6125_v53 = vld [vmem:[#allocation11 + $0x328] ss:$16 sps:$4 sm:$0xff]  }
 0x278   :  { %2550 = vmatpush1.bf16.msra.mxu1 %v6059_v54  ;;  %v6130_v54 = vld [vmem:[#allocation11 + $0x344] ss:$16 sps:$4 sm:$0xff]  }
 0x279   :  { %2551 = vmatprep.subr.bf16.mxu1 %v6067_v55  ;;  %v6133_v55 = vld [vmem:[#allocation11 + $0x34c] ss:$16 sps:$4 sm:$0xff]  }
 0x27c   :  { %2552 = vmatpush1.bf16.msra.mxu1 %v6065_v56  ;;  %v6128_v56 = vld [vmem:[#allocation11 + $0x340] ss:$16 sps:$4 sm:$0xff]  }
 0x27d   :  { %2562 = vmatprep.subr.bf16.mxu1 %v6073_v57  ;;  %v6131_v57 = vld [vmem:[#allocation11 + $0x348] ss:$16 sps:$4 sm:$0xff]  }
 0x2d2   :  { %v1129_v21 = vpop.f32.mrb[4].mxu1  ;;  %v7373_v0 = vpop.f32.mrb[0].mxu0 }
 0x2d3   :  { %v1130_v2 = vadd.f32 %v1129_v21, %v588_v60  ;;  %v1131_v3 = vpop.f32.mrb[5].mxu1  ;;  %v1172_v4 = vpop.f32.mrb[1].mxu0  ;;  %v6136_v60 = vld [vmem:[#allocation11 + $0x364] ss:$16 sps:$4 sm:$0xff]   ;;  %v6137_v21 = vld [vmem:[#allocation11 + $0x368] ss:$16 sps:$4 sm:$0xff]  }
 0x2d4   :  { %v1132_v5 = vadd.f32 %v1131_v3, %v592_v61  ;;  %v1133_v6 = vpop.f32.mrb[6].mxu1  ;;  %v1174_v7 = vpop.f32.mrb[2].mxu0  ;;  %v1173_v8 = vadd.f32 %v1172_v4, %v600_v62  ;;  %v6139_v61 = vld [vmem:[#allocation11 + $0x36c] ss:$16 sps:$4 sm:$0xff]   ;;  %v6134_v62 = vld [vmem:[#allocation11 + $0x360] ss:$16 sps:$4 sm:$0xff]  }
 0x2d5   :  { %v1134_v9 = vpop.f32.mrb[7].mxu1  ;;  %v1175_v10 = vpop.f32.mrb[3].mxu0  ;;  %v1218_v14 = vpack.c.bf16 %v1130_v2, %v1130_v2  ;;  %v6142_v2 = vld [vmem:[#allocation11 + $0x384] ss:$16 sps:$4 sm:$0xff]   ;;  %v6145_v3 = vld [vmem:[#allocation11 + $0x38c] ss:$16 sps:$4 sm:$0xff]  }
 0x2d6   :  { %v1219_v11 = vpack.c.bf16 %v1132_v5, %v1132_v5  ;;  %v1221_v23 = vpack.c.bf16 %v1173_v8, %v1173_v8  ;;  %v6140_v4 = vld [vmem:[#allocation11 + $0x380] ss:$16 sps:$4 sm:$0xff]   ;;  %v6143_v5 = vld [vmem:[#allocation11 + $0x388] ss:$16 sps:$4 sm:$0xff]   ;;  %v6148_v6 = vld [vmem:[#allocation11 + $0x3a4] ss:$16 sps:$4 sm:$0xff]  }
 0x2d7   :  { %v6151_v7 = vld [vmem:[#allocation11 + $0x3ac] ss:$16 sps:$4 sm:$0xff]   ;;  %v6146_v8 = vld [vmem:[#allocation11 + $0x3a0] ss:$16 sps:$4 sm:$0xff]   ;;  %v6149_v9 = vld [vmem:[#allocation11 + $0x3a8] ss:$16 sps:$4 sm:$0xff]  }
 0x2d8   :  { %2430 = vmatprep.mubr.bf16.mxu0 %v1219_v11  ;;  %2553 = vmatprep.mubr.bf16.mxu1 %v1219_v11  ;;  %v7376_v10 = vsub.s32 2, %v7343_v58  ;;  %v6154_v11 = vld [vmem:[#allocation11 + $0x3c4] ss:$16 sps:$4 sm:$0xff]  }
 0x2d9   :  { %2431 = vmatmul.mubr.bf16.vlgmr.msra.gmra.mrb[4].mxu0 %v1218_v14  ;;  %2554 = vmatmul.mubr.bf16.vlgmr.msra.gmra.mrb[12].mxu1 %v1218_v14  ;;  %v6152_v14 = vld [vmem:[#allocation11 + $0x3c0] ss:$16 sps:$4 sm:$0xff]  }
 0x2da   :  { %2440 = vmatpush1.bf16.msra.mxu0 %v6068_v12  ;;  %2563 = vmatpush1.bf16.msra.mxu1 %v6071_v13  ;;  %v6157_v12 = vld [vmem:[#allocation11 + $0x3cc] ss:$16 sps:$4 sm:$0xff]   ;;  %v607_v13 = vsub.s32 5, %v7343_v58 }
 0x2db   :  { %2471 = vmatprep.mubr.bf16.mxu0 %v1221_v23  ;;  %2594 = vmatprep.mubr.bf16.mxu1 %v1221_v23  ;;  %v6160_v23 = vld [vmem:[#allocation11 + $0x3e4] ss:$16 sps:$4 sm:$0xff]  }
 0x2dc   :  { %2441 = vmatprep.subr.bf16.mxu0 %v6076_v20  ;;  %2564 = vmatprep.subr.bf16.mxu1 %v6079_v22  ;;  %v6155_v20 = vld [vmem:[#allocation11 + $0x3c8] ss:$16 sps:$4 sm:$0xff]   ;;  %v596_v22 = vrot.slane %v7362_v59, %v7376_v10 }
 0x2de   :  { %2442 = vmatpush1.bf16.msra.mxu0 %v6074_v24  ;;  %2565 = vmatpush1.bf16.msra.mxu1 %v6077_v25  ;;  %v6163_v24 = vld [vmem:[#allocation11 + $0x3ec] ss:$16 sps:$4 sm:$0xff]   ;;  %v608_v25 = vrot.slane %v7362_v59, %v607_v13 }
 0x2df   :  { %2443 = vmatprep.subr.bf16.mxu0 %v6082_v26  ;;  %2566 = vmatprep.subr.bf16.mxu1 %v6085_v28  ;;  %v6158_v28 = vld [vmem:[#allocation11 + $0x3e0] ss:$16 sps:$4 sm:$0xff]  }
 0x2e2   :  { %2444 = vmatpush1.bf16.msra.mxu0 %v6080_v29  ;;  %2567 = vmatpush1.bf16.msra.mxu1 %v6083_v30  ;;  %v6161_v29 = vld [vmem:[#allocation11 + $0x3e8] ss:$16 sps:$4 sm:$0xff]   ;;  %v1171_v30 = vadd.f32 %v7373_v0, %v596_v22  ;;  %v6170_v0 = vld [vmem:[#allocation11 + $0x420] ss:$16 sps:$4 sm:$0xff]  }
 0x2e3   :  { %2445 = vmatprep.subr.bf16.mxu0 %v6088_v31  ;;  %2568 = vmatprep.subr.bf16.mxu1 %v6091_v15  ;;  %v6166_v15 = vld [vmem:[#allocation11 + $0x404] ss:$16 sps:$4 sm:$0xff]   ;;  %v6227_v22 = vld [vmem:[#allocation11 + $0x548] ss:$16 sps:$4 sm:$0xff]  }
 0x2e6   :  { %2446 = vmatpush1.bf16.msra.mxu0 %v6086_v18  ;;  %2569 = vmatpush1.bf16.msra.mxu1 %v6089_v32  ;;  %v6169_v18 = vld [vmem:[#allocation11 + $0x40c] ss:$16 sps:$4 sm:$0xff]  }
 0x2e7   :  { %2447 = vmatprep.subr.bf16.mxu0 %v6094_v33  ;;  %2570 = vmatprep.subr.bf16.mxu1 %v6097_v17 }
 0x2ea   :  { %2448 = vmatpush1.bf16.msra.mxu0 %v6092_v19  ;;  %2571 = vmatpush1.bf16.msra.mxu1 %v6095_v36  ;;  %v6164_v19 = vld [vmem:[#allocation11 + $0x400] ss:$16 sps:$4 sm:$0xff]   ;;  %v1220_v36 = vpack.c.bf16 %v1171_v30, %v1171_v30  ;;  %v6241_v30 = vld [vmem:[#allocation11 + $0x58c] ss:$16 sps:$4 sm:$0xff]  }
 0x2eb   :  { %2449 = vmatprep.subr.bf16.mxu0 %v6100_v27  ;;  %2572 = vmatprep.subr.bf16.mxu1 %v6103_v38  ;;  %v6167_v27 = vld [vmem:[#allocation11 + $0x408] ss:$16 sps:$4 sm:$0xff]  }
 0x2ee   :  { %2450 = vmatpush1.bf16.msra.mxu0 %v6098_v41  ;;  %2573 = vmatpush1.bf16.msra.mxu1 %v6101_v42  ;;  %v6172_v41 = vld [vmem:[#allocation11 + $0x424] ss:$16 sps:$4 sm:$0xff]   ;;  %v6175_v42 = vld [vmem:[#allocation11 + $0x42c] ss:$16 sps:$4 sm:$0xff]  }
 0x2ef   :  { %2451 = vmatprep.subr.bf16.mxu0 %v6106_v35  ;;  %2574 = vmatprep.subr.bf16.mxu1 %v6109_v34  ;;  %v6173_v35 = vld [vmem:[#allocation11 + $0x428] ss:$16 sps:$4 sm:$0xff]   ;;  %v6178_v34 = vld [vmem:[#allocation11 + $0x444] ss:$16 sps:$4 sm:$0xff]  }
 0x2f2   :  { %2452 = vmatpush1.bf16.msra.mxu0 %v6104_v37  ;;  %2575 = vmatpush1.bf16.msra.mxu1 %v6107_v43  ;;  %v6181_v37 = vld [vmem:[#allocation11 + $0x44c] ss:$16 sps:$4 sm:$0xff]   ;;  %v6176_v43 = vld [vmem:[#allocation11 + $0x440] ss:$16 sps:$4 sm:$0xff]  }
 0x2f3   :  { %2453 = vmatprep.subr.bf16.mxu0 %v6112_v40  ;;  %2576 = vmatprep.subr.bf16.mxu1 %v6115_v44  ;;  %v6179_v40 = vld [vmem:[#allocation11 + $0x448] ss:$16 sps:$4 sm:$0xff]   ;;  %v6184_v44 = vld [vmem:[#allocation11 + $0x464] ss:$16 sps:$4 sm:$0xff]  }
 0x2f6   :  { %2454 = vmatpush1.bf16.msra.mxu0 %v6110_v45  ;;  %2577 = vmatpush1.bf16.msra.mxu1 %v6113_v46  ;;  %v6187_v45 = vld [vmem:[#allocation11 + $0x46c] ss:$16 sps:$4 sm:$0xff]   ;;  %v6182_v46 = vld [vmem:[#allocation11 + $0x460] ss:$16 sps:$4 sm:$0xff]  }
 0x2f7   :  { %2455 = vmatprep.subr.bf16.mxu0 %v6118_v47  ;;  %2578 = vmatprep.subr.bf16.mxu1 %v6121_v48  ;;  %v6185_v47 = vld [vmem:[#allocation11 + $0x468] ss:$16 sps:$4 sm:$0xff]   ;;  %v6190_v48 = vld [vmem:[#allocation11 + $0x484] ss:$16 sps:$4 sm:$0xff]  }
 0x2fa   :  { %2456 = vmatpush1.bf16.msra.mxu0 %v6116_v49  ;;  %2579 = vmatpush1.bf16.msra.mxu1 %v6119_v50  ;;  %v6193_v49 = vld [vmem:[#allocation11 + $0x48c] ss:$16 sps:$4 sm:$0xff]   ;;  %v6188_v50 = vld [vmem:[#allocation11 + $0x480] ss:$16 sps:$4 sm:$0xff]  }
 0x2fb   :  { %2457 = vmatprep.subr.bf16.mxu0 %v6124_v51  ;;  %2580 = vmatprep.subr.bf16.mxu1 %v6127_v52  ;;  %v6191_v51 = vld [vmem:[#allocation11 + $0x488] ss:$16 sps:$4 sm:$0xff]   ;;  %v6196_v52 = vld [vmem:[#allocation11 + $0x4a4] ss:$16 sps:$4 sm:$0xff]  }
 0x2fe   :  { %2458 = vmatpush1.bf16.msra.mxu0 %v6122_v16  ;;  %2581 = vmatpush1.bf16.msra.mxu1 %v6125_v53  ;;  %v6199_v16 = vld [vmem:[#allocation11 + $0x4ac] ss:$16 sps:$4 sm:$0xff]   ;;  %v6194_v53 = vld [vmem:[#allocation11 + $0x4a0] ss:$16 sps:$4 sm:$0xff]  }
 0x2ff   :  { %2459 = vmatprep.subr.bf16.mxu0 %v6130_v54  ;;  %2582 = vmatprep.subr.bf16.mxu1 %v6133_v55  ;;  %v6197_v54 = vld [vmem:[#allocation11 + $0x4a8] ss:$16 sps:$4 sm:$0xff]   ;;  %v6202_v55 = vld [vmem:[#allocation11 + $0x4c4] ss:$16 sps:$4 sm:$0xff]  }
 0x302   :  { %2460 = vmatpush1.bf16.msra.mxu0 %v6128_v56  ;;  %2583 = vmatpush1.bf16.msra.mxu1 %v6131_v57  ;;  %v6205_v56 = vld [vmem:[#allocation11 + $0x4cc] ss:$16 sps:$4 sm:$0xff]   ;;  %v6200_v57 = vld [vmem:[#allocation11 + $0x4c0] ss:$16 sps:$4 sm:$0xff]  }
 0x303   :  { %2461 = vmatprep.subr.bf16.mxu0 %v6136_v60  ;;  %2584 = vmatprep.subr.bf16.mxu1 %v6139_v61  ;;  %v6203_v60 = vld [vmem:[#allocation11 + $0x4c8] ss:$16 sps:$4 sm:$0xff]   ;;  %v6208_v61 = vld [vmem:[#allocation11 + $0x4e4] ss:$16 sps:$4 sm:$0xff]  }
 0x306   :  { %2462 = vmatpush1.bf16.msra.mxu0 %v6134_v62  ;;  %2585 = vmatpush1.bf16.msra.mxu1 %v6137_v21  ;;  %v6211_v62 = vld [vmem:[#allocation11 + $0x4ec] ss:$16 sps:$4 sm:$0xff]   ;;  %v6206_v21 = vld [vmem:[#allocation11 + $0x4e0] ss:$16 sps:$4 sm:$0xff]  }
 0x307   :  { %2463 = vmatprep.subr.bf16.mxu0 %v6142_v2  ;;  %2586 = vmatprep.subr.bf16.mxu1 %v6145_v3  ;;  %v6209_v2 = vld [vmem:[#allocation11 + $0x4e8] ss:$16 sps:$4 sm:$0xff]   ;;  %v6214_v3 = vld [vmem:[#allocation11 + $0x504] ss:$16 sps:$4 sm:$0xff]  }
 0x30a   :  { %2464 = vmatpush1.bf16.msra.mxu0 %v6140_v4  ;;  %2587 = vmatpush1.bf16.msra.mxu1 %v6143_v5  ;;  %v6217_v4 = vld [vmem:[#allocation11 + $0x50c] ss:$16 sps:$4 sm:$0xff]   ;;  %v6212_v5 = vld [vmem:[#allocation11 + $0x500] ss:$16 sps:$4 sm:$0xff]  }
 0x30b   :  { %2465 = vmatprep.subr.bf16.mxu0 %v6148_v6  ;;  %2588 = vmatprep.subr.bf16.mxu1 %v6151_v7  ;;  %v6215_v6 = vld [vmem:[#allocation11 + $0x508] ss:$16 sps:$4 sm:$0xff]   ;;  %v6220_v7 = vld [vmem:[#allocation11 + $0x524] ss:$16 sps:$4 sm:$0xff]  }
 0x30e   :  { %2466 = vmatpush1.bf16.msra.mxu0 %v6146_v8  ;;  %2589 = vmatpush1.bf16.msra.mxu1 %v6149_v9  ;;  %v6223_v8 = vld [vmem:[#allocation11 + $0x52c] ss:$16 sps:$4 sm:$0xff]   ;;  %v6218_v9 = vld [vmem:[#allocation11 + $0x520] ss:$16 sps:$4 sm:$0xff]  }
 0x30f   :  { %2467 = vmatprep.subr.bf16.mxu0 %v6154_v11  ;;  %2590 = vmatprep.subr.bf16.mxu1 %v6157_v12  ;;  %v6221_v11 = vld [vmem:[#allocation11 + $0x528] ss:$16 sps:$4 sm:$0xff]   ;;  %v6226_v12 = vld [vmem:[#allocation11 + $0x544] ss:$16 sps:$4 sm:$0xff]  }
 0x312   :  { %v7384_v26 = vpop.f32.mrb[8].mxu1  ;;  %2468 = vmatpush1.bf16.msra.mxu0 %v6152_v14  ;;  %2591 = vmatpush1.bf16.msra.mxu1 %v6155_v20  ;;  %v6229_v14 = vld [vmem:[#allocation11 + $0x54c] ss:$16 sps:$4 sm:$0xff]   ;;  %v6224_v20 = vld [vmem:[#allocation11 + $0x540] ss:$16 sps:$4 sm:$0xff]  }
 0x313   :  { %v1213_v31 = vpop.f32.mrb[9].mxu1  ;;  %2469 = vmatprep.subr.bf16.mxu0 %v6160_v23  ;;  %2592 = vmatprep.subr.bf16.mxu1 %v6163_v24  ;;  %v6232_v23 = vld [vmem:[#allocation11 + $0x564] ss:$16 sps:$4 sm:$0xff]   ;;  %v6235_v24 = vld [vmem:[#allocation11 + $0x56c] ss:$16 sps:$4 sm:$0xff]  }
 0x314   :  { %v1214_v32 = vadd.f32 %v1213_v31, %v608_v25  ;;  %v1215_v33 = vpop.f32.mrb[10].mxu1  ;;  %v6230_v25 = vld [vmem:[#allocation11 + $0x560] ss:$16 sps:$4 sm:$0xff]  }
 0x315   :  { %v1216_v17 = vpop.f32.mrb[11].mxu1  ;;  %v6236_v31 = vld [vmem:[#allocation11 + $0x580] ss:$16 sps:$4 sm:$0xff]  }
 0x316   :  { %2470 = vmatpush1.bf16.msra.mxu0 %v6158_v28  ;;  %2593 = vmatpush1.bf16.msra.mxu1 %v6161_v29  ;;  %v1223_v38 = vpack.c.bf16 %v1214_v32, %v1214_v32  ;;  %v6233_v28 = vld [vmem:[#allocation11 + $0x568] ss:$16 sps:$4 sm:$0xff]   ;;  %v6238_v29 = vld [vmem:[#allocation11 + $0x584] ss:$16 sps:$4 sm:$0xff]   ;;  %v6247_v32 = vld [vmem:[#allocation11 + $0x5ac] ss:$16 sps:$4 sm:$0xff]  }
 0x317   :  { %2480 = vmatprep.subr.bf16.mxu0 %v6166_v15  ;;  %2603 = vmatprep.subr.bf16.mxu1 %v6169_v18  ;;  %v6239_v15 = vld [vmem:[#allocation11 + $0x588] ss:$16 sps:$4 sm:$0xff]   ;;  %v6244_v18 = vld [vmem:[#allocation11 + $0x5a4] ss:$16 sps:$4 sm:$0xff]   ;;  %v6242_v33 = vld [vmem:[#allocation11 + $0x5a0] ss:$16 sps:$4 sm:$0xff]  }
 0x318   :  { %v603_v17 = vsub.s32 4, %v7343_v58 }
 0x319   :  { %2472 = vmatmul.mubr.bf16.vlgmr.msra.gmra.mrb[4].mxu0 %v1220_v36  ;;  %2595 = vmatmul.mubr.bf16.vlgmr.msra.gmra.mrb[12].mxu1 %v1220_v36  ;;  %v6250_v36 = vld [vmem:[#allocation11 + $0x5c4] ss:$16 sps:$4 sm:$0xff]  }
 0x31a   :  { %2481 = vmatpush1.bf16.msra.mxu0 %v6164_v19  ;;  %2512 = vmatprep.mubr.bf16.mxu0 %v1223_v38  ;;  %v6245_v19 = vld [vmem:[#allocation11 + $0x5a8] ss:$16 sps:$4 sm:$0xff]  }
 0x31b   :  { %2604 = vmatpush1.bf16.msra.mxu1 %v6167_v27  ;;  %2635 = vmatprep.mubr.bf16.mxu1 %v1223_v38  ;;  %v6253_v27 = vld [vmem:[#allocation11 + $0x5cc] ss:$16 sps:$4 sm:$0xff]   ;;  %v6248_v38 = vld [vmem:[#allocation11 + $0x5c0] ss:$16 sps:$4 sm:$0xff]  }
 0x31c   :  { %2482 = vmatprep.subr.bf16.mxu0 %v6172_v41  ;;  %2605 = vmatprep.subr.bf16.mxu1 %v6175_v42  ;;  %v604_v41 = vrot.slane %v7362_v59, %v603_v17  ;;  %v6251_v42 = vld [vmem:[#allocation11 + $0x5c8] ss:$16 sps:$4 sm:$0xff]   ;;  %v6263_v59 = vld [vmem:[#allocation14 + $0x8] ss:$16 sps:$4 sm:$0xff]  }
 0x31e   :  { %2483 = vmatpush1.bf16.msra.mxu0 %v6170_v0  ;;  %v6256_v0 = vld [vmem:[#allocation11 + $0x5e4] ss:$16 sps:$4 sm:$0xff]  }
 0x31f   :  { %2606 = vmatpush1.bf16.msra.mxu1 %v6173_v35  ;;  %2484 = vmatprep.subr.bf16.mxu0 %v6178_v34  ;;  %v6259_v35 = vld [vmem:[#allocation11 + $0x5ec] ss:$16 sps:$4 sm:$0xff]   ;;  %v6254_v34 = vld [vmem:[#allocation11 + $0x5e0] ss:$16 sps:$4 sm:$0xff]  }
 0x320   :  { %2607 = vmatprep.subr.bf16.mxu1 %v6181_v37  ;;  %v1212_v37 = vadd.f32 %v7384_v26, %v604_v41  ;;  %v6269_v26 = vld [vmem:[#allocation14 + $0x28] ss:$16 sps:$4 sm:$0xff]   ;;  %v6337_v41 = vld [vmem:[#allocation14 + $0x18c] ss:$16 sps:$4 sm:$0xff]  }
 0x322   :  { %2485 = vmatpush1.bf16.msra.mxu0 %v6176_v43  ;;  %v6257_v43 = vld [vmem:[#allocation11 + $0x5e8] ss:$16 sps:$4 sm:$0xff]  }
 0x323   :  { %2608 = vmatpush1.bf16.msra.mxu1 %v6179_v40  ;;  %2486 = vmatprep.subr.bf16.mxu0 %v6184_v44  ;;  %v6262_v40 = vld [vmem:[#allocation14 + $0x4] ss:$16 sps:$4 sm:$0xff]   ;;  %v6265_v44 = vld [vmem:[#allocation14 + $0xc] ss:$16 sps:$4 sm:$0xff]  }
 0x324   :  { %2609 = vmatprep.subr.bf16.mxu1 %v6187_v45  ;;  %v6260_v45 = vld [vmem:[#allocation14] ss:$16 sps:$4 sm:$0xff]  }
 0x326   :  { %2487 = vmatpush1.bf16.msra.mxu0 %v6182_v46  ;;  %v1222_v46 = vpack.c.bf16 %v1212_v37, %v1212_v37  ;;  %v6338_v37 = vld [vmem:[#allocation14 + $0x1a0] ss:$16 sps:$4 sm:$0xff]  }
 0x327   :  { %2610 = vmatpush1.bf16.msra.mxu1 %v6185_v47  ;;  %2488 = vmatprep.subr.bf16.mxu0 %v6190_v48  ;;  %v6268_v47 = vld [vmem:[#allocation14 + $0x24] ss:$16 sps:$4 sm:$0xff]   ;;  %v6271_v48 = vld [vmem:[#allocation14 + $0x2c] ss:$16 sps:$4 sm:$0xff]  }
 0x328   :  { %2611 = vmatprep.subr.bf16.mxu1 %v6193_v49  ;;  %v6266_v49 = vld [vmem:[#allocation14 + $0x20] ss:$16 sps:$4 sm:$0xff]  }
 0x32a   :  { %2489 = vmatpush1.bf16.msra.mxu0 %v6188_v50  ;;  %v6274_v50 = vld [vmem:[#allocation14 + $0x44] ss:$16 sps:$4 sm:$0xff]  }
 0x32b   :  { %2612 = vmatpush1.bf16.msra.mxu1 %v6191_v51  ;;  %2490 = vmatprep.subr.bf16.mxu0 %v6196_v52  ;;  %v6277_v51 = vld [vmem:[#allocation14 + $0x4c] ss:$16 sps:$4 sm:$0xff]   ;;  %v6272_v52 = vld [vmem:[#allocation14 + $0x40] ss:$16 sps:$4 sm:$0xff]  }
 0x32c   :  { %2613 = vmatprep.subr.bf16.mxu1 %v6199_v16  ;;  %v6275_v16 = vld [vmem:[#allocation14 + $0x48] ss:$16 sps:$4 sm:$0xff]  }
 0x32e   :  { %2491 = vmatpush1.bf16.msra.mxu0 %v6194_v53  ;;  %v6280_v53 = vld [vmem:[#allocation14 + $0x64] ss:$16 sps:$4 sm:$0xff]  }
 0x32f   :  { %2614 = vmatpush1.bf16.msra.mxu1 %v6197_v54  ;;  %2492 = vmatprep.subr.bf16.mxu0 %v6202_v55  ;;  %v6283_v54 = vld [vmem:[#allocation14 + $0x6c] ss:$16 sps:$4 sm:$0xff]   ;;  %v6278_v55 = vld [vmem:[#allocation14 + $0x60] ss:$16 sps:$4 sm:$0xff]  }
 0x330   :  { %2615 = vmatprep.subr.bf16.mxu1 %v6205_v56  ;;  %v6281_v56 = vld [vmem:[#allocation14 + $0x68] ss:$16 sps:$4 sm:$0xff]  }
 0x332   :  { %2493 = vmatpush1.bf16.msra.mxu0 %v6200_v57  ;;  %v6286_v57 = vld [vmem:[#allocation14 + $0x84] ss:$16 sps:$4 sm:$0xff]  }
 0x333   :  { %2616 = vmatpush1.bf16.msra.mxu1 %v6203_v60  ;;  %2494 = vmatprep.subr.bf16.mxu0 %v6208_v61  ;;  %v6289_v60 = vld [vmem:[#allocation14 + $0x8c] ss:$16 sps:$4 sm:$0xff]   ;;  %v6284_v61 = vld [vmem:[#allocation14 + $0x80] ss:$16 sps:$4 sm:$0xff]  }
 0x334   :  { %2617 = vmatprep.subr.bf16.mxu1 %v6211_v62  ;;  %v6287_v62 = vld [vmem:[#allocation14 + $0x88] ss:$16 sps:$4 sm:$0xff]  }
 0x336   :  { %2495 = vmatpush1.bf16.msra.mxu0 %v6206_v21  ;;  %v6292_v21 = vld [vmem:[#allocation14 + $0xa4] ss:$16 sps:$4 sm:$0xff]  }
 0x337   :  { %2618 = vmatpush1.bf16.msra.mxu1 %v6209_v2  ;;  %2496 = vmatprep.subr.bf16.mxu0 %v6214_v3  ;;  %v6295_v2 = vld [vmem:[#allocation14 + $0xac] ss:$16 sps:$4 sm:$0xff]   ;;  %v6290_v3 = vld [vmem:[#allocation14 + $0xa0] ss:$16 sps:$4 sm:$0xff]  }
 0x338   :  { %2619 = vmatprep.subr.bf16.mxu1 %v6217_v4  ;;  %v6293_v4 = vld [vmem:[#allocation14 + $0xa8] ss:$16 sps:$4 sm:$0xff]  }
 0x33a   :  { %2497 = vmatpush1.bf16.msra.mxu0 %v6212_v5  ;;  %v6298_v5 = vld [vmem:[#allocation14 + $0xc4] ss:$16 sps:$4 sm:$0xff]  }
 0x33b   :  { %2620 = vmatpush1.bf16.msra.mxu1 %v6215_v6  ;;  %2498 = vmatprep.subr.bf16.mxu0 %v6220_v7  ;;  %v6301_v6 = vld [vmem:[#allocation14 + $0xcc] ss:$16 sps:$4 sm:$0xff]   ;;  %v6296_v7 = vld [vmem:[#allocation14 + $0xc0] ss:$16 sps:$4 sm:$0xff]  }
 0x33c   :  { %2621 = vmatprep.subr.bf16.mxu1 %v6223_v8  ;;  %v6299_v8 = vld [vmem:[#allocation14 + $0xc8] ss:$16 sps:$4 sm:$0xff]  }
 0x33e   :  { %2499 = vmatpush1.bf16.msra.mxu0 %v6218_v9  ;;  %v6304_v9 = vld [vmem:[#allocation14 + $0xe4] ss:$16 sps:$4 sm:$0xff]  }
 0x33f   :  { %2622 = vmatpush1.bf16.msra.mxu1 %v6221_v11  ;;  %2500 = vmatprep.subr.bf16.mxu0 %v6226_v12  ;;  %v6307_v11 = vld [vmem:[#allocation14 + $0xec] ss:$16 sps:$4 sm:$0xff]   ;;  %v6302_v12 = vld [vmem:[#allocation14 + $0xe0] ss:$16 sps:$4 sm:$0xff]  }
 0x340   :  { %2623 = vmatprep.subr.bf16.mxu1 %v6229_v14  ;;  %v6305_v14 = vld [vmem:[#allocation14 + $0xe8] ss:$16 sps:$4 sm:$0xff]  }
 0x342   :  { %2501 = vmatpush1.bf16.msra.mxu0 %v6224_v20  ;;  %v6310_v20 = vld [vmem:[#allocation14 + $0x104] ss:$16 sps:$4 sm:$0xff]  }
 0x343   :  { %2624 = vmatpush1.bf16.msra.mxu1 %v6227_v22  ;;  %2502 = vmatprep.subr.bf16.mxu0 %v6232_v23  ;;  %v6313_v22 = vld [vmem:[#allocation14 + $0x10c] ss:$16 sps:$4 sm:$0xff]   ;;  %v6308_v23 = vld [vmem:[#allocation14 + $0x100] ss:$16 sps:$4 sm:$0xff]  }
 0x344   :  { %2625 = vmatprep.subr.bf16.mxu1 %v6235_v24  ;;  %v6311_v24 = vld [vmem:[#allocation14 + $0x108] ss:$16 sps:$4 sm:$0xff]  }
 0x346   :  { %2503 = vmatpush1.bf16.msra.mxu0 %v6230_v25  ;;  %v6316_v25 = vld [vmem:[#allocation14 + $0x124] ss:$16 sps:$4 sm:$0xff]  }
 0x347   :  { %2626 = vmatpush1.bf16.msra.mxu1 %v6233_v28  ;;  %2504 = vmatprep.subr.bf16.mxu0 %v6238_v29  ;;  %v6319_v28 = vld [vmem:[#allocation14 + $0x12c] ss:$16 sps:$4 sm:$0xff]   ;;  %v6314_v29 = vld [vmem:[#allocation14 + $0x120] ss:$16 sps:$4 sm:$0xff]  }
 0x348   :  { %2627 = vmatprep.subr.bf16.mxu1 %v6241_v30  ;;  %v6317_v30 = vld [vmem:[#allocation14 + $0x128] ss:$16 sps:$4 sm:$0xff]  }
 0x34a   :  { %2505 = vmatpush1.bf16.msra.mxu0 %v6236_v31  ;;  %v6322_v31 = vld [vmem:[#allocation14 + $0x144] ss:$16 sps:$4 sm:$0xff]  }
 0x34b   :  { %2628 = vmatpush1.bf16.msra.mxu1 %v6239_v15  ;;  %2506 = vmatprep.subr.bf16.mxu0 %v6244_v18  ;;  %v6325_v15 = vld [vmem:[#allocation14 + $0x14c] ss:$16 sps:$4 sm:$0xff]   ;;  %v6320_v18 = vld [vmem:[#allocation14 + $0x140] ss:$16 sps:$4 sm:$0xff]  }
 0x34c   :  { %2629 = vmatprep.subr.bf16.mxu1 %v6247_v32  ;;  %v6323_v32 = vld [vmem:[#allocation14 + $0x148] ss:$16 sps:$4 sm:$0xff]  }
 0x34e   :  { %2507 = vmatpush1.bf16.msra.mxu0 %v6242_v33  ;;  %v6328_v33 = vld [vmem:[#allocation14 + $0x164] ss:$16 sps:$4 sm:$0xff]  }
 0x34f   :  { %2630 = vmatpush1.bf16.msra.mxu1 %v6245_v19  ;;  %2508 = vmatprep.subr.bf16.mxu0 %v6250_v36  ;;  %v6331_v19 = vld [vmem:[#allocation14 + $0x16c] ss:$16 sps:$4 sm:$0xff]   ;;  %v6326_v36 = vld [vmem:[#allocation14 + $0x160] ss:$16 sps:$4 sm:$0xff]  }
 0x350   :  { %2631 = vmatprep.subr.bf16.mxu1 %v6253_v27  ;;  %v6329_v27 = vld [vmem:[#allocation14 + $0x168] ss:$16 sps:$4 sm:$0xff]  }
 0x352   :  { %2509 = vmatpush1.bf16.msra.mxu0 %v6248_v38  ;;  %v6334_v38 = vld [vmem:[#allocation14 + $0x184] ss:$16 sps:$4 sm:$0xff]  }
 0x353   :  { %2632 = vmatpush1.bf16.msra.mxu1 %v6251_v42  ;;  %2510 = vmatprep.subr.bf16.mxu0 %v6256_v0  ;;  %v6332_v42 = vld [vmem:[#allocation14 + $0x180] ss:$16 sps:$4 sm:$0xff]   ;;  %v6335_v0 = vld [vmem:[#allocation14 + $0x188] ss:$16 sps:$4 sm:$0xff]  }
 0x354   :  { %2633 = vmatprep.subr.bf16.mxu1 %v6259_v35  ;;  %v6340_v35 = vld [vmem:[#allocation14 + $0x1a4] ss:$16 sps:$4 sm:$0xff]  }
 0x356   :  { %2511 = vmatpush1.bf16.msra.mxu0 %v6254_v34  ;;  %v6343_v34 = vld [vmem:[#allocation14 + $0x1ac] ss:$16 sps:$4 sm:$0xff]  }
 0x357   :  { %2634 = vmatpush1.bf16.msra.mxu1 %v6257_v43  ;;  %3454 = vmatprep.subr.bf16.mxu0 %v6262_v40  ;;  %v6341_v43 = vld [vmem:[#allocation14 + $0x1a8] ss:$16 sps:$4 sm:$0xff]   ;;  %v6346_v40 = vld [vmem:[#allocation14 + $0x1c4] ss:$16 sps:$4 sm:$0xff]  }
 0x358   :  { %3536 = vmatprep.subr.bf16.mxu1 %v6265_v44  ;;  %v6349_v44 = vld [vmem:[#allocation14 + $0x1cc] ss:$16 sps:$4 sm:$0xff]  }
 0x359   :  { %2513 = vmatmul.mubr.bf16.vlgmr.msra.gmra.mrb[4].mxu0 %v1222_v46 }
 0x35a   :  { %2636 = vmatmul.mubr.bf16.vlgmr.msra.gmra.mrb[12].mxu1 %v1222_v46  ;;  %3455 = vmatpush1.bf16.msra.mxu0 %v6260_v45  ;;  %v6344_v45 = vld [vmem:[#allocation14 + $0x1c0] ss:$16 sps:$4 sm:$0xff]   ;;  %v6347_v46 = vld [vmem:[#allocation14 + $0x1c8] ss:$16 sps:$4 sm:$0xff]  }
 0x35b   :  { %3537 = vmatpush1.bf16.msra.mxu1 %v6263_v59  ;;  %3456 = vmatprep.subr.bf16.mxu0 %v6268_v47  ;;  %v6352_v59 = vld [vmem:[#allocation14 + $0x1e4] ss:$16 sps:$4 sm:$0xff]   ;;  %v6355_v47 = vld [vmem:[#allocation14 + $0x1ec] ss:$16 sps:$4 sm:$0xff]  }
 0x35c   :  { %3538 = vmatprep.subr.bf16.mxu1 %v6271_v48  ;;  %v6350_v48 = vld [vmem:[#allocation14 + $0x1e0] ss:$16 sps:$4 sm:$0xff]  }
 0x35e   :  { %3457 = vmatpush1.bf16.msra.mxu0 %v6266_v49  ;;  %v6353_v49 = vld [vmem:[#allocation14 + $0x1e8] ss:$16 sps:$4 sm:$0xff]  }
 0x35f   :  { %3539 = vmatpush1.bf16.msra.mxu1 %v6269_v26  ;;  %3458 = vmatprep.subr.bf16.mxu0 %v6274_v50  ;;  %v6358_v26 = vld [vmem:[#allocation14 + $0x204] ss:$16 sps:$4 sm:$0xff]   ;;  %v6361_v50 = vld [vmem:[#allocation14 + $0x20c] ss:$16 sps:$4 sm:$0xff]  }
 0x360   :  { %3540 = vmatprep.subr.bf16.mxu1 %v6277_v51  ;;  %v7392_v51 = vld [vmem:[#allocation13] sm:$0xf] }
 0x362   :  { %3459 = vmatpush1.bf16.msra.mxu0 %v6272_v52  ;;  %v1421_v52 = vrot.slane %v7392_v51, %v7346_v63 }
 0x363   :  { %3541 = vmatpush1.bf16.msra.mxu1 %v6275_v16  ;;  %3460 = vmatprep.subr.bf16.mxu0 %v6280_v53  ;;  %v1425_v16 = vrot.slane %v7392_v51, %v7349_v1  ;;  %v1433_v53 = vrot.slane %v7392_v51, %v7365_v39 }
 0x364   :  { %3542 = vmatprep.subr.bf16.mxu1 %v6283_v54 }
 0x366   :  { %3461 = vmatpush1.bf16.msra.mxu0 %v6278_v55 }
 0x367   :  { %3543 = vmatpush1.bf16.msra.mxu1 %v6281_v56  ;;  %3462 = vmatprep.subr.bf16.mxu0 %v6286_v57 }
 0x368   :  { %3544 = vmatprep.subr.bf16.mxu1 %v6289_v60 }
 0x36a   :  { %3463 = vmatpush1.bf16.msra.mxu0 %v6284_v61 }
 0x36b   :  { %3545 = vmatpush1.bf16.msra.mxu1 %v6287_v62  ;;  %3464 = vmatprep.subr.bf16.mxu0 %v6292_v21 }
 0x36c   :  { %3546 = vmatprep.subr.bf16.mxu1 %v6295_v2 }
 0x36e   :  { %3465 = vmatpush1.bf16.msra.mxu0 %v6290_v3 }
 0x36f   :  { %3547 = vmatpush1.bf16.msra.mxu1 %v6293_v4  ;;  %3466 = vmatprep.subr.bf16.mxu0 %v6298_v5 }
 0x370   :  { %3548 = vmatprep.subr.bf16.mxu1 %v6301_v6 }
 0x372   :  { %3467 = vmatpush1.bf16.msra.mxu0 %v6296_v7 }
 0x373   :  { %3549 = vmatpush1.bf16.msra.mxu1 %v6299_v8  ;;  %3468 = vmatprep.subr.bf16.mxu0 %v6304_v9 }
 0x374   :  { %3550 = vmatprep.subr.bf16.mxu1 %v6307_v11 }
 0x376   :  { %3469 = vmatpush1.bf16.msra.mxu0 %v6302_v12 }
 0x377   :  { %3551 = vmatpush1.bf16.msra.mxu1 %v6305_v14  ;;  %3470 = vmatprep.subr.bf16.mxu0 %v6310_v20 }
 0x378   :  { %3552 = vmatprep.subr.bf16.mxu1 %v6313_v22 }
 0x37a   :  { %3471 = vmatpush1.bf16.msra.mxu0 %v6308_v23 }
 0x37b   :  { %3553 = vmatpush1.bf16.msra.mxu1 %v6311_v24  ;;  %3472 = vmatprep.subr.bf16.mxu0 %v6316_v25 }
 0x37c   :  { %3554 = vmatprep.subr.bf16.mxu1 %v6319_v28  ;;  %v6356_v28 = vld [vmem:[#allocation14 + $0x200] ss:$16 sps:$4 sm:$0xff]  }
 0x37e   :  { %3473 = vmatpush1.bf16.msra.mxu0 %v6314_v29  ;;  %v6359_v29 = vld [vmem:[#allocation14 + $0x208] ss:$16 sps:$4 sm:$0xff]  }
 0x37f   :  { %3555 = vmatpush1.bf16.msra.mxu1 %v6317_v30  ;;  %3474 = vmatprep.subr.bf16.mxu0 %v6322_v31  ;;  %v6364_v31 = vld [vmem:[#allocation14 + $0x224] ss:$16 sps:$4 sm:$0xff]  }
 0x380   :  { %3556 = vmatprep.subr.bf16.mxu1 %v6325_v15  ;;  %v6367_v15 = vld [vmem:[#allocation14 + $0x22c] ss:$16 sps:$4 sm:$0xff]  }
 0x382   :  { %3475 = vmatpush1.bf16.msra.mxu0 %v6320_v18 }
 0x383   :  { %3557 = vmatpush1.bf16.msra.mxu1 %v6323_v32  ;;  %3476 = vmatprep.subr.bf16.mxu0 %v6328_v33  ;;  %v6362_v32 = vld [vmem:[#allocation14 + $0x220] ss:$16 sps:$4 sm:$0xff]   ;;  %v6365_v33 = vld [vmem:[#allocation14 + $0x228] ss:$16 sps:$4 sm:$0xff]  }
 0x384   :  { %3558 = vmatprep.subr.bf16.mxu1 %v6331_v19  ;;  %v6370_v19 = vld [vmem:[#allocation14 + $0x244] ss:$16 sps:$4 sm:$0xff]  }
 0x386   :  { %3477 = vmatpush1.bf16.msra.mxu0 %v6326_v36  ;;  %v6373_v36 = vld [vmem:[#allocation14 + $0x24c] ss:$16 sps:$4 sm:$0xff]  }
 0x387   :  { %3559 = vmatpush1.bf16.msra.mxu1 %v6329_v27  ;;  %3478 = vmatprep.subr.bf16.mxu0 %v6334_v38  ;;  %v6368_v27 = vld [vmem:[#allocation14 + $0x240] ss:$16 sps:$4 sm:$0xff]   ;;  %v6371_v38 = vld [vmem:[#allocation14 + $0x248] ss:$16 sps:$4 sm:$0xff]  }
 0x388   :  { %3560 = vmatprep.subr.bf16.mxu1 %v6337_v41  ;;  %v6376_v41 = vld [vmem:[#allocation14 + $0x264] ss:$16 sps:$4 sm:$0xff]  }
 0x38a   :  { %3479 = vmatpush1.bf16.msra.mxu0 %v6332_v42  ;;  %v6379_v42 = vld [vmem:[#allocation14 + $0x26c] ss:$16 sps:$4 sm:$0xff]  }
 0x38b   :  { %3561 = vmatpush1.bf16.msra.mxu1 %v6335_v0  ;;  %3480 = vmatprep.subr.bf16.mxu0 %v6340_v35  ;;  %v6374_v0 = vld [vmem:[#allocation14 + $0x260] ss:$16 sps:$4 sm:$0xff]   ;;  %v6377_v35 = vld [vmem:[#allocation14 + $0x268] ss:$16 sps:$4 sm:$0xff]  }
 0x38c   :  { %3562 = vmatprep.subr.bf16.mxu1 %v6343_v34  ;;  %v6382_v34 = vld [vmem:[#allocation14 + $0x284] ss:$16 sps:$4 sm:$0xff]  }
 0x38e   :  { %3481 = vmatpush1.bf16.msra.mxu0 %v6338_v37  ;;  %v6385_v37 = vld [vmem:[#allocation14 + $0x28c] ss:$16 sps:$4 sm:$0xff]  }
 0x38f   :  { %3563 = vmatpush1.bf16.msra.mxu1 %v6341_v43  ;;  %3482 = vmatprep.subr.bf16.mxu0 %v6346_v40  ;;  %v6380_v43 = vld [vmem:[#allocation14 + $0x280] ss:$16 sps:$4 sm:$0xff]   ;;  %v6383_v40 = vld [vmem:[#allocation14 + $0x288] ss:$16 sps:$4 sm:$0xff]  }
 0x390   :  { %3564 = vmatprep.subr.bf16.mxu1 %v6349_v44  ;;  %v6388_v44 = vld [vmem:[#allocation14 + $0x2a4] ss:$16 sps:$4 sm:$0xff]  }
 0x392   :  { %3483 = vmatpush1.bf16.msra.mxu0 %v6344_v45  ;;  %v6391_v45 = vld [vmem:[#allocation14 + $0x2ac] ss:$16 sps:$4 sm:$0xff]  }
 0x393   :  { %3565 = vmatpush1.bf16.msra.mxu1 %v6347_v46  ;;  %3484 = vmatprep.subr.bf16.mxu0 %v6352_v59  ;;  %v6386_v46 = vld [vmem:[#allocation14 + $0x2a0] ss:$16 sps:$4 sm:$0xff]   ;;  %v6389_v59 = vld [vmem:[#allocation14 + $0x2a8] ss:$16 sps:$4 sm:$0xff]  }
 0x394   :  { %3566 = vmatprep.subr.bf16.mxu1 %v6355_v47  ;;  %v6394_v47 = vld [vmem:[#allocation14 + $0x2c4] ss:$16 sps:$4 sm:$0xff]  }
 0x396   :  { %3485 = vmatpush1.bf16.msra.mxu0 %v6350_v48  ;;  %v6397_v48 = vld [vmem:[#allocation14 + $0x2cc] ss:$16 sps:$4 sm:$0xff]  }
 0x397   :  { %3567 = vmatpush1.bf16.msra.mxu1 %v6353_v49  ;;  %3495 = vmatprep.subr.bf16.mxu0 %v6358_v26  ;;  %v6392_v49 = vld [vmem:[#allocation14 + $0x2c0] ss:$16 sps:$4 sm:$0xff]   ;;  %v6395_v26 = vld [vmem:[#allocation14 + $0x2c8] ss:$16 sps:$4 sm:$0xff]  }
 0x398   :  { %3577 = vmatprep.subr.bf16.mxu1 %v6361_v50  ;;  %v6400_v50 = vld [vmem:[#allocation14 + $0x2e4] ss:$16 sps:$4 sm:$0xff]  }
 0x42c   :  { %v2514_v54 = vpop.f32.mrb[4].mxu0 }
 0x42d   :  { %v5746_v55 = vadd.f32 %v2514_v54, %v1421_v52  ;;  %v7400_v56 = vpop.f32.mrb[12].mxu1  ;;  %v2516_v57 = vpop.f32.mrb[5].mxu0  ;;  %v6403_v52 = vld [vmem:[#allocation14 + $0x2ec] ss:$16 sps:$4 sm:$0xff]   ;;  %v6406_v54 = vld [vmem:[#allocation14 + $0x304] ss:$16 sps:$4 sm:$0xff]  }
 0x42e   :  { %v5747_v60 = vadd.f32 %v2516_v57, %v1425_v16  ;;  %v2639_v61 = vpop.f32.mrb[13].mxu1  ;;  %v2518_v62 = vpop.f32.mrb[6].mxu0  ;;  %v6398_v16 = vld [vmem:[#allocation14 + $0x2e0] ss:$16 sps:$4 sm:$0xff]   ;;  %v1429_v57 = vrot.slane %v7392_v51, %v7376_v10 }
 0x42f   :  { %v2644_v21 = vpack.c.bf16 %v5746_v55, %v5746_v55  ;;  %v5749_v2 = vadd.f32 %v2639_v61, %v1433_v53  ;;  %v2641_v3 = vpop.f32.mrb[14].mxu1  ;;  %v2519_v4 = vpop.f32.mrb[7].mxu0  ;;  %v6401_v53 = vld [vmem:[#allocation14 + $0x2e8] ss:$16 sps:$4 sm:$0xff]   ;;  %v6409_v55 = vld [vmem:[#allocation14 + $0x30c] ss:$16 sps:$4 sm:$0xff]  }
 0x430   :  { %v2645_v5 = vpack.c.bf16 %v5747_v60, %v5747_v60  ;;  %v2642_v6 = vpop.f32.mrb[15].mxu1  ;;  %v6404_v60 = vld [vmem:[#allocation14 + $0x300] ss:$16 sps:$4 sm:$0xff]   ;;  %v6407_v61 = vld [vmem:[#allocation14 + $0x308] ss:$16 sps:$4 sm:$0xff]  }
 0x431   :  { %v2648_v7 = vmul.bf16 1056980736, %v2644_v21  ;;  %v2647_v8 = vpack.c.bf16 %v5749_v2, %v5749_v2  ;;  %v6412_v62 = vld [vmem:[#allocation14 + $0x324] ss:$16 sps:$4 sm:$0xff]   ;;  %v6415_v21 = vld [vmem:[#allocation14 + $0x32c] ss:$16 sps:$4 sm:$0xff]   ;;  %v5748_v2 = vadd.f32 %v7400_v56, %v1429_v57 }
 0x432   :  { %v2649_v9 = vmul.bf16 1056980736, %v2645_v5  ;;  %v6410_v3 = vld [vmem:[#allocation14 + $0x320] ss:$16 sps:$4 sm:$0xff]   ;;  %v6413_v4 = vld [vmem:[#allocation14 + $0x328] ss:$16 sps:$4 sm:$0xff]  }
 0x433   :  { %6748 = vtanh.bf16 %v2648_v7  ;;  %v2651_v11 = vmul.bf16 1056980736, %v2647_v8  ;;  %v6418_v5 = vld [vmem:[#allocation14 + $0x344] ss:$16 sps:$4 sm:$0xff]   ;;  %v6421_v6 = vld [vmem:[#allocation14 + $0x34c] ss:$16 sps:$4 sm:$0xff]  }
 0x434   :  { %6750 = vtanh.bf16 %v2649_v9  ;;  %v6416_v51 = vld [vmem:[#allocation14 + $0x340] ss:$16 sps:$4 sm:$0xff]   ;;  %v6419_v8 = vld [vmem:[#allocation14 + $0x348] ss:$16 sps:$4 sm:$0xff]  }
 0x435   :  { %6752 = vtanh.bf16 %v2651_v11  ;;  %v6422_v56 = vld [vmem:[#allocation14 + $0x360] ss:$16 sps:$4 sm:$0xff]  }
 0x436   :  { %v6484_v57 = vld [vmem:[#allocation17 + $0xf4] ss:$24 sps:$4 sm:$0xff]  }
 0x43e   :  { %v6749_v12 = vpop.eup %6748 }
 0x43f   :  { %v6751_v14 = vpop.eup %6750  ;;  %v2656_v20 = vadd.bf16 1065369472, %v6749_v12 }
 0x440   :  { %v6753_v22 = vpop.eup %6752  ;;  %v2657_v23 = vadd.bf16 1065369472, %v6751_v14  ;;  %v6425_v14 = vld [vmem:[#allocation14 + $0x368] ss:$16 sps:$4 sm:$0xff]  }
 0x441   :  { %v2659_v24 = vadd.bf16 1065369472, %v6753_v22  ;;  %v2660_v30 = vmul.bf16 %v2656_v20, %v2648_v7  ;;  %v2646_v7 = vpack.c.bf16 %v5748_v2, %v5748_v2  ;;  %v6430_v20 = vld [vmem:[#allocation14 + $0x384] ss:$16 sps:$4 sm:$0xff]   ;;  %v6433_v22 = vld [vmem:[#allocation14 + $0x38c] ss:$16 sps:$4 sm:$0xff]  }
 0x442   :  { %v2661_v25 = vmul.bf16 %v2657_v23, %v2649_v9  ;;  %v6424_v9 = vld [vmem:[#allocation14 + $0x364] ss:$16 sps:$4 sm:$0xff]   ;;  %v6428_v23 = vld [vmem:[#allocation14 + $0x380] ss:$16 sps:$4 sm:$0xff]  }
 0x443   :  { %v2663_v18 = vmul.bf16 %v2659_v24, %v2651_v11  ;;  %v6427_v11 = vld [vmem:[#allocation14 + $0x36c] ss:$16 sps:$4 sm:$0xff]   ;;  %v2650_v12 = vmul.bf16 1056980736, %v2646_v7  ;;  %v6431_v24 = vld [vmem:[#allocation14 + $0x388] ss:$16 sps:$4 sm:$0xff]  }
 0x444   :  { %3486 = vmatprep.mubr.bf16.mxu0 %v2661_v25  ;;  %3568 = vmatprep.mubr.bf16.mxu1 %v2661_v25  ;;  %v6436_v25 = vld [vmem:[#allocation14 + $0x3a4] ss:$16 sps:$4 sm:$0xff]   ;;  %v6493_v2 = vld [vmem:[#allocation17 + $0x12c] ss:$24 sps:$4 sm:$0xff]  }
 0x445   :  { %3487 = vmatmul.mubr.bf16.vlgmr.msra.gmra.mrb[8].mxu0 %v2660_v30  ;;  %3569 = vmatmul.mubr.bf16.vlgmr.msra.gmra.mrb[16].mxu1 %v2660_v30  ;;  %6754 = vtanh.bf16 %v2650_v12  ;;  %v6437_v30 = vld [vmem:[#allocation14 + $0x3a8] ss:$16 sps:$4 sm:$0xff]   ;;  %v6494_v7 = vld [vmem:[#allocation17 + $0x150] ss:$24 sps:$4 sm:$0xff]  }
 0x446   :  { %3496 = vmatpush1.bf16.msra.mxu0 %v6356_v28  ;;  %3578 = vmatpush1.bf16.msra.mxu1 %v6359_v29  ;;  %v6439_v28 = vld [vmem:[#allocation14 + $0x3ac] ss:$16 sps:$4 sm:$0xff]   ;;  %v6434_v29 = vld [vmem:[#allocation14 + $0x3a0] ss:$16 sps:$4 sm:$0xff]  }
 0x447   :  { %3527 = vmatprep.mubr.bf16.mxu0 %v2663_v18  ;;  %3609 = vmatprep.mubr.bf16.mxu1 %v2663_v18  ;;  %v6440_v18 = vld [vmem:[#allocation14 + $0x3c0] ss:$16 sps:$4 sm:$0xff]  }
 0x448   :  { %3497 = vmatprep.subr.bf16.mxu0 %v6364_v31  ;;  %3579 = vmatprep.subr.bf16.mxu1 %v6367_v15  ;;  %v6442_v31 = vld [vmem:[#allocation14 + $0x3c4] ss:$16 sps:$4 sm:$0xff]   ;;  %v6445_v15 = vld [vmem:[#allocation14 + $0x3cc] ss:$16 sps:$4 sm:$0xff]  }
 0x44a   :  { %3498 = vmatpush1.bf16.msra.mxu0 %v6362_v32  ;;  %3580 = vmatpush1.bf16.msra.mxu1 %v6365_v33  ;;  %v6443_v32 = vld [vmem:[#allocation14 + $0x3c8] ss:$16 sps:$4 sm:$0xff]   ;;  %v6448_v33 = vld [vmem:[#allocation14 + $0x3e4] ss:$16 sps:$4 sm:$0xff]  }
 0x44b   :  { %3499 = vmatprep.subr.bf16.mxu0 %v6370_v19  ;;  %3581 = vmatprep.subr.bf16.mxu1 %v6373_v36  ;;  %v6451_v19 = vld [vmem:[#allocation14 + $0x3ec] ss:$16 sps:$4 sm:$0xff]  }
 0x44e   :  { %3500 = vmatpush1.bf16.msra.mxu0 %v6368_v27  ;;  %3582 = vmatpush1.bf16.msra.mxu1 %v6371_v38  ;;  %v6446_v27 = vld [vmem:[#allocation14 + $0x3e0] ss:$16 sps:$4 sm:$0xff]   ;;  %v6449_v38 = vld [vmem:[#allocation14 + $0x3e8] ss:$16 sps:$4 sm:$0xff]  }
 0x44f   :  { %3501 = vmatprep.subr.bf16.mxu0 %v6376_v41  ;;  %3583 = vmatprep.subr.bf16.mxu1 %v6379_v42  ;;  %v6454_v42 = vld [vmem:[#allocation17 + $0x4] ss:$24 sps:$4 sm:$0xff]  }
 0x450   :  { %v6755_v36 = vpop.eup %6754 }
 0x451   :  { %v2658_v41 = vadd.bf16 1065369472, %v6755_v36  ;;  %v6532_v36 = vld [vmem:[#allocation17 + $0x274] ss:$24 sps:$4 sm:$0xff]  }
 0x452   :  { %3502 = vmatpush1.bf16.msra.mxu0 %v6374_v0  ;;  %3584 = vmatpush1.bf16.msra.mxu1 %v6377_v35  ;;  %v6457_v0 = vld [vmem:[#allocation17 + $0xc] ss:$24 sps:$4 sm:$0xff]   ;;  %v6452_v35 = vld [vmem:[#allocation17] ss:$24 sps:$4 sm:$0xff]  }
 0x453   :  { %3503 = vmatprep.subr.bf16.mxu0 %v6382_v34  ;;  %3585 = vmatprep.subr.bf16.mxu1 %v6385_v37  ;;  %v6455_v34 = vld [vmem:[#allocation17 + $0x8] ss:$24 sps:$4 sm:$0xff]   ;;  %v2662_v37 = vmul.bf16 %v2658_v41, %v2650_v12  ;;  %v6533_v41 = vld [vmem:[#allocation17 + $0x278] ss:$24 sps:$4 sm:$0xff]  }
 0x454   :  { %v6503_v12 = vld [vmem:[#allocation17 + $0x188] ss:$24 sps:$4 sm:$0xff]  }
 0x456   :  { %3504 = vmatpush1.bf16.msra.mxu0 %v6380_v43  ;;  %3586 = vmatpush1.bf16.msra.mxu1 %v6383_v40  ;;  %v6460_v43 = vld [vmem:[#allocation17 + $0x34] ss:$24 sps:$4 sm:$0xff]  }
 0x457   :  { %3505 = vmatprep.subr.bf16.mxu0 %v6388_v44  ;;  %3587 = vmatprep.subr.bf16.mxu1 %v6391_v45  ;;  %v6463_v40 = vld [vmem:[#allocation17 + $0x3c] ss:$24 sps:$4 sm:$0xff]   ;;  %v6458_v44 = vld [vmem:[#allocation17 + $0x30] ss:$24 sps:$4 sm:$0xff]  }
 0x458   :  { %v6461_v45 = vld [vmem:[#allocation17 + $0x38] ss:$24 sps:$4 sm:$0xff]  }
 0x45a   :  { %3506 = vmatpush1.bf16.msra.mxu0 %v6386_v46  ;;  %3588 = vmatpush1.bf16.msra.mxu1 %v6389_v59  ;;  %v6466_v46 = vld [vmem:[#allocation17 + $0x64] ss:$24 sps:$4 sm:$0xff]  }
 0x45b   :  { %3507 = vmatprep.subr.bf16.mxu0 %v6394_v47  ;;  %3589 = vmatprep.subr.bf16.mxu1 %v6397_v48  ;;  %v6469_v59 = vld [vmem:[#allocation17 + $0x6c] ss:$24 sps:$4 sm:$0xff]   ;;  %v6464_v47 = vld [vmem:[#allocation17 + $0x60] ss:$24 sps:$4 sm:$0xff]  }
 0x45c   :  { %v6467_v48 = vld [vmem:[#allocation17 + $0x68] ss:$24 sps:$4 sm:$0xff]  }
 0x45e   :  { %3508 = vmatpush1.bf16.msra.mxu0 %v6392_v49  ;;  %3590 = vmatpush1.bf16.msra.mxu1 %v6395_v26  ;;  %v6472_v49 = vld [vmem:[#allocation17 + $0x94] ss:$24 sps:$4 sm:$0xff]  }
 0x45f   :  { %3509 = vmatprep.subr.bf16.mxu0 %v6400_v50  ;;  %3591 = vmatprep.subr.bf16.mxu1 %v6403_v52  ;;  %v6475_v26 = vld [vmem:[#allocation17 + $0x9c] ss:$24 sps:$4 sm:$0xff]   ;;  %v6470_v50 = vld [vmem:[#allocation17 + $0x90] ss:$24 sps:$4 sm:$0xff]  }
 0x460   :  { %v6473_v52 = vld [vmem:[#allocation17 + $0x98] ss:$24 sps:$4 sm:$0xff]  }
 0x462   :  { %3510 = vmatpush1.bf16.msra.mxu0 %v6398_v16  ;;  %3592 = vmatpush1.bf16.msra.mxu1 %v6401_v53  ;;  %v6478_v16 = vld [vmem:[#allocation17 + $0xc4] ss:$24 sps:$4 sm:$0xff]  }
 0x463   :  { %3511 = vmatprep.subr.bf16.mxu0 %v6406_v54  ;;  %3593 = vmatprep.subr.bf16.mxu1 %v6409_v55  ;;  %v6481_v53 = vld [vmem:[#allocation17 + $0xcc] ss:$24 sps:$4 sm:$0xff]   ;;  %v6476_v54 = vld [vmem:[#allocation17 + $0xc0] ss:$24 sps:$4 sm:$0xff]  }
 0x464   :  { %v6479_v55 = vld [vmem:[#allocation17 + $0xc8] ss:$24 sps:$4 sm:$0xff]  }
 0x466   :  { %3512 = vmatpush1.bf16.msra.mxu0 %v6404_v60  ;;  %3594 = vmatpush1.bf16.msra.mxu1 %v6407_v61  ;;  %v6487_v60 = vld [vmem:[#allocation17 + $0xfc] ss:$24 sps:$4 sm:$0xff]   ;;  %v6482_v61 = vld [vmem:[#allocation17 + $0xf0] ss:$24 sps:$4 sm:$0xff]  }
 0x467   :  { %3513 = vmatprep.subr.bf16.mxu0 %v6412_v62  ;;  %3595 = vmatprep.subr.bf16.mxu1 %v6415_v21  ;;  %v6485_v62 = vld [vmem:[#allocation17 + $0xf8] ss:$24 sps:$4 sm:$0xff]   ;;  %v6490_v21 = vld [vmem:[#allocation17 + $0x124] ss:$24 sps:$4 sm:$0xff]  }
 0x46a   :  { %3514 = vmatpush1.bf16.msra.mxu0 %v6410_v3  ;;  %3596 = vmatpush1.bf16.msra.mxu1 %v6413_v4  ;;  %v6488_v3 = vld [vmem:[#allocation17 + $0x120] ss:$24 sps:$4 sm:$0xff]  }
 0x46b   :  { %3515 = vmatprep.subr.bf16.mxu0 %v6418_v5  ;;  %3597 = vmatprep.subr.bf16.mxu1 %v6421_v6  ;;  %v6491_v4 = vld [vmem:[#allocation17 + $0x128] ss:$24 sps:$4 sm:$0xff]   ;;  %v6496_v5 = vld [vmem:[#allocation17 + $0x154] ss:$24 sps:$4 sm:$0xff]  }
 0x46c   :  { %v6499_v6 = vld [vmem:[#allocation17 + $0x15c] ss:$24 sps:$4 sm:$0xff]  }
 0x46e   :  { %3516 = vmatpush1.bf16.msra.mxu0 %v6416_v51  ;;  %3598 = vmatpush1.bf16.msra.mxu1 %v6419_v8  ;;  %v6497_v51 = vld [vmem:[#allocation17 + $0x158] ss:$24 sps:$4 sm:$0xff]   ;;  %v6502_v8 = vld [vmem:[#allocation17 + $0x184] ss:$24 sps:$4 sm:$0xff]  }
 0x46f   :  { %3517 = vmatprep.subr.bf16.mxu0 %v6424_v9  ;;  %3599 = vmatprep.subr.bf16.mxu1 %v6427_v11  ;;  %v6505_v9 = vld [vmem:[#allocation17 + $0x18c] ss:$24 sps:$4 sm:$0xff]   ;;  %v6500_v11 = vld [vmem:[#allocation17 + $0x180] ss:$24 sps:$4 sm:$0xff]  }
 0x472   :  { %3518 = vmatpush1.bf16.msra.mxu0 %v6422_v56  ;;  %3600 = vmatpush1.bf16.msra.mxu1 %v6425_v14  ;;  %v6508_v56 = vld [vmem:[#allocation17 + $0x1b4] ss:$24 sps:$4 sm:$0xff]  }
 0x473   :  { %3519 = vmatprep.subr.bf16.mxu0 %v6430_v20  ;;  %3601 = vmatprep.subr.bf16.mxu1 %v6433_v22  ;;  %v6511_v14 = vld [vmem:[#allocation17 + $0x1bc] ss:$24 sps:$4 sm:$0xff]   ;;  %v6506_v20 = vld [vmem:[#allocation17 + $0x1b0] ss:$24 sps:$4 sm:$0xff]  }
 0x474   :  { %v6509_v22 = vld [vmem:[#allocation17 + $0x1b8] ss:$24 sps:$4 sm:$0xff]  }
 0x476   :  { %3520 = vmatpush1.bf16.msra.mxu0 %v6428_v23  ;;  %3602 = vmatpush1.bf16.msra.mxu1 %v6431_v24  ;;  %v6514_v23 = vld [vmem:[#allocation17 + $0x1e4] ss:$24 sps:$4 sm:$0xff]  }
 0x477   :  { %3521 = vmatprep.subr.bf16.mxu0 %v6436_v25  ;;  %3603 = vmatprep.subr.bf16.mxu1 %v6439_v28  ;;  %v6517_v24 = vld [vmem:[#allocation17 + $0x1ec] ss:$24 sps:$4 sm:$0xff]   ;;  %v6512_v25 = vld [vmem:[#allocation17 + $0x1e0] ss:$24 sps:$4 sm:$0xff]  }
 0x478   :  { %v6515_v28 = vld [vmem:[#allocation17 + $0x1e8] ss:$24 sps:$4 sm:$0xff]  }
 0x47a   :  { %3522 = vmatpush1.bf16.msra.mxu0 %v6434_v29  ;;  %3604 = vmatpush1.bf16.msra.mxu1 %v6437_v30  ;;  %v6520_v29 = vld [vmem:[#allocation17 + $0x214] ss:$24 sps:$4 sm:$0xff]  }
 0x47b   :  { %3523 = vmatprep.subr.bf16.mxu0 %v6442_v31  ;;  %3605 = vmatprep.subr.bf16.mxu1 %v6445_v15  ;;  %v6523_v30 = vld [vmem:[#allocation17 + $0x21c] ss:$24 sps:$4 sm:$0xff]   ;;  %v6518_v31 = vld [vmem:[#allocation17 + $0x210] ss:$24 sps:$4 sm:$0xff]  }
 0x47c   :  { %v6521_v15 = vld [vmem:[#allocation17 + $0x218] ss:$24 sps:$4 sm:$0xff]  }
 0x47e   :  { %3524 = vmatpush1.bf16.msra.mxu0 %v6440_v18  ;;  %3606 = vmatpush1.bf16.msra.mxu1 %v6443_v32  ;;  %v6526_v18 = vld [vmem:[#allocation17 + $0x244] ss:$24 sps:$4 sm:$0xff]  }
 0x47f   :  { %3525 = vmatprep.subr.bf16.mxu0 %v6448_v33  ;;  %3607 = vmatprep.subr.bf16.mxu1 %v6451_v19  ;;  %v6529_v32 = vld [vmem:[#allocation17 + $0x24c] ss:$24 sps:$4 sm:$0xff]   ;;  %v6524_v33 = vld [vmem:[#allocation17 + $0x240] ss:$24 sps:$4 sm:$0xff]  }
 0x480   :  { %v6527_v19 = vld [vmem:[#allocation17 + $0x248] ss:$24 sps:$4 sm:$0xff]  }
 0x482   :  { %3526 = vmatpush1.bf16.msra.mxu0 %v6446_v27  ;;  %3608 = vmatpush1.bf16.msra.mxu1 %v6449_v38  ;;  %v6535_v27 = vld [vmem:[#allocation17 + $0x27c] ss:$24 sps:$4 sm:$0xff]   ;;  %v6530_v38 = vld [vmem:[#allocation17 + $0x270] ss:$24 sps:$4 sm:$0xff]  }
 0x483   :  { %4822 = vmatprep.subr.bf16.mxu0 %v6454_v42  ;;  %4904 = vmatprep.subr.bf16.mxu1 %v6457_v0  ;;  %v6538_v42 = vld [vmem:[#allocation17 + $0x2a4] ss:$24 sps:$4 sm:$0xff]  }
 0x484   :  { %v6541_v0 = vld [vmem:[#allocation17 + $0x2ac] ss:$24 sps:$4 sm:$0xff]  }
 0x485   :  { %3528 = vmatmul.mubr.bf16.vlgmr.msra.gmra.mrb[8].mxu0 %v2662_v37  ;;  %3610 = vmatmul.mubr.bf16.vlgmr.msra.gmra.mrb[16].mxu1 %v2662_v37  ;;  %v6544_v37 = vld [vmem:[#allocation17 + $0x2d4] ss:$24 sps:$4 sm:$0xff]  }
 0x486   :  { %4823 = vmatpush1.bf16.msra.mxu0 %v6452_v35  ;;  %4905 = vmatpush1.bf16.msra.mxu1 %v6455_v34  ;;  %v6536_v35 = vld [vmem:[#allocation17 + $0x2a0] ss:$24 sps:$4 sm:$0xff]  }
 0x487   :  { %4824 = vmatprep.subr.bf16.mxu0 %v6460_v43  ;;  %4906 = vmatprep.subr.bf16.mxu1 %v6463_v40  ;;  %v6539_v34 = vld [vmem:[#allocation17 + $0x2a8] ss:$24 sps:$4 sm:$0xff]   ;;  %v6547_v43 = vld [vmem:[#allocation17 + $0x2dc] ss:$24 sps:$4 sm:$0xff]  }
 0x488   :  { %v6542_v40 = vld [vmem:[#allocation17 + $0x2d0] ss:$24 sps:$4 sm:$0xff]  }
 0x48a   :  { %4825 = vmatpush1.bf16.msra.mxu0 %v6458_v44  ;;  %4907 = vmatpush1.bf16.msra.mxu1 %v6461_v45  ;;  %v6545_v44 = vld [vmem:[#allocation17 + $0x2d8] ss:$24 sps:$4 sm:$0xff]   ;;  %v6550_v45 = vld [vmem:[#allocation17 + $0x304] ss:$24 sps:$4 sm:$0xff]  }
 0x48b   :  { %4826 = vmatprep.subr.bf16.mxu0 %v6466_v46  ;;  %4908 = vmatprep.subr.bf16.mxu1 %v6469_v59  ;;  %v6553_v46 = vld [vmem:[#allocation17 + $0x30c] ss:$24 sps:$4 sm:$0xff]   ;;  %v7405_v59 = vld [vmem:[#allocation16] sm:$0xf] }
 0x48e   :  { %4827 = vmatpush1.bf16.msra.mxu0 %v6464_v47  ;;  %4909 = vmatpush1.bf16.msra.mxu1 %v6467_v48  ;;  %v2797_v47 = vrot.slane %v7405_v59, %v7346_v63  ;;  %v2801_v48 = vrot.slane %v7405_v59, %v7349_v1 }
 0x48f   :  { %4828 = vmatprep.subr.bf16.mxu0 %v6472_v49  ;;  %4910 = vmatprep.subr.bf16.mxu1 %v6475_v26  ;;  %v2809_v49 = vrot.slane %v7405_v59, %v7365_v39 }
 0x492   :  { %4829 = vmatpush1.bf16.msra.mxu0 %v6470_v50  ;;  %4911 = vmatpush1.bf16.msra.mxu1 %v6473_v52 }
 0x493   :  { %4830 = vmatprep.subr.bf16.mxu0 %v6478_v16  ;;  %4912 = vmatprep.subr.bf16.mxu1 %v6481_v53 }
 0x496   :  { %4831 = vmatpush1.bf16.msra.mxu0 %v6476_v54  ;;  %4913 = vmatpush1.bf16.msra.mxu1 %v6479_v55 }
 0x497   :  { %4832 = vmatprep.subr.bf16.mxu0 %v6484_v57  ;;  %4914 = vmatprep.subr.bf16.mxu1 %v6487_v60 }
 0x49a   :  { %4833 = vmatpush1.bf16.msra.mxu0 %v6482_v61  ;;  %4915 = vmatpush1.bf16.msra.mxu1 %v6485_v62 }
 0x49b   :  { %4834 = vmatprep.subr.bf16.mxu0 %v6490_v21  ;;  %4916 = vmatprep.subr.bf16.mxu1 %v6493_v2 }
 0x49e   :  { %4835 = vmatpush1.bf16.msra.mxu0 %v6488_v3  ;;  %4917 = vmatpush1.bf16.msra.mxu1 %v6491_v4 }
 0x49f   :  { %4836 = vmatprep.subr.bf16.mxu0 %v6496_v5  ;;  %4918 = vmatprep.subr.bf16.mxu1 %v6499_v6 }
 0x4a2   :  { %4837 = vmatpush1.bf16.msra.mxu0 %v6494_v7  ;;  %4919 = vmatpush1.bf16.msra.mxu1 %v6497_v51 }
 0x4a3   :  { %4838 = vmatprep.subr.bf16.mxu0 %v6502_v8  ;;  %4920 = vmatprep.subr.bf16.mxu1 %v6505_v9 }
 0x4a6   :  { %4839 = vmatpush1.bf16.msra.mxu0 %v6500_v11  ;;  %4921 = vmatpush1.bf16.msra.mxu1 %v6503_v12 }
 0x4a7   :  { %4840 = vmatprep.subr.bf16.mxu0 %v6508_v56  ;;  %4922 = vmatprep.subr.bf16.mxu1 %v6511_v14  ;;  %v6548_v14 = vld [vmem:[#allocation17 + $0x300] ss:$24 sps:$4 sm:$0xff]  }
 0x4aa   :  { %4841 = vmatpush1.bf16.msra.mxu0 %v6506_v20  ;;  %4923 = vmatpush1.bf16.msra.mxu1 %v6509_v22  ;;  %v6551_v20 = vld [vmem:[#allocation17 + $0x308] ss:$24 sps:$4 sm:$0xff]  }
 0x4ab   :  { %4842 = vmatprep.subr.bf16.mxu0 %v6514_v23  ;;  %4924 = vmatprep.subr.bf16.mxu1 %v6517_v24  ;;  %v6556_v23 = vld [vmem:[#allocation17 + $0x334] ss:$24 sps:$4 sm:$0xff]  }
 0x4ac   :  { %v6559_v24 = vld [vmem:[#allocation17 + $0x33c] ss:$24 sps:$4 sm:$0xff]  }
 0x4ae   :  { %4843 = vmatpush1.bf16.msra.mxu0 %v6512_v25  ;;  %4925 = vmatpush1.bf16.msra.mxu1 %v6515_v28  ;;  %v6554_v28 = vld [vmem:[#allocation17 + $0x330] ss:$24 sps:$4 sm:$0xff]  }
 0x4af   :  { %4844 = vmatprep.subr.bf16.mxu0 %v6520_v29  ;;  %4926 = vmatprep.subr.bf16.mxu1 %v6523_v30  ;;  %v6557_v29 = vld [vmem:[#allocation17 + $0x338] ss:$24 sps:$4 sm:$0xff]   ;;  %v6562_v30 = vld [vmem:[#allocation17 + $0x364] ss:$24 sps:$4 sm:$0xff]  }
 0x4b2   :  { %4845 = vmatpush1.bf16.msra.mxu0 %v6518_v31  ;;  %4927 = vmatpush1.bf16.msra.mxu1 %v6521_v15  ;;  %v6565_v31 = vld [vmem:[#allocation17 + $0x36c] ss:$24 sps:$4 sm:$0xff]   ;;  %v6560_v15 = vld [vmem:[#allocation17 + $0x360] ss:$24 sps:$4 sm:$0xff]  }
 0x4b3   :  { %4846 = vmatprep.subr.bf16.mxu0 %v6526_v18  ;;  %4928 = vmatprep.subr.bf16.mxu1 %v6529_v32  ;;  %v6563_v18 = vld [vmem:[#allocation17 + $0x368] ss:$24 sps:$4 sm:$0xff]   ;;  %v6568_v32 = vld [vmem:[#allocation17 + $0x394] ss:$24 sps:$4 sm:$0xff]  }
 0x4b6   :  { %4847 = vmatpush1.bf16.msra.mxu0 %v6524_v33  ;;  %4929 = vmatpush1.bf16.msra.mxu1 %v6527_v19  ;;  %v6571_v33 = vld [vmem:[#allocation17 + $0x39c] ss:$24 sps:$4 sm:$0xff]   ;;  %v6566_v19 = vld [vmem:[#allocation17 + $0x390] ss:$24 sps:$4 sm:$0xff]  }
 0x4b7   :  { %4848 = vmatprep.subr.bf16.mxu0 %v6532_v36  ;;  %4930 = vmatprep.subr.bf16.mxu1 %v6535_v27  ;;  %v6569_v36 = vld [vmem:[#allocation17 + $0x398] ss:$24 sps:$4 sm:$0xff]   ;;  %v6574_v27 = vld [vmem:[#allocation17 + $0x3c4] ss:$24 sps:$4 sm:$0xff]  }
 0x4ba   :  { %4849 = vmatpush1.bf16.msra.mxu0 %v6530_v38  ;;  %4931 = vmatpush1.bf16.msra.mxu1 %v6533_v41  ;;  %v6577_v38 = vld [vmem:[#allocation17 + $0x3cc] ss:$24 sps:$4 sm:$0xff]   ;;  %v6572_v41 = vld [vmem:[#allocation17 + $0x3c0] ss:$24 sps:$4 sm:$0xff]  }
 0x4bb   :  { %4850 = vmatprep.subr.bf16.mxu0 %v6538_v42  ;;  %4932 = vmatprep.subr.bf16.mxu1 %v6541_v0  ;;  %v6575_v42 = vld [vmem:[#allocation17 + $0x3c8] ss:$24 sps:$4 sm:$0xff]   ;;  %v6580_v0 = vld [vmem:[#allocation17 + $0x3f4] ss:$24 sps:$4 sm:$0xff]  }
 0x4be   :  { %4851 = vmatpush1.bf16.msra.mxu0 %v6536_v35  ;;  %4933 = vmatpush1.bf16.msra.mxu1 %v6539_v34  ;;  %v6583_v35 = vld [vmem:[#allocation17 + $0x3fc] ss:$24 sps:$4 sm:$0xff]   ;;  %v6578_v34 = vld [vmem:[#allocation17 + $0x3f0] ss:$24 sps:$4 sm:$0xff]  }
 0x4bf   :  { %4852 = vmatprep.subr.bf16.mxu0 %v6544_v37  ;;  %4934 = vmatprep.subr.bf16.mxu1 %v6547_v43  ;;  %v6581_v37 = vld [vmem:[#allocation17 + $0x3f8] ss:$24 sps:$4 sm:$0xff]   ;;  %v6586_v43 = vld [vmem:[#allocation17 + $0x424] ss:$24 sps:$4 sm:$0xff]  }
 0x4c2   :  { %4853 = vmatpush1.bf16.msra.mxu0 %v6542_v40  ;;  %4935 = vmatpush1.bf16.msra.mxu1 %v6545_v44  ;;  %v6589_v40 = vld [vmem:[#allocation17 + $0x42c] ss:$24 sps:$4 sm:$0xff]   ;;  %v6584_v44 = vld [vmem:[#allocation17 + $0x420] ss:$24 sps:$4 sm:$0xff]  }
 0x4c3   :  { %4863 = vmatprep.subr.bf16.mxu0 %v6550_v45  ;;  %4945 = vmatprep.subr.bf16.mxu1 %v6553_v46  ;;  %v6587_v45 = vld [vmem:[#allocation17 + $0x428] ss:$24 sps:$4 sm:$0xff]   ;;  %v6592_v46 = vld [vmem:[#allocation17 + $0x454] ss:$24 sps:$4 sm:$0xff]  }
 0x558   :  { %v3529_v26 = vpop.f32.mrb[8].mxu0  ;;  %v7413_v50 = vpop.f32.mrb[16].mxu1 }
 0x559   :  { %v5750_v52 = vadd.f32 %v3529_v26, %v2797_v47  ;;  %v3531_v16 = vpop.f32.mrb[9].mxu0  ;;  %v3613_v53 = vpop.f32.mrb[17].mxu1  ;;  %v6595_v47 = vld [vmem:[#allocation17 + $0x45c] ss:$24 sps:$4 sm:$0xff]  }
 0x55a   :  { %v5751_v54 = vadd.f32 %v3531_v16, %v2801_v48  ;;  %v5753_v55 = vadd.f32 %v3613_v53, %v2809_v49  ;;  %v3533_v57 = vpop.f32.mrb[10].mxu0  ;;  %v3615_v60 = vpop.f32.mrb[18].mxu1  ;;  %v6590_v48 = vld [vmem:[#allocation17 + $0x450] ss:$24 sps:$4 sm:$0xff]   ;;  %v6598_v26 = vld [vmem:[#allocation17 + $0x484] ss:$24 sps:$4 sm:$0xff]   ;;  %v2805_v16 = vrot.slane %v7405_v59, %v7376_v10 }
 0x55b   :  { %v3618_v61 = vpack.c.bf16 %v5750_v52, %v5750_v52  ;;  %v3534_v62 = vpop.f32.mrb[11].mxu0  ;;  %v3616_v21 = vpop.f32.mrb[19].mxu1  ;;  %v6593_v49 = vld [vmem:[#allocation17 + $0x458] ss:$24 sps:$4 sm:$0xff]   ;;  %v6601_v52 = vld [vmem:[#allocation17 + $0x48c] ss:$24 sps:$4 sm:$0xff]  }
 0x55c   :  { %v3619_v2 = vpack.c.bf16 %v5751_v54, %v5751_v54  ;;  %v3621_v3 = vpack.c.bf16 %v5753_v55, %v5753_v55  ;;  %v6596_v53 = vld [vmem:[#allocation17 + $0x480] ss:$24 sps:$4 sm:$0xff]   ;;  %v6604_v55 = vld [vmem:[#allocation17 + $0x4b4] ss:$24 sps:$4 sm:$0xff]   ;;  %v5752_v60 = vadd.f32 %v7413_v50, %v2805_v16  ;;  %v6610_v21 = vld [vmem:[#allocation17 + $0x4e4] ss:$24 sps:$4 sm:$0xff]  }
 0x55d   :  { %v3622_v4 = vmul.bf16 1056980736, %v3618_v61  ;;  %v6599_v54 = vld [vmem:[#allocation17 + $0x488] ss:$24 sps:$4 sm:$0xff]   ;;  %v6607_v57 = vld [vmem:[#allocation17 + $0x4bc] ss:$24 sps:$4 sm:$0xff]  }
 0x55e   :  { %v3623_v5 = vmul.bf16 1056980736, %v3619_v2  ;;  %v3625_v6 = vmul.bf16 1056980736, %v3621_v3  ;;  %v6602_v61 = vld [vmem:[#allocation17 + $0x4b0] ss:$24 sps:$4 sm:$0xff]   ;;  %v3620_v3 = vpack.c.bf16 %v5752_v60, %v5752_v60 }
 0x55f   :  { %6756 = vtanh.bf16 %v3622_v4  ;;  %v6605_v62 = vld [vmem:[#allocation17 + $0x4b8] ss:$24 sps:$4 sm:$0xff]   ;;  %v6613_v2 = vld [vmem:[#allocation17 + $0x4ec] ss:$24 sps:$4 sm:$0xff]  }
 0x560   :  { %6758 = vtanh.bf16 %v3623_v5  ;;  %v6608_v59 = vld [vmem:[#allocation17 + $0x4e0] ss:$24 sps:$4 sm:$0xff]   ;;  %v6614_v50 = vld [vmem:[#allocation17 + $0x510] ss:$24 sps:$4 sm:$0xff]   ;;  %v6673_v16 = vld [vmem:[#allocation17 + $0x1c4] ss:$24 sps:$4 sm:$0xff]  }
 0x561   :  { %6760 = vtanh.bf16 %v3625_v6  ;;  %v6677_v60 = vld [vmem:[#allocation17 + $0x220] ss:$24 sps:$4 sm:$0xff]  }
 0x56a   :  { %v6757_v7 = vpop.eup %6756 }
 0x56b   :  { %v6759_v51 = vpop.eup %6758  ;;  %v3630_v8 = vadd.bf16 1065369472, %v6757_v7  ;;  %v3624_v7 = vmul.bf16 1056980736, %v3620_v3  ;;  %v6688_v3 = vld [vmem:[#allocation17 + $0x2b4] ss:$24 sps:$4 sm:$0xff]  }
 0x56c   :  { %v6761_v9 = vpop.eup %6760  ;;  %v3631_v11 = vadd.bf16 1065369472, %v6759_v51  ;;  %v6617_v51 = vld [vmem:[#allocation17 + $0x518] ss:$24 sps:$4 sm:$0xff]  }
 0x56d   :  { %v3633_v12 = vadd.bf16 1065369472, %v6761_v9  ;;  %v7417_v22 = vmul.bf16 %v3630_v8, %v3622_v4  ;;  %v6611_v4 = vld [vmem:[#allocation17 + $0x4e8] ss:$24 sps:$4 sm:$0xff]   ;;  %v6622_v8 = vld [vmem:[#allocation17 + $0x544] ss:$24 sps:$4 sm:$0xff]   ;;  %6762 = vtanh.bf16 %v3624_v7 }
 0x56e   :  { %v7415_v56 = vmul.bf16 %v3631_v11, %v3623_v5  ;;  %v6616_v5 = vld [vmem:[#allocation17 + $0x514] ss:$24 sps:$4 sm:$0xff]   ;;  %v6620_v11 = vld [vmem:[#allocation17 + $0x540] ss:$24 sps:$4 sm:$0xff]  }
 0x56f   :  { %v7421_v25 = vmul.bf16 %v3633_v12, %v3625_v6  ;;  %v6619_v6 = vld [vmem:[#allocation17 + $0x51c] ss:$24 sps:$4 sm:$0xff]   ;;  %v6625_v9 = vld [vmem:[#allocation17 + $0x54c] ss:$24 sps:$4 sm:$0xff]   ;;  %v6623_v12 = vld [vmem:[#allocation17 + $0x548] ss:$24 sps:$4 sm:$0xff]  }
 0x570   :  { %4854 = vmatprep.mubr.bf16.mxu0 %v7415_v56  ;;  %4936 = vmatprep.mubr.bf16.mxu1 %v7415_v56 }
 0x571   :  { %4855 = vmatmul.mubr.bf16.vlgmr.msra.gmra.mrb[12].mxu0 %v7417_v22  ;;  %4937 = vmatmul.mubr.bf16.vlgmr.msra.gmra.mrb[20].mxu1 %v7417_v22 }
 0x572   :  { %4864 = vmatpush1.bf16.msra.mxu0 %v6548_v14  ;;  %4946 = vmatpush1.bf16.msra.mxu1 %v6551_v20  ;;  %v6628_v14 = vld [vmem:[#allocation17 + $0x574] ss:$24 sps:$4 sm:$0xff]  }
 0x573   :  { %4895 = vmatprep.mubr.bf16.mxu0 %v7421_v25  ;;  %4977 = vmatprep.mubr.bf16.mxu1 %v7421_v25  ;;  %v6631_v20 = vld [vmem:[#allocation17 + $0x57c] ss:$24 sps:$4 sm:$0xff]  }
 0x574   :  { %4865 = vmatprep.subr.bf16.mxu0 %v6556_v23  ;;  %4947 = vmatprep.subr.bf16.mxu1 %v6559_v24  ;;  %v6626_v23 = vld [vmem:[#allocation17 + $0x570] ss:$24 sps:$4 sm:$0xff]  }
 0x575   :  { %v6629_v24 = vld [vmem:[#allocation17 + $0x578] ss:$24 sps:$4 sm:$0xff]  }
 0x576   :  { %4866 = vmatpush1.bf16.msra.mxu0 %v6554_v28  ;;  %4948 = vmatpush1.bf16.msra.mxu1 %v6557_v29  ;;  %v6634_v28 = vld [vmem:[#allocation17 + $0x5a4] ss:$24 sps:$4 sm:$0xff]  }
 0x577   :  { %4867 = vmatprep.subr.bf16.mxu0 %v6562_v30  ;;  %4949 = vmatprep.subr.bf16.mxu1 %v6565_v31  ;;  %v6637_v29 = vld [vmem:[#allocation17 + $0x5ac] ss:$24 sps:$4 sm:$0xff]   ;;  %v6632_v30 = vld [vmem:[#allocation17 + $0x5a0] ss:$24 sps:$4 sm:$0xff]  }
 0x578   :  { %v6635_v31 = vld [vmem:[#allocation17 + $0x5a8] ss:$24 sps:$4 sm:$0xff]  }
 0x57a   :  { %4868 = vmatpush1.bf16.msra.mxu0 %v6560_v15  ;;  %4950 = vmatpush1.bf16.msra.mxu1 %v6563_v18  ;;  %v6640_v15 = vld [vmem:[#allocation17 + $0x5d4] ss:$24 sps:$4 sm:$0xff]  }
 0x57b   :  { %4869 = vmatprep.subr.bf16.mxu0 %v6568_v32  ;;  %4951 = vmatprep.subr.bf16.mxu1 %v6571_v33  ;;  %v6643_v18 = vld [vmem:[#allocation17 + $0x5dc] ss:$24 sps:$4 sm:$0xff]   ;;  %v6763_v32 = vpop.eup %6762  ;;  %v6638_v33 = vld [vmem:[#allocation17 + $0x5d0] ss:$24 sps:$4 sm:$0xff]  }
 0x57e   :  { %4870 = vmatpush1.bf16.msra.mxu0 %v6566_v19  ;;  %4952 = vmatpush1.bf16.msra.mxu1 %v6569_v36  ;;  %v6641_v19 = vld [vmem:[#allocation17 + $0x5d8] ss:$24 sps:$4 sm:$0xff]   ;;  %v3632_v36 = vadd.bf16 1065369472, %v6763_v32  ;;  %v6724_v32 = vld [vmem:[#allocation17 + $0x4f4] ss:$24 sps:$4 sm:$0xff]  }
 0x57f   :  { %4871 = vmatprep.subr.bf16.mxu0 %v6574_v27  ;;  %4953 = vmatprep.subr.bf16.mxu1 %v6577_v38  ;;  %v6646_v27 = vld [vmem:[#allocation17 + $0x14] ss:$24 sps:$4 sm:$0xff]   ;;  %v6644_v38 = vld [vmem:[#allocation17 + $0x10] ss:$24 sps:$4 sm:$0xff]  }
 0x582   :  { %4872 = vmatpush1.bf16.msra.mxu0 %v6572_v41  ;;  %4954 = vmatpush1.bf16.msra.mxu1 %v6575_v42  ;;  %v7430_v41 = vmul.bf16 %v3632_v36, %v3624_v7  ;;  %v6649_v42 = vld [vmem:[#allocation17 + $0x44] ss:$24 sps:$4 sm:$0xff]   ;;  %v6692_v7 = vld [vmem:[#allocation17 + $0x310] ss:$24 sps:$4 sm:$0xff]   ;;  %v6725_v36 = vld [vmem:[#allocation17 + $0x520] ss:$24 sps:$4 sm:$0xff]  }
 0x583   :  { %4873 = vmatprep.subr.bf16.mxu0 %v6580_v0  ;;  %4955 = vmatprep.subr.bf16.mxu1 %v6583_v35  ;;  %v6647_v0 = vld [vmem:[#allocation17 + $0x40] ss:$24 sps:$4 sm:$0xff]   ;;  %v6652_v35 = vld [vmem:[#allocation17 + $0x74] ss:$24 sps:$4 sm:$0xff]  }
 0x586   :  { %4874 = vmatpush1.bf16.msra.mxu0 %v6578_v34  ;;  %4956 = vmatpush1.bf16.msra.mxu1 %v6581_v37  ;;  %v6650_v34 = vld [vmem:[#allocation17 + $0x70] ss:$24 sps:$4 sm:$0xff]   ;;  %v6655_v37 = vld [vmem:[#allocation17 + $0xa4] ss:$24 sps:$4 sm:$0xff]  }
 0x587   :  { %4875 = vmatprep.subr.bf16.mxu0 %v6586_v43  ;;  %4957 = vmatprep.subr.bf16.mxu1 %v6589_v40  ;;  %v6653_v43 = vld [vmem:[#allocation17 + $0xa0] ss:$24 sps:$4 sm:$0xff]   ;;  %v6658_v40 = vld [vmem:[#allocation17 + $0xd4] ss:$24 sps:$4 sm:$0xff]  }
 0x58a   :  { %4876 = vmatpush1.bf16.msra.mxu0 %v6584_v44  ;;  %4958 = vmatpush1.bf16.msra.mxu1 %v6587_v45  ;;  %v6656_v44 = vld [vmem:[#allocation17 + $0xd0] ss:$24 sps:$4 sm:$0xff]   ;;  %v6661_v45 = vld [vmem:[#allocation17 + $0x104] ss:$24 sps:$4 sm:$0xff]  }
 0x58b   :  { %4877 = vmatprep.subr.bf16.mxu0 %v6592_v46  ;;  %4959 = vmatprep.subr.bf16.mxu1 %v6595_v47  ;;  %v6659_v46 = vld [vmem:[#allocation17 + $0x100] ss:$24 sps:$4 sm:$0xff]   ;;  %v6664_v47 = vld [vmem:[#allocation17 + $0x134] ss:$24 sps:$4 sm:$0xff]  }
 0x58e   :  { %4878 = vmatpush1.bf16.msra.mxu0 %v6590_v48  ;;  %4960 = vmatpush1.bf16.msra.mxu1 %v6593_v49  ;;  %v6667_v48 = vld [vmem:[#allocation17 + $0x164] ss:$24 sps:$4 sm:$0xff]   ;;  %v6665_v49 = vld [vmem:[#allocation17 + $0x160] ss:$24 sps:$4 sm:$0xff]  }
 0x58f   :  { %4879 = vmatprep.subr.bf16.mxu0 %v6598_v26  ;;  %4961 = vmatprep.subr.bf16.mxu1 %v6601_v52  ;;  %v6670_v26 = vld [vmem:[#allocation17 + $0x194] ss:$24 sps:$4 sm:$0xff]   ;;  %v6668_v52 = vld [vmem:[#allocation17 + $0x190] ss:$24 sps:$4 sm:$0xff]  }
 0x592   :  { %4880 = vmatpush1.bf16.msra.mxu0 %v6596_v53  ;;  %4962 = vmatpush1.bf16.msra.mxu1 %v6599_v54  ;;  %v6671_v53 = vld [vmem:[#allocation17 + $0x1c0] ss:$24 sps:$4 sm:$0xff]   ;;  %v6676_v54 = vld [vmem:[#allocation17 + $0x1f4] ss:$24 sps:$4 sm:$0xff]  }
 0x593   :  { %4881 = vmatprep.subr.bf16.mxu0 %v6604_v55  ;;  %4963 = vmatprep.subr.bf16.mxu1 %v6607_v57  ;;  %v6674_v55 = vld [vmem:[#allocation17 + $0x1f0] ss:$24 sps:$4 sm:$0xff]   ;;  %v6679_v57 = vld [vmem:[#allocation17 + $0x224] ss:$24 sps:$4 sm:$0xff]  }
 0x596   :  { %4882 = vmatpush1.bf16.msra.mxu0 %v6602_v61  ;;  %4964 = vmatpush1.bf16.msra.mxu1 %v6605_v62  ;;  %v6682_v61 = vld [vmem:[#allocation17 + $0x254] ss:$24 sps:$4 sm:$0xff]   ;;  %v6680_v62 = vld [vmem:[#allocation17 + $0x250] ss:$24 sps:$4 sm:$0xff]  }
 0x597   :  { %4883 = vmatprep.subr.bf16.mxu0 %v6610_v21  ;;  %4965 = vmatprep.subr.bf16.mxu1 %v6613_v2  ;;  %v6685_v21 = vld [vmem:[#allocation17 + $0x284] ss:$24 sps:$4 sm:$0xff]   ;;  %v6683_v2 = vld [vmem:[#allocation17 + $0x280] ss:$24 sps:$4 sm:$0xff]  }
 0x59a   :  { %4884 = vmatpush1.bf16.msra.mxu0 %v6608_v59  ;;  %4966 = vmatpush1.bf16.msra.mxu1 %v6611_v4  ;;  %v6686_v59 = vld [vmem:[#allocation17 + $0x2b0] ss:$24 sps:$4 sm:$0xff]   ;;  %v6691_v4 = vld [vmem:[#allocation17 + $0x2e4] ss:$24 sps:$4 sm:$0xff]  }
 0x59b   :  { %4885 = vmatprep.subr.bf16.mxu0 %v6616_v5  ;;  %4967 = vmatprep.subr.bf16.mxu1 %v6619_v6  ;;  %v6689_v5 = vld [vmem:[#allocation17 + $0x2e0] ss:$24 sps:$4 sm:$0xff]   ;;  %v6694_v6 = vld [vmem:[#allocation17 + $0x314] ss:$24 sps:$4 sm:$0xff]  }
 0x59e   :  { %4886 = vmatpush1.bf16.msra.mxu0 %v6614_v50  ;;  %4968 = vmatpush1.bf16.msra.mxu1 %v6617_v51  ;;  %v6697_v50 = vld [vmem:[#allocation17 + $0x344] ss:$24 sps:$4 sm:$0xff]   ;;  %v6695_v51 = vld [vmem:[#allocation17 + $0x340] ss:$24 sps:$4 sm:$0xff]  }
 0x59f   :  { %4887 = vmatprep.subr.bf16.mxu0 %v6622_v8  ;;  %4969 = vmatprep.subr.bf16.mxu1 %v6625_v9  ;;  %v6700_v8 = vld [vmem:[#allocation17 + $0x374] ss:$24 sps:$4 sm:$0xff]   ;;  %v6698_v9 = vld [vmem:[#allocation17 + $0x370] ss:$24 sps:$4 sm:$0xff]  }
 0x5a2   :  { %4888 = vmatpush1.bf16.msra.mxu0 %v6620_v11  ;;  %4970 = vmatpush1.bf16.msra.mxu1 %v6623_v12  ;;  %v6703_v11 = vld [vmem:[#allocation17 + $0x3a4] ss:$24 sps:$4 sm:$0xff]   ;;  %v6701_v12 = vld [vmem:[#allocation17 + $0x3a0] ss:$24 sps:$4 sm:$0xff]  }
 0x5a3   :  { %4889 = vmatprep.subr.bf16.mxu0 %v6628_v14  ;;  %4971 = vmatprep.subr.bf16.mxu1 %v6631_v20  ;;  %v6706_v14 = vld [vmem:[#allocation17 + $0x3d4] ss:$24 sps:$4 sm:$0xff]   ;;  %v6704_v20 = vld [vmem:[#allocation17 + $0x3d0] ss:$24 sps:$4 sm:$0xff]  }
 0x5a6   :  { %4890 = vmatpush1.bf16.msra.mxu0 %v6626_v23  ;;  %4972 = vmatpush1.bf16.msra.mxu1 %v6629_v24  ;;  %v6709_v23 = vld [vmem:[#allocation17 + $0x404] ss:$24 sps:$4 sm:$0xff]   ;;  %v6712_v24 = vld [vmem:[#allocation17 + $0x434] ss:$24 sps:$4 sm:$0xff]  }
 0x5a7   :  { %4891 = vmatprep.subr.bf16.mxu0 %v6634_v28  ;;  %4973 = vmatprep.subr.bf16.mxu1 %v6637_v29  ;;  %v6715_v28 = vld [vmem:[#allocation17 + $0x464] ss:$24 sps:$4 sm:$0xff]   ;;  %v6713_v29 = vld [vmem:[#allocation17 + $0x460] ss:$24 sps:$4 sm:$0xff]  }
 0x5aa   :  { %4892 = vmatpush1.bf16.msra.mxu0 %v6632_v30  ;;  %4974 = vmatpush1.bf16.msra.mxu1 %v6635_v31  ;;  %v6718_v30 = vld [vmem:[#allocation17 + $0x494] ss:$24 sps:$4 sm:$0xff]   ;;  %v6716_v31 = vld [vmem:[#allocation17 + $0x490] ss:$24 sps:$4 sm:$0xff]  }
 0x5ab   :  { %4893 = vmatprep.subr.bf16.mxu0 %v6640_v15  ;;  %4975 = vmatprep.subr.bf16.mxu1 %v6643_v18  ;;  %v6721_v15 = vld [vmem:[#allocation17 + $0x4c4] ss:$24 sps:$4 sm:$0xff]   ;;  %v6719_v18 = vld [vmem:[#allocation17 + $0x4c0] ss:$24 sps:$4 sm:$0xff]  }
 0x5ae   :  { %4894 = vmatpush1.bf16.msra.mxu0 %v6638_v33  ;;  %4976 = vmatpush1.bf16.msra.mxu1 %v6641_v19  ;;  %v6722_v33 = vld [vmem:[#allocation17 + $0x4f0] ss:$24 sps:$4 sm:$0xff]   ;;  %v6727_v19 = vld [vmem:[#allocation17 + $0x524] ss:$24 sps:$4 sm:$0xff]  }
 0x5af   :  { %4986 = vmatprep.subr.bf16.mxu0 %v6646_v27  ;;  %v6730_v27 = vld [vmem:[#allocation17 + $0x554] ss:$24 sps:$4 sm:$0xff]  }
 0x5b1   :  { %4896 = vmatmul.mubr.bf16.vlgmr.msra.gmra.mrb[12].mxu0 %v7430_v41  ;;  %4978 = vmatmul.mubr.bf16.vlgmr.msra.gmra.mrb[20].mxu1 %v7430_v41 }
 0x5b2   :  { %4987 = vmatpush1.bf16.msra.mxu0 %v6644_v38  ;;  %5018 = vmatprep.mubr.bf16.mxu0 %v7415_v56  ;;  %v6662_v56 = vld [vmem:[#allocation17 + $0x130] ss:$24 sps:$4 sm:$0xff]  }
 0x5b3   :  { %4988 = vmatprep.subr.bf16.mxu0 %v6649_v42  ;;  %v6728_v38 = vld [vmem:[#allocation17 + $0x550] ss:$24 sps:$4 sm:$0xff]   ;;  %v6733_v42 = vld [vmem:[#allocation17 + $0x584] ss:$24 sps:$4 sm:$0xff]  }
 0x5b6   :  { %4989 = vmatpush1.bf16.msra.mxu0 %v6647_v0  ;;  %v6731_v0 = vld [vmem:[#allocation17 + $0x580] ss:$24 sps:$4 sm:$0xff]  }
 0x5b7   :  { %4990 = vmatprep.subr.bf16.mxu0 %v6652_v35  ;;  %v6736_v35 = vld [vmem:[#allocation17 + $0x5b4] ss:$24 sps:$4 sm:$0xff]  }
 0x5ba   :  { %4991 = vmatpush1.bf16.msra.mxu0 %v6650_v34  ;;  %v6734_v34 = vld [vmem:[#allocation17 + $0x5b0] ss:$24 sps:$4 sm:$0xff]  }
 0x5bb   :  { %4992 = vmatprep.subr.bf16.mxu0 %v6655_v37  ;;  %v6739_v37 = vld [vmem:[#allocation17 + $0x5e4] ss:$24 sps:$4 sm:$0xff]  }
 0x5be   :  { %4993 = vmatpush1.bf16.msra.mxu0 %v6653_v43  ;;  %v6737_v43 = vld [vmem:[#allocation17 + $0x5e0] ss:$24 sps:$4 sm:$0xff]  }
 0x5bf   :  { %4994 = vmatprep.subr.bf16.mxu0 %v6658_v40  ;;  %v3830_v40 = vld [vmem:[#allocation19] sm:$0x3f] }
 0x5c2   :  { %4995 = vmatpush1.bf16.msra.mxu0 %v6656_v44  ;;  %v3835_v44 = vrot.slane %v3830_v40, %v7346_v63 }
 0x5c3   :  { %4996 = vmatprep.subr.bf16.mxu0 %v6661_v45  ;;  %v3843_v45 = vrot.slane %v3830_v40, %v7376_v10 }
 0x5c6   :  { %4997 = vmatpush1.bf16.msra.mxu0 %v6659_v46  ;;  %v3839_v46 = vrot.slane %v3830_v40, %v7349_v1  ;;  %v3851_v1 = vrot.slane %v3830_v40, %v603_v17 }
 0x5c7   :  { %4998 = vmatprep.subr.bf16.mxu0 %v6664_v47  ;;  %v3847_v47 = vrot.slane %v3830_v40, %v7365_v39  ;;  %v3855_v39 = vrot.slane %v3830_v40, %v607_v13 }
 0x5ca   :  { %4999 = vmatpush1.bf16.msra.mxu0 %v6662_v56 }
 0x5cb   :  { %5000 = vmatprep.subr.bf16.mxu0 %v6667_v48 }
 0x5ce   :  { %5001 = vmatpush1.bf16.msra.mxu0 %v6665_v49 }
 0x5cf   :  { %5002 = vmatprep.subr.bf16.mxu0 %v6670_v26 }
 0x5d2   :  { %5003 = vmatpush1.bf16.msra.mxu0 %v6668_v52 }
 0x5d3   :  { %5004 = vmatprep.subr.bf16.mxu0 %v6673_v16 }
 0x5d6   :  { %5005 = vmatpush1.bf16.msra.mxu0 %v6671_v53 }
 0x5d7   :  { %5006 = vmatprep.subr.bf16.mxu0 %v6676_v54 }
 0x5da   :  { %5007 = vmatpush1.bf16.msra.mxu0 %v6674_v55 }
 0x5db   :  { %5008 = vmatprep.subr.bf16.mxu0 %v6679_v57 }
 0x5de   :  { %5009 = vmatpush1.bf16.msra.mxu0 %v6677_v60 }
 0x5df   :  { %5010 = vmatprep.subr.bf16.mxu0 %v6682_v61 }
 0x5e2   :  { %5011 = vmatpush1.bf16.msra.mxu0 %v6680_v62 }
 0x5e3   :  { %5012 = vmatprep.subr.bf16.mxu0 %v6685_v21 }
 0x5e6   :  { %5013 = vmatpush1.bf16.msra.mxu0 %v6683_v2 }
 0x5e7   :  { %5014 = vmatprep.subr.bf16.mxu0 %v6688_v3 }
 0x5ea   :  { %5015 = vmatpush1.bf16.msra.mxu0 %v6686_v59 }
 0x5eb   :  { %5016 = vmatprep.subr.bf16.mxu0 %v6691_v4 }
 0x5ee   :  { %5017 = vmatpush1.bf16.msra.mxu0 %v6689_v5 }
 0x5ef   :  { %5027 = vmatprep.subr.bf16.mxu0 %v6694_v6 }
 0x5f1   :  { %5019 = vmatmul.mubr.bf16.vlgmr.msra.gmra.mrb[16].mxu0 %v7417_v22  ;;  %v6707_v22 = vld [vmem:[#allocation17 + $0x400] ss:$24 sps:$4 sm:$0xff]  }
 0x5f2   :  { %5028 = vmatpush1.bf16.msra.mxu0 %v6692_v7  ;;  %5059 = vmatprep.mubr.bf16.mxu0 %v7421_v25  ;;  %v6710_v25 = vld [vmem:[#allocation17 + $0x430] ss:$24 sps:$4 sm:$0xff]  }
 0x5f3   :  { %5029 = vmatprep.subr.bf16.mxu0 %v6697_v50 }
 0x5f6   :  { %5030 = vmatpush1.bf16.msra.mxu0 %v6695_v51 }
 0x5f7   :  { %5031 = vmatprep.subr.bf16.mxu0 %v6700_v8 }
 0x5fa   :  { %5032 = vmatpush1.bf16.msra.mxu0 %v6698_v9 }
 0x5fb   :  { %5033 = vmatprep.subr.bf16.mxu0 %v6703_v11 }
 0x5fe   :  { %5034 = vmatpush1.bf16.msra.mxu0 %v6701_v12 }
 0x5ff   :  { %5035 = vmatprep.subr.bf16.mxu0 %v6706_v14 }
 0x602   :  { %5036 = vmatpush1.bf16.msra.mxu0 %v6704_v20 }
 0x603   :  { %5037 = vmatprep.subr.bf16.mxu0 %v6709_v23 }
 0x606   :  { %5038 = vmatpush1.bf16.msra.mxu0 %v6707_v22 }
 0x607   :  { %5039 = vmatprep.subr.bf16.mxu0 %v6712_v24 }
 0x60a   :  { %5040 = vmatpush1.bf16.msra.mxu0 %v6710_v25 }
 0x60b   :  { %5041 = vmatprep.subr.bf16.mxu0 %v6715_v28 }
 0x60e   :  { %5042 = vmatpush1.bf16.msra.mxu0 %v6713_v29 }
 0x60f   :  { %5043 = vmatprep.subr.bf16.mxu0 %v6718_v30 }
 0x612   :  { %5044 = vmatpush1.bf16.msra.mxu0 %v6716_v31 }
 0x613   :  { %5045 = vmatprep.subr.bf16.mxu0 %v6721_v15 }
 0x616   :  { %5046 = vmatpush1.bf16.msra.mxu0 %v6719_v18 }
 0x617   :  { %5047 = vmatprep.subr.bf16.mxu0 %v6724_v32 }
 0x61a   :  { %5048 = vmatpush1.bf16.msra.mxu0 %v6722_v33 }
 0x61b   :  { %5049 = vmatprep.subr.bf16.mxu0 %v6727_v19 }
 0x61e   :  { %5050 = vmatpush1.bf16.msra.mxu0 %v6725_v36 }
 0x61f   :  { %5051 = vmatprep.subr.bf16.mxu0 %v6730_v27 }
 0x622   :  { %5052 = vmatpush1.bf16.msra.mxu0 %v6728_v38 }
 0x623   :  { %5053 = vmatprep.subr.bf16.mxu0 %v6733_v42 }
 0x626   :  { %5054 = vmatpush1.bf16.msra.mxu0 %v6731_v0 }
 0x627   :  { %5055 = vmatprep.subr.bf16.mxu0 %v6736_v35 }
 0x62a   :  { %5056 = vmatpush1.bf16.msra.mxu0 %v6734_v34 }
 0x62b   :  { %5057 = vmatprep.subr.bf16.mxu0 %v6739_v37 }
 0x62e   :  { %5058 = vmatpush1.bf16.msra.mxu0 %v6737_v43 }
 0x631   :  { %5060 = vmatmul.mubr.bf16.vlgmr.msra.gmra.mrb[16].mxu0 %v7430_v41 }
 0x684   :  { %v4897_v56 = vpop.f32.mrb[12].mxu0  ;;  %v4979_v48 = vpop.f32.mrb[20].mxu1 }
 0x685   :  { %v5754_v49 = vadd.f32 %v4897_v56, %v3835_v44  ;;  %v5756_v26 = vadd.f32 %v4979_v48, %v3843_v45  ;;  %v4899_v52 = vpop.f32.mrb[13].mxu0  ;;  %v4981_v16 = vpop.f32.mrb[21].mxu1 }
 0x686   :  { %v5755_v53 = vadd.f32 %v4899_v52, %v3839_v46  ;;  %v5757_v54 = vadd.f32 %v4981_v16, %v3847_v47  ;;  %v4901_v55 = vpop.f32.mrb[14].mxu0  ;;  %v4983_v57 = vpop.f32.mrb[22].mxu1 }
 0x687   :  { %v4902_v41 = vpop.f32.mrb[15].mxu0  ;;  %v4984_v60 = vpop.f32.mrb[23].mxu1 }
 0x688   :  { %v5735_v61 = vpack.c.bf16 %v5755_v53, %v5754_v49  ;;  %v5736_v63 = vpack.c.bf16 %v5757_v54, %v5756_v26 }
 0x68a   :  { %5092 = vst [vmem:[#allocation20] sm:$0xff] %v5735_v61  ;;  %5093 = vst [vmem:[#allocation20 + $0x8] sm:$0xff] %v5736_v63 }
 0x704   :  { %v5061_v10 = vpop.f32.mrb[16].mxu0 }
 0x705   :  { %v5758_v62 = vadd.f32 %v5061_v10, %v3851_v1  ;;  %v5063_v21 = vpop.f32.mrb[17].mxu0 }
 0x706   :  { %v5759_v2 = vadd.f32 %v5063_v21, %v3855_v39  ;;  %v5065_v3 = vpop.f32.mrb[18].mxu0 }
 0x707   :  { %v5066_v59 = vpop.f32.mrb[19].mxu0 }
 0x708   :  { %v5737_v4 = vpack.c.bf16 %v5759_v2, %v5758_v62 }
 0x70a   :  { %5094 = vst [vmem:[#allocation20 + $0x10] sm:$0xff] %v5737_v4 }
 0x70b   :  { %7017 = shalt.err (!%p7014_p8)
}
 0x70c   :  { %s7018_s4 = scalar_lea.hbm %s7469_s11, 384 }
 0x70d   :  { %p7019_p9 = scmp.ne.s32.totalorder %s7469_s11, %s7018_s4  ;;  %p7022_p10 = scmp.lt.u32.totalorder %s7018_s4, %s7469_s11 }
 0x70f   :  { %p7024_p11 = pnand %p7022_p10, %p7019_p9 }
 0x711   :  { %7027 = shalt.err (!%p7024_p11)
}
 0x712   :  { %5104 = dma.vmem_to_hbm [thread:$0]  %s5102_s22, 384, %s7469_s11, [#allocation4]  }
 0x713   :  { %7040 = dma.done.wait [#allocation4], 384  }
 0x714   :  { %7041 = vsyncadd [#allocation4], 4294966912 }
 0x715   :  { %5108 = vsyncpa [#allocation3], 1 }
 0x716   :  { %5109 = vsyncpa [#allocation6], 1 }
 0x717   :  { %5110 = vsyncpa [#allocation9], 1 }
 0x718   :  { %5111 = vsyncpa [#allocation12], 1 }
 0x719   :  { %5112 = vsyncpa [#allocation15], 1 }
 0x71a   :  { %5113 = vsyncpa [#allocation18], 1 }
 0x71b   :  { %5114 = vsyncpa [#allocation4], 1 }

</bundles_post_ra>
